<compile_context>
chip_gen: v6e
topology: v6e:2x2x1
jax: 0.10.0
libtpu: 0.0.40
codegen_flags: <defaults>
</compile_context>

<pallas_src>
import functools

import jax
import jax.numpy as jnp
from jax import lax
from jax.experimental import pallas as pl
from jax.experimental.pallas import tpu as pltpu


def _round_up(x, m):
    return (x + m - 1) // m * m


# ----------------------------------------------------------------------------
# Pallas kernel: one batch block per grid step. grid = (B // bt,).
# ----------------------------------------------------------------------------
def _gpsa_kernel(x_ref, wqkv_ref, pos_ref, gate_ref, wproj_ref, bproj_ref, o_ref,
                 *, num_heads, head_dim_p, scale, exact_recip):
    bt, N, Cp = x_ref.shape
    cdt = x_ref.dtype
    approx = not exact_recip

    # Fused QKV projection: one MXU pass with a lane-dense 3*Cp output.
    x2d = x_ref[...].reshape(bt * N, Cp)                                       # (bt*N, Cp)
    qkv = jnp.dot(x2d, wqkv_ref[...], preferred_element_type=jnp.float32)      # (bt*N, 3Cp)
    q = qkv[:, :Cp] * scale                                                    # 128-aligned slices
    k = qkv[:, Cp:2 * Cp]
    v = qkv[:, 2 * Cp:3 * Cp]

    outs = []
    for b in range(bt):                       # static unrolled (small bt)
        r0 = b * N
        head_outs = []
        for h in range(num_heads):            # static unrolled (small H)
            c0 = h * head_dim_p
            qh = q[r0:r0 + N, c0:c0 + head_dim_p].astype(cdt)                  # (N, hd_p)
            kh = k[r0:r0 + N, c0:c0 + head_dim_p].astype(cdt)
            vh = v[r0:r0 + N, c0:c0 + head_dim_p].astype(cdt)

            # patch_score softmax; (1 - sigmoid(gate_h)) folded into the normalization.
            # q . k^T via dot_general (no materialized transpose of k).
            s = lax.dot_general(qh, kh, (((1,), (1,)), ((), ())),
                                preferred_element_type=jnp.float32)            # (N, N)
            s = s - jnp.max(s, axis=-1, keepdims=True)
            p = jnp.exp(s)
            inv = pl.reciprocal(jnp.sum(p, axis=-1, keepdims=True), approx=approx)
            patch = p * (gate_ref[h] * inv)          # gate_ref[h] == 1 - sigmoid(g_h)

            # Gated mix; pos_ref[h] already holds sigmoid(g_h) * softmax(pos_score[h]).
            # Rows already sum to 1 -> no renormalization needed.
            attn = patch + pos_ref[h].astype(jnp.float32)                      # (N, N) f32

            head_outs.append(jnp.dot(attn.astype(cdt), vh,
                                     preferred_element_type=jnp.float32))      # (N, hd_p)
        outs.append(jnp.concatenate(head_outs, axis=-1))                       # (N, Cp)

    head_cat = outs[0] if bt == 1 else jnp.concatenate(outs, axis=0)           # (bt*N, Cp)

    # Single full-depth output projection (K = Cp), bias added in f32.
    proj = jnp.dot(head_cat.astype(cdt), wproj_ref[...],
                   preferred_element_type=jnp.float32) + bproj_ref[...]
    o_ref[...] = proj.reshape(bt, N, Cp).astype(o_ref.dtype)


# ----------------------------------------------------------------------------
# Wrapper: padding, batch-invariant glue, pallas_call.
# ----------------------------------------------------------------------------
def _pick_batch_block(B, N, max_rows=512):
    """Largest bt dividing B with bt*N <= max_rows, keeping >=2 grid steps when B>=2."""
    best = 1
    for cand in range(1, B + 1):
        if B % cand != 0 or cand * N > max_rows:
            continue
        if B >= 2 and (B // cand) < 2:
            continue
        best = cand
    return best


def _estimate_vmem(bt, N, Cp, H, compute_dtype, out_dtype):
    cb = jnp.dtype(compute_dtype).itemsize
    ob = jnp.dtype(out_dtype).itemsize
    blocks = (bt * N * Cp * cb            # x block
              + Cp * 3 * Cp * cb          # fused qkv weight
              + H * N * N * cb            # gated positional softmax
              + Cp * Cp * cb              # proj weight
              + Cp * 4                    # proj bias
              + bt * N * Cp * ob)         # output block
    pipelined = 2 * blocks                # BlockSpec double-buffering
    interm = (bt * N * 3 * Cp * 4         # qkv f32
              + 4 * N * N * 4             # per-head score/exp/attn live set
              + 2 * bt * N * Cp * 4)      # head concat + projection
    est = pipelined + interm
    return int(min(max(8 * 1024 * 1024, 2 * est), 60 * 1024 * 1024))


def gpsa_forward(x, params, *, num_heads, grid_size, compute_dtype=jnp.bfloat16,
                 batch_block=None):
    """GPSA forward pass. x: (B, N, C), N == grid_size[0]*grid_size[1]."""
    B, N, C = x.shape
    assert N == grid_size[0] * grid_size[1]
    assert C % num_heads == 0
    hd = C // num_heads
    scale = hd ** (-0.5)

    # Lane-friendly padding: head_dim -> multiple of 64 (per-head slices land on
    # half-lane-tile offsets); Cp = H * hd_p (multiple of 128 for even H) -> lane-dense out.
    hd_p = _round_up(hd, 64)
    Cp = num_heads * hd_p

    wq, wk, wv = params["wq"], params["wk"], params["wv"]

    def pad_qkv_weight(w):            # (C, C) -> (Cp, Cp), per-head output-column padding
        w = w.reshape(C, num_heads, hd)
        w = jnp.pad(w, ((0, Cp - C), (0, 0), (0, hd_p - hd)))
        return w.reshape(Cp, Cp)

    wqkv = jnp.concatenate(
        [pad_qkv_weight(wq), pad_qkv_weight(wk), pad_qkv_weight(wv)],
        axis=1).astype(compute_dtype)                                          # (Cp, 3Cp)

    wproj = params["wproj"].reshape(num_heads, hd, C)                          # per-head input rows
    wproj = jnp.pad(wproj, ((0, 0), (0, hd_p - hd), (0, Cp - C)))
    wproj = wproj.reshape(Cp, Cp).astype(compute_dtype)                        # (Cp, Cp)
    bproj = jnp.pad(params["bproj"].reshape(1, C),
                    ((0, 0), (0, Cp - C))).astype(jnp.float32)                 # (1, Cp)

    # ---- batch-invariant glue, hoisted out of the kernel ----
    rel = get_rel_indices(*grid_size)                                          # (N, N, 3)
    pos_score = jnp.einsum("nmk,kh->hnm", rel, params["pos_w"]) + \
                params["pos_b"][:, None, None]                                 # (H, N, N)
    pos_sm = jax.nn.softmax(pos_score.astype(jnp.float32), axis=-1)
    sig = jax.nn.sigmoid(params["gating"]).astype(jnp.float32)                 # (H,)
    pos_gated = (sig[:, None, None] * pos_sm).astype(compute_dtype)            # sigma folded in
    one_minus_sig = (1.0 - sig)                                                # (H,) -> SMEM

    # Pad input channels with zeros and cast to the compute dtype.
    x_p = jnp.pad(x, ((0, 0), (0, 0), (0, Cp - C))).astype(compute_dtype)      # (B, N, Cp)

    bt = batch_block if batch_block is not None else _pick_batch_block(B, N)
    assert B % bt == 0
    grid_b = B // bt

    exact_recip = (jnp.dtype(compute_dtype) == jnp.dtype(jnp.float32))
    kernel = functools.partial(_gpsa_kernel, num_heads=num_heads, head_dim_p=hd_p,
                               scale=scale, exact_recip=exact_recip)

    out_p = pl.pallas_call(
        kernel,
        out_shape=jax.ShapeDtypeStruct((B, N, Cp), x.dtype),
        grid_spec=pltpu.PrefetchScalarGridSpec(
            num_scalar_prefetch=0,
            grid=(grid_b,),
            in_specs=[
                pl.BlockSpec((bt, N, Cp), lambda b: (b, 0, 0)),                # x (padded)
                pl.BlockSpec((Cp, 3 * Cp), lambda b: (0, 0)),                  # fused Wqkv
                pl.BlockSpec((num_heads, N, N), lambda b: (0, 0, 0)),          # sig*softmax(pos)
                pl.BlockSpec(memory_space=pltpu.MemorySpace.SMEM),             # 1 - sigmoid(gate)
                pl.BlockSpec((Cp, Cp), lambda b: (0, 0)),                      # Wproj
                pl.BlockSpec((1, Cp), lambda b: (0, 0)),                       # bproj
            ],
            out_specs=pl.BlockSpec((bt, N, Cp), lambda b: (b, 0, 0)),
        ),
        compiler_params=pltpu.CompilerParams(
            dimension_semantics=("parallel",),            # batch blocks are independent
            vmem_limit_bytes=_estimate_vmem(bt, N, Cp, num_heads,
                                            compute_dtype, x.dtype),
        ),
    )(x_p, wqkv, pos_gated, one_minus_sig, wproj, bproj)

    return out_p[:, :, :C]


# ----------------------------------------------------------------------------
# Relative indices (standard ConViT GPSA get_rel_indices): (N, N, 3) with
# channels (dx, dy, dx^2 + dy^2).
# TODO(synk): local_init / get_rel_indices are abstract in the base class; the standard
# ConViT rel-indices are used (forward semantics unaffected).
# ----------------------------------------------------------------------------
def get_rel_indices(Hg, Wg):
    indx = jnp.arange(Wg)[None, :] - jnp.arange(Wg)[:, None]                   # (Wg, Wg)
    indx = jnp.tile(indx, (Hg, Hg))                                            # (N, N)
    indy = jnp.arange(Hg)[None, :] - jnp.arange(Hg)[:, None]                   # (Hg, Hg)
    indy = jnp.repeat(jnp.repeat(indy, Wg, axis=0), Wg, axis=1)                # (N, N)
    indd = indx ** 2 + indy ** 2
    return jnp.stack([indx, indy, indd], axis=-1).astype(jnp.float32)          # (N, N, 3)


# ----------------------------------------------------------------------------
# Pure-JAX reference (mirrors the PyTorch forward exactly) for validation.
# ----------------------------------------------------------------------------
def gpsa_reference(x, params, *, num_heads, grid_size):
    B, N, C = x.shape
    hd = C // num_heads
    scale = hd ** (-0.5)
    q = (x @ params["wq"]).reshape(B, N, num_heads, hd).transpose(0, 2, 1, 3)
    k = (x @ params["wk"]).reshape(B, N, num_heads, hd).transpose(0, 2, 1, 3)
    v = (x @ params["wv"]).reshape(B, N, num_heads, hd).transpose(0, 2, 1, 3)
    rel = get_rel_indices(*grid_size)
    pos_score = jnp.einsum("nmk,kh->hnm", rel, params["pos_w"]) + params["pos_b"][:, None, None]
    pos_score = jnp.broadcast_to(pos_score[None], (B, num_heads, N, N))
    patch = jax.nn.softmax(jnp.einsum("bhnd,bhmd->bhnm", q, k) * scale, axis=-1)
    pos = jax.nn.softmax(pos_score, axis=-1)
    sig = jax.nn.sigmoid(params["gating"])[None, :, None, None]
    attn = (1.0 - sig) * patch + sig * pos
    attn = attn / jnp.sum(attn, axis=-1, keepdims=True)
    out = jnp.einsum("bhnm,bhmd->bhnd", attn, v).transpose(0, 2, 1, 3).reshape(B, N, C)
    return out @ params["wproj"] + params["bproj"][0]


# ----------------------------------------------------------------------------
# Deterministic parameter construction (synthetic, not a checkpoint load).
# ----------------------------------------------------------------------------
def make_params(key, dim, num_heads):
    ks = jax.random.split(key, 6)
    s = 0.05
    return {
        "wq":     s * jax.random.normal(ks[0], (dim, dim), jnp.float32),
        "wk":     s * jax.random.normal(ks[1], (dim, dim), jnp.float32),
        "wv":     s * jax.random.normal(ks[2], (dim, dim), jnp.float32),
        "wproj":  s * jax.random.normal(ks[3], (dim, dim), jnp.float32),
        "bproj":  jnp.zeros((1, dim), jnp.float32),
        "pos_w":  s * jax.random.normal(ks[4], (3, num_heads), jnp.float32),
        "pos_b":  jnp.zeros((num_heads,), jnp.float32),
        "gating": jnp.ones((num_heads,), jnp.float32),   # nn.Parameter(torch.ones(num_heads))
    }


if __name__ == "__main__":
    B, num_heads, dim = 2, 4, 32
    grid_size = (8, 8)
    N = grid_size[0] * grid_size[1]

    key = jax.random.PRNGKey(0)
    kx, kp = jax.random.split(key)
    x = jax.random.normal(kx, (B, N, dim), jnp.float32)
    params = make_params(kp, dim, num_heads)

    ref = gpsa_reference(x, params, num_heads=num_heads, grid_size=grid_size)

    # f32 compute path (exact reciprocal): tight check against the pure-JAX reference.
    out_f32 = gpsa_forward(x, params, num_heads=num_heads, grid_size=grid_size,
                           compute_dtype=jnp.float32)
    out_f32 = jax.block_until_ready(out_f32)
    assert out_f32.shape == (B, N, dim)
    assert jnp.allclose(out_f32, ref, atol=2e-3, rtol=2e-3), "f32 kernel mismatch vs reference"

    # default bf16 matmul path (f32 accumulation): looser tolerance.
    out_bf16 = gpsa_forward(x, params, num_heads=num_heads, grid_size=grid_size)
    out_bf16 = jax.block_until_ready(out_bf16)
    assert out_bf16.shape == (B, N, dim)
    assert jnp.allclose(out_bf16, ref, atol=1e-2, rtol=1e-2), "bf16 kernel mismatch vs reference"

    print("KERNEL_OK")
</pallas_src>

<mosaic_0001>
module attributes {stable_mosaic.version = 11 : i64} {
  func.func @_gpsa_kernel(%arg0: i32, %arg1: memref<1x64x256xf32, #tpu.memory_space<vmem>>, %arg2: memref<256x768xf32, #tpu.memory_space<vmem>>, %arg3: memref<4x64x64xf32, #tpu.memory_space<vmem>>, %arg4: memref<4xf32, #tpu.memory_space<smem>>, %arg5: memref<256x256xf32, #tpu.memory_space<vmem>>, %arg6: memref<1x256xf32, #tpu.memory_space<vmem>>, %arg7: memref<1x64x256xf32, #tpu.memory_space<vmem>>) attributes {dimension_semantics = [#tpu.dimension_semantics<parallel>], iteration_bounds = array<i64: 2>, scalar_prefetch = 0 : i64, scratch_operands = 0 : i64, tpu.core_type = #tpu.core_type<tc>, window_params = [{transform_indices = @transform_0, window_bounds = array<i64: 1, 64, 256>}, {pipeline_mode = #tpu.pipeline_mode<synchronous>, transform_indices = @transform_1, window_bounds = array<i64: 256, 768>}, {pipeline_mode = #tpu.pipeline_mode<synchronous>, transform_indices = @transform_2, window_bounds = array<i64: 4, 64, 64>}, {transform_indices = @transform_3, window_bounds = array<i64: 4>}, {pipeline_mode = #tpu.pipeline_mode<synchronous>, transform_indices = @transform_4, window_bounds = array<i64: 256, 256>}, {pipeline_mode = #tpu.pipeline_mode<synchronous>, transform_indices = @transform_5, window_bounds = array<i64: 1, 256>}, {transform_indices = @transform_6, window_bounds = array<i64: 1, 64, 256>}]} {
    %c0 = arith.constant 0 : index
    %c0_0 = arith.constant 0 : index
    %c0_1 = arith.constant 0 : index
    %0 = vector.load %arg1[%c0, %c0_0, %c0_1] : memref<1x64x256xf32, #tpu.memory_space<vmem>>, vector<1x64x256xf32>
    %1 = vector.shape_cast %0 : vector<1x64x256xf32> to vector<64x256xf32>
    %c0_2 = arith.constant 0 : index
    %c0_3 = arith.constant 0 : index
    %2 = vector.load %arg2[%c0_2, %c0_3] : memref<256x768xf32, #tpu.memory_space<vmem>>, vector<256x768xf32>
    %cst = arith.constant dense<0.000000e+00> : vector<64x768xf32>
    %3 = tpu.matmul %1, %2, %cst {dimension_numbers = #tpu.dot_dimension_numbers<[1], [0], [0], [1], [0, 0, 1, 1], [], []>} : vector<64x256xf32>, vector<256x768xf32>, vector<64x768xf32> -> vector<64x768xf32>
    %4 = vector.extract_strided_slice %3 {offsets = [0, 0], sizes = [64, 256], strides = [1, 1]} : vector<64x768xf32> to vector<64x256xf32>
    %cst_4 = arith.constant 0.353553385 : f32
    %5 = vector.broadcast %cst_4 : f32 to vector<64x256xf32>
    %6 = arith.mulf %4, %5 : vector<64x256xf32>
    %7 = vector.extract_strided_slice %3 {offsets = [0, 256], sizes = [64, 256], strides = [1, 1]} : vector<64x768xf32> to vector<64x256xf32>
    %8 = vector.extract_strided_slice %3 {offsets = [0, 512], sizes = [64, 256], strides = [1, 1]} : vector<64x768xf32> to vector<64x256xf32>
    %9 = vector.extract_strided_slice %6 {offsets = [0, 0], sizes = [64, 64], strides = [1, 1]} : vector<64x256xf32> to vector<64x64xf32>
    %10 = vector.extract_strided_slice %7 {offsets = [0, 0], sizes = [64, 64], strides = [1, 1]} : vector<64x256xf32> to vector<64x64xf32>
    %11 = vector.extract_strided_slice %8 {offsets = [0, 0], sizes = [64, 64], strides = [1, 1]} : vector<64x256xf32> to vector<64x64xf32>
    %cst_5 = arith.constant dense<0.000000e+00> : vector<64x64xf32>
    %12 = tpu.matmul %9, %10, %cst_5 {dimension_numbers = #tpu.dot_dimension_numbers<[1], [1], [0], [0], [0, 0, 1, 0], [], []>} : vector<64x64xf32>, vector<64x64xf32>, vector<64x64xf32> -> vector<64x64xf32>
    %cst_6 = arith.constant dense<0xFF800000> : vector<64xf32>
    %13 = vector.multi_reduction <maximumf>, %12, %cst_6 [1] : vector<64x64xf32> to vector<64xf32>
    %14 = vector.shape_cast %13 : vector<64xf32> to vector<64x1xf32>
    %15 = vector.broadcast %14 : vector<64x1xf32> to vector<64x64xf32>
    %16 = arith.subf %12, %15 : vector<64x64xf32>
    %17 = math.exp %16 : vector<64x64xf32>
    %cst_7 = arith.constant dense<0.000000e+00> : vector<64xf32>
    %18 = vector.multi_reduction <add>, %17, %cst_7 [1] : vector<64x64xf32> to vector<64xf32>
    %19 = vector.shape_cast %18 : vector<64xf32> to vector<64x1xf32>
    %20 = tpu.reciprocal %19 : vector<64x1xf32> -> vector<64x1xf32>
    %c0_8 = arith.constant 0 : index
    %21 = memref.load %arg4[%c0_8] : memref<4xf32, #tpu.memory_space<smem>>
    %22 = vector.broadcast %21 : f32 to vector<64x1xf32>
    %23 = arith.mulf %22, %20 : vector<64x1xf32>
    %24 = vector.broadcast %23 : vector<64x1xf32> to vector<64x64xf32>
    %25 = arith.mulf %17, %24 : vector<64x64xf32>
    %c0_9 = arith.constant 0 : index
    %c0_10 = arith.constant 0 : index
    %c0_11 = arith.constant 0 : index
    %26 = vector.load %arg3[%c0_9, %c0_10, %c0_11] : memref<4x64x64xf32, #tpu.memory_space<vmem>>, vector<1x64x64xf32>
    %27 = vector.shape_cast %26 : vector<1x64x64xf32> to vector<64x64xf32>
    %28 = arith.addf %25, %27 : vector<64x64xf32>
    %cst_12 = arith.constant dense<0.000000e+00> : vector<64x64xf32>
    %29 = tpu.matmul %28, %11, %cst_12 {dimension_numbers = #tpu.dot_dimension_numbers<[1], [0], [0], [1], [0, 0, 1, 1], [], []>} : vector<64x64xf32>, vector<64x64xf32>, vector<64x64xf32> -> vector<64x64xf32>
    %30 = vector.extract_strided_slice %6 {offsets = [0, 64], sizes = [64, 64], strides = [1, 1]} : vector<64x256xf32> to vector<64x64xf32>
    %31 = vector.extract_strided_slice %7 {offsets = [0, 64], sizes = [64, 64], strides = [1, 1]} : vector<64x256xf32> to vector<64x64xf32>
    %32 = vector.extract_strided_slice %8 {offsets = [0, 64], sizes = [64, 64], strides = [1, 1]} : vector<64x256xf32> to vector<64x64xf32>
    %cst_13 = arith.constant dense<0.000000e+00> : vector<64x64xf32>
    %33 = tpu.matmul %30, %31, %cst_13 {dimension_numbers = #tpu.dot_dimension_numbers<[1], [1], [0], [0], [0, 0, 1, 0], [], []>} : vector<64x64xf32>, vector<64x64xf32>, vector<64x64xf32> -> vector<64x64xf32>
    %cst_14 = arith.constant dense<0xFF800000> : vector<64xf32>
    %34 = vector.multi_reduction <maximumf>, %33, %cst_14 [1] : vector<64x64xf32> to vector<64xf32>
    %35 = vector.shape_cast %34 : vector<64xf32> to vector<64x1xf32>
    %36 = vector.broadcast %35 : vector<64x1xf32> to vector<64x64xf32>
    %37 = arith.subf %33, %36 : vector<64x64xf32>
    %38 = math.exp %37 : vector<64x64xf32>
    %cst_15 = arith.constant dense<0.000000e+00> : vector<64xf32>
    %39 = vector.multi_reduction <add>, %38, %cst_15 [1] : vector<64x64xf32> to vector<64xf32>
    %40 = vector.shape_cast %39 : vector<64xf32> to vector<64x1xf32>
    %41 = tpu.reciprocal %40 : vector<64x1xf32> -> vector<64x1xf32>
    %c1 = arith.constant 1 : index
    %42 = memref.load %arg4[%c1] : memref<4xf32, #tpu.memory_space<smem>>
    %43 = vector.broadcast %42 : f32 to vector<64x1xf32>
    %44 = arith.mulf %43, %41 : vector<64x1xf32>
    %45 = vector.broadcast %44 : vector<64x1xf32> to vector<64x64xf32>
    %46 = arith.mulf %38, %45 : vector<64x64xf32>
    %c1_16 = arith.constant 1 : index
    %c0_17 = arith.constant 0 : index
    %c0_18 = arith.constant 0 : index
    %47 = vector.load %arg3[%c1_16, %c0_17, %c0_18] : memref<4x64x64xf32, #tpu.memory_space<vmem>>, vector<1x64x64xf32>
    %48 = vector.shape_cast %47 : vector<1x64x64xf32> to vector<64x64xf32>
    %49 = arith.addf %46, %48 : vector<64x64xf32>
    %cst_19 = arith.constant dense<0.000000e+00> : vector<64x64xf32>
    %50 = tpu.matmul %49, %32, %cst_19 {dimension_numbers = #tpu.dot_dimension_numbers<[1], [0], [0], [1], [0, 0, 1, 1], [], []>} : vector<64x64xf32>, vector<64x64xf32>, vector<64x64xf32> -> vector<64x64xf32>
    %51 = vector.extract_strided_slice %6 {offsets = [0, 128], sizes = [64, 64], strides = [1, 1]} : vector<64x256xf32> to vector<64x64xf32>
    %52 = vector.extract_strided_slice %7 {offsets = [0, 128], sizes = [64, 64], strides = [1, 1]} : vector<64x256xf32> to vector<64x64xf32>
    %53 = vector.extract_strided_slice %8 {offsets = [0, 128], sizes = [64, 64], strides = [1, 1]} : vector<64x256xf32> to vector<64x64xf32>
    %cst_20 = arith.constant dense<0.000000e+00> : vector<64x64xf32>
    %54 = tpu.matmul %51, %52, %cst_20 {dimension_numbers = #tpu.dot_dimension_numbers<[1], [1], [0], [0], [0, 0, 1, 0], [], []>} : vector<64x64xf32>, vector<64x64xf32>, vector<64x64xf32> -> vector<64x64xf32>
    %cst_21 = arith.constant dense<0xFF800000> : vector<64xf32>
    %55 = vector.multi_reduction <maximumf>, %54, %cst_21 [1] : vector<64x64xf32> to vector<64xf32>
    %56 = vector.shape_cast %55 : vector<64xf32> to vector<64x1xf32>
    %57 = vector.broadcast %56 : vector<64x1xf32> to vector<64x64xf32>
    %58 = arith.subf %54, %57 : vector<64x64xf32>
    %59 = math.exp %58 : vector<64x64xf32>
    %cst_22 = arith.constant dense<0.000000e+00> : vector<64xf32>
    %60 = vector.multi_reduction <add>, %59, %cst_22 [1] : vector<64x64xf32> to vector<64xf32>
    %61 = vector.shape_cast %60 : vector<64xf32> to vector<64x1xf32>
    %62 = tpu.reciprocal %61 : vector<64x1xf32> -> vector<64x1xf32>
    %c2 = arith.constant 2 : index
    %63 = memref.load %arg4[%c2] : memref<4xf32, #tpu.memory_space<smem>>
    %64 = vector.broadcast %63 : f32 to vector<64x1xf32>
    %65 = arith.mulf %64, %62 : vector<64x1xf32>
    %66 = vector.broadcast %65 : vector<64x1xf32> to vector<64x64xf32>
    %67 = arith.mulf %59, %66 : vector<64x64xf32>
    %c2_23 = arith.constant 2 : index
    %c0_24 = arith.constant 0 : index
    %c0_25 = arith.constant 0 : index
    %68 = vector.load %arg3[%c2_23, %c0_24, %c0_25] : memref<4x64x64xf32, #tpu.memory_space<vmem>>, vector<1x64x64xf32>
    %69 = vector.shape_cast %68 : vector<1x64x64xf32> to vector<64x64xf32>
    %70 = arith.addf %67, %69 : vector<64x64xf32>
    %cst_26 = arith.constant dense<0.000000e+00> : vector<64x64xf32>
    %71 = tpu.matmul %70, %53, %cst_26 {dimension_numbers = #tpu.dot_dimension_numbers<[1], [0], [0], [1], [0, 0, 1, 1], [], []>} : vector<64x64xf32>, vector<64x64xf32>, vector<64x64xf32> -> vector<64x64xf32>
    %72 = vector.extract_strided_slice %6 {offsets = [0, 192], sizes = [64, 64], strides = [1, 1]} : vector<64x256xf32> to vector<64x64xf32>
    %73 = vector.extract_strided_slice %7 {offsets = [0, 192], sizes = [64, 64], strides = [1, 1]} : vector<64x256xf32> to vector<64x64xf32>
    %74 = vector.extract_strided_slice %8 {offsets = [0, 192], sizes = [64, 64], strides = [1, 1]} : vector<64x256xf32> to vector<64x64xf32>
    %cst_27 = arith.constant dense<0.000000e+00> : vector<64x64xf32>
    %75 = tpu.matmul %72, %73, %cst_27 {dimension_numbers = #tpu.dot_dimension_numbers<[1], [1], [0], [0], [0, 0, 1, 0], [], []>} : vector<64x64xf32>, vector<64x64xf32>, vector<64x64xf32> -> vector<64x64xf32>
    %cst_28 = arith.constant dense<0xFF800000> : vector<64xf32>
    %76 = vector.multi_reduction <maximumf>, %75, %cst_28 [1] : vector<64x64xf32> to vector<64xf32>
    %77 = vector.shape_cast %76 : vector<64xf32> to vector<64x1xf32>
    %78 = vector.broadcast %77 : vector<64x1xf32> to vector<64x64xf32>
    %79 = arith.subf %75, %78 : vector<64x64xf32>
    %80 = math.exp %79 : vector<64x64xf32>
    %cst_29 = arith.constant dense<0.000000e+00> : vector<64xf32>
    %81 = vector.multi_reduction <add>, %80, %cst_29 [1] : vector<64x64xf32> to vector<64xf32>
    %82 = vector.shape_cast %81 : vector<64xf32> to vector<64x1xf32>
    %83 = tpu.reciprocal %82 : vector<64x1xf32> -> vector<64x1xf32>
    %c3 = arith.constant 3 : index
    %84 = memref.load %arg4[%c3] : memref<4xf32, #tpu.memory_space<smem>>
    %85 = vector.broadcast %84 : f32 to vector<64x1xf32>
    %86 = arith.mulf %85, %83 : vector<64x1xf32>
    %87 = vector.broadcast %86 : vector<64x1xf32> to vector<64x64xf32>
    %88 = arith.mulf %80, %87 : vector<64x64xf32>
    %c3_30 = arith.constant 3 : index
    %c0_31 = arith.constant 0 : index
    %c0_32 = arith.constant 0 : index
    %89 = vector.load %arg3[%c3_30, %c0_31, %c0_32] : memref<4x64x64xf32, #tpu.memory_space<vmem>>, vector<1x64x64xf32>
    %90 = vector.shape_cast %89 : vector<1x64x64xf32> to vector<64x64xf32>
    %91 = arith.addf %88, %90 : vector<64x64xf32>
    %cst_33 = arith.constant dense<0.000000e+00> : vector<64x64xf32>
    %92 = tpu.matmul %91, %74, %cst_33 {dimension_numbers = #tpu.dot_dimension_numbers<[1], [0], [0], [1], [0, 0, 1, 1], [], []>} : vector<64x64xf32>, vector<64x64xf32>, vector<64x64xf32> -> vector<64x64xf32>
    %93 = tpu.concatenate %29, %50, %71, %92 in 1 : vector<64x64xf32>, vector<64x64xf32>, vector<64x64xf32>, vector<64x64xf32> -> vector<64x256xf32>
    %c0_34 = arith.constant 0 : index
    %c0_35 = arith.constant 0 : index
    %94 = vector.load %arg5[%c0_34, %c0_35] : memref<256x256xf32, #tpu.memory_space<vmem>>, vector<256x256xf32>
    %cst_36 = arith.constant dense<0.000000e+00> : vector<64x256xf32>
    %95 = tpu.matmul %93, %94, %cst_36 {dimension_numbers = #tpu.dot_dimension_numbers<[1], [0], [0], [1], [0, 0, 1, 1], [], []>} : vector<64x256xf32>, vector<256x256xf32>, vector<64x256xf32> -> vector<64x256xf32>
    %c0_37 = arith.constant 0 : index
    %c0_38 = arith.constant 0 : index
    %96 = vector.load %arg6[%c0_37, %c0_38] : memref<1x256xf32, #tpu.memory_space<vmem>>, vector<1x256xf32>
    %97 = vector.broadcast %96 : vector<1x256xf32> to vector<64x256xf32>
    %98 = arith.addf %95, %97 : vector<64x256xf32>
    %99 = vector.shape_cast %98 : vector<64x256xf32> to vector<1x64x256xf32>
    %c0_39 = arith.constant 0 : index
    %c0_40 = arith.constant 0 : index
    %c0_41 = arith.constant 0 : index
    %100 = vector.load %arg7[%c0_39, %c0_40, %c0_41] : memref<1x64x256xf32, #tpu.memory_space<vmem>>, vector<1x64x256xf32>
    tpu.vector_store %arg7[%c0_39, %c0_40, %c0_41], %99 {strides = array<i32>} : memref<1x64x256xf32, #tpu.memory_space<vmem>>, vector<1x64x256xf32>,
    return
  }
  func.func @transform_0(%arg0: i32) -> (i32, i32, i32) {
    %c0_i32 = arith.constant 0 : i32
    %c0_i32_0 = arith.constant 0 : i32
    %c0_i32_1 = arith.constant 0 : i32
    return %arg0, %c0_i32, %c0_i32_0 : i32, i32, i32
  }
  func.func @transform_1(%arg0: i32) -> (i32, i32) {
    %c0_i32 = arith.constant 0 : i32
    %c0_i32_0 = arith.constant 0 : i32
    %c0_i32_1 = arith.constant 0 : i32
    return %c0_i32, %c0_i32_0 : i32, i32
  }
  func.func @transform_2(%arg0: i32) -> (i32, i32, i32) {
    %c0_i32 = arith.constant 0 : i32
    %c0_i32_0 = arith.constant 0 : i32
    %c0_i32_1 = arith.constant 0 : i32
    %c0_i32_2 = arith.constant 0 : i32
    return %c0_i32, %c0_i32_0, %c0_i32_1 : i32, i32, i32
  }
  func.func @transform_3(%arg0: i32) -> i32 {
    %c0_i32 = arith.constant 0 : i32
    %c0_i32_0 = arith.constant 0 : i32
    return %c0_i32 : i32
  }
  func.func @transform_4(%arg0: i32) -> (i32, i32) {
    %c0_i32 = arith.constant 0 : i32
    %c0_i32_0 = arith.constant 0 : i32
    %c0_i32_1 = arith.constant 0 : i32
    return %c0_i32, %c0_i32_0 : i32, i32
  }
  func.func @transform_5(%arg0: i32) -> (i32, i32) {
    %c0_i32 = arith.constant 0 : i32
    %c0_i32_0 = arith.constant 0 : i32
    %c0_i32_1 = arith.constant 0 : i32
    return %c0_i32, %c0_i32_0 : i32, i32
  }
  func.func @transform_6(%arg0: i32) -> (i32, i32, i32) {
    %c0_i32 = arith.constant 0 : i32
    %c0_i32_0 = arith.constant 0 : i32
    %c0_i32_1 = arith.constant 0 : i32
    return %arg0, %c0_i32, %c0_i32_0 : i32, i32, i32
  }
}

</mosaic_0001>

<bundles_post_ra>
// kernel: tpu_custom_call.1
= control target key start
LH: loop header
LB: loop body
LE: loop exit
PB: predicated region body
PF: predicated region fallthrough
CT: control target
= control target key end

     0   :  { %11 = vsyncpa [#allocation3], 0  ;;  %s5082_s0 = inlined_call_operand.hbm [shape: f32[2,64,256], index: 0, kind: input, shape index: {}]   ;;  %s5083_s1 = inlined_call_operand.hbm [shape: f32[256,768], index: 1, kind: input, shape index: {}]   ;;  %s5084_s2 = inlined_call_operand.hbm [shape: f32[4,64,64], index: 2, kind: input, shape index: {}]   ;;  %s5085_s3 = inlined_call_operand.vmem [shape: f32[4], index: 3, kind: input, shape index: {}]   ;;  %s5086_s4 = inlined_call_operand.hbm [shape: f32[256,256], index: 4, kind: input, shape index: {}]   ;;  %s5087_s5 = inlined_call_operand.vmem [shape: f32[1,256], index: 5, kind: input, shape index: {}]   ;;  %s5088_s6 = inlined_call_operand.hbm [shape: f32[2,64,256], index: 6, kind: output, shape index: {}]  }
   0x1   :  { %13 = vsyncpa [#allocation3 + $0x1], 0 }
   0x2   :  { %14 = vsyncpa [#allocation7], 0 }
   0x3   :  { %15 = vsyncpa [#allocation5], 0 }
   0x4   :  { %16 = vsyncpa [#allocation11], 0 }
   0x5   :  { %17 = vsyncpa [#allocation4], 0 }
   0x6   :  { %19 = vsyncpa [#allocation4 + $0x1], 0  ;;  %s3976_s21 = smov 0   ;;  %s3978_s22 = smov 0  }
   0x7   :  { %s3980_s23 = smov 0   ;;  %s3982_s24 = smov 0  }
   0x8 LB: > { %s3997_s25 = sadd.s32 4294967295, %s3924_s24   ;;  %s2988_s26 = sadd.s32 4294967294, %s3924_s24   ;;  %s3924_s24 = sphi %s3982_s24, %s5124_s24   ;;  %s3920_s23 = sphi %s3980_s23, %s5123_s23   ;;  %s3916_s22 = sphi %s3978_s22, %s5122_s22   ;;  %s3912_s21 = sphi %s3976_s21, %s5121_s21  }
   0x9   : > { %p45_p0 = scmp.ne.s32.totalorder %s3916_s22, %s3912_s21  ;;  %p5089_p1 = scmp.eq.s32.totalorder %s3997_s25, 0 }
   0xa   : > { %p180_p3 = scmp.eq.s32.totalorder %s2988_s26, 1  ;;  %p2989_p5 = scmp.ge.s32.totalorder %s3924_s24, 1 }
   0xb   : > { %p4006_p4 = por %p5089_p1, %p45_p0  ;;  %p187_p7 = scmp.lt.s32.totalorder %s3924_s24, 3 }
   0xc   : > { %p4011_p6 = por %p180_p3, %p45_p0  ;;  %s3926_s30 = smov [#allocation6]  }
   0xd   : > { %s5095_s27 = scalar_select %p4006_p4, 1, 0 }
   0xe   : > { %s5096_s28 = scalar_select %p4011_p6, 1, 0 }
   0xf   : > { %p4016_p8 = pnand %p2989_p5, %p187_p7  ;;  %s199_s7 = sshll.u32 %s3926_s30, 4  ;;  %s200_s7 = int_to_ptr.vmem [resolvable:$true] %s199_s7 }
  0x10   : > { %s3927_s9 = smov [#allocation8]   ;;  %s3738_s11 = scalar_lea.vmem %s200_s7, 24576 }
  0x11   : > { %s5097_s29 = scalar_select %p4016_p8, 1, 0 }
  0x12   : > { %p3483_p9 = pneg %p4016_p8  ;;  %s212_s10 = sshll.u32 %s3927_s9, 4  ;;  %s213_s10 = int_to_ptr.vmem [resolvable:$true] %s212_s10 }
  0x13   : > { %p3739_p13 = scmp.ne.s32.totalorder %s200_s7, %s3738_s11  ;;  %p3746_p5 = scmp.lt.s32.totalorder %s200_s7, %s200_s7 }
  0x14   : > { %p4025_p11 = pnand %p3483_p9, %p5089_p1  ;;  %p3747_p7 = scmp.lt.s32.totalorder %s3738_s11, %s3738_s11 }
  0x16   : > { %p3729_p12 = pneg %p4025_p11  ;;  %p3748_p10 = por %p3747_p7, %p3746_p5 }
  0x18   : > { %p3741_p0 = pnand %p3739_p13, %p3729_p12 }
  0x1a   : > { %p3742_p3 = pneg %p3741_p0 }
  0x1c   : > { %p3749_p9 = pnand %p3748_p10, %p3742_p3 }
  0x1e   : > { %3752 = shalt.err (!%p3749_p9)
}
  0x1f   : > { %s3928_s12 = smov 768   ;;  %s3929_s13 = smov 48  }
  0x20   : > { %3486 = dma.hbm_to_vmem [thread:$0]  (!%p4025_p11), %s5083_s1, 24576, %s200_s7, [#allocation7], %s3928_s12, %s3928_s12, %s3929_s13  }
  0x21   : > { %s3764_s16 = scalar_lea.vmem %s213_s10, 4096  ;;  %p3772_p2 = scmp.lt.s32.totalorder %s213_s10, %s213_s10 }
  0x22   : > { %p3765_p1 = scmp.ne.s32.totalorder %s213_s10, %s3764_s16  ;;  %p3773_p6 = scmp.lt.s32.totalorder %s3764_s16, %s3764_s16 }
  0x24   : > { %p3767_p13 = pnand %p3765_p1, %p3729_p12  ;;  %p3774_p5 = por %p3773_p6, %p3772_p2 }
  0x26   : > { %p3768_p0 = pneg %p3767_p13 }
  0x28   : > { %p3775_p10 = pnand %p3774_p5, %p3768_p0 }
  0x2a   : > { %3778 = shalt.err (!%p3775_p10)
}
  0x2b   : > { %s3930_s17 = smov 128   ;;  %s3931_s18 = smov 8  }
  0x2c   : > { %3489 = dma.hbm_to_vmem [thread:$0]  (!%p4025_p11), %s5084_s2, 4096, %s213_s10, [#allocation7], %s3930_s17, %s3930_s17, %s3931_s18  }
  0x2d   : > { %s226_s7 = sshll.u32 %s5085_s3, 4  ;;  %s227_s7 = int_to_ptr.vmem [resolvable:$true] %s226_s7 }
  0x2e   : > { %s3779_s9 = scalar_lea.vmem %s227_s7, 16  ;;  %p3787_p3 = scmp.lt.s32.totalorder %s227_s7, %s227_s7 }
  0x2f   : > { %p3780_p1 = scmp.ne.s32.totalorder %s227_s7, %s3779_s9  ;;  %p3788_p7 = scmp.lt.s32.totalorder %s3779_s9, %s3779_s9 }
  0x31   : > { %p3782_p2 = pnand %p3780_p1, %p3729_p12  ;;  %p3789_p9 = por %p3788_p7, %p3787_p3 }
  0x33   : > { %p3783_p6 = pneg %p3782_p2 }
  0x35   : > { %p3790_p13 = pnand %p3789_p9, %p3783_p6 }
  0x37   : > { %3793 = shalt.err (!%p3790_p13)
}
  0x38   : > { %s3932_s11 = smov [#allocation9]   ;;  %s3933_s10 = smov [#allocation10]  }
  0x39   : > { %3492 = dma.vmem_to_smem (!%p4025_p11), %s227_s7, 16, %s3932_s11, [#allocation5]  }
  0x3a   : > { %s236_s12 = sshll.u32 %s3933_s10, 4  ;;  %s237_s12 = int_to_ptr.vmem [resolvable:$true] %s236_s12 }
  0x3b   : > { %s3805_s13 = scalar_lea.vmem %s237_s12, 8192  ;;  %p3813_p1 = scmp.lt.s32.totalorder %s237_s12, %s237_s12 }
  0x3c   : > { %p3806_p0 = scmp.ne.s32.totalorder %s237_s12, %s3805_s13  ;;  %p3814_p2 = scmp.lt.s32.totalorder %s3805_s13, %s3805_s13 }
  0x3e   : > { %p3808_p5 = pnand %p3806_p0, %p3729_p12  ;;  %p3815_p4 = por %p3814_p2, %p3813_p1 }
  0x40   : > { %p3809_p10 = pneg %p3808_p5 }
  0x42   : > { %p3816_p3 = pnand %p3815_p4, %p3809_p10 }
  0x44   : > { %3819 = shalt.err (!%p3816_p3)
}
  0x45   : > { %s5091_s14 = smov 256   ;;  %s5092_s15 = smov 16  }
  0x46   : > { %3495 = dma.hbm_to_vmem [thread:$0]  (!%p4025_p11), %s5086_s4, 8192, %s237_s12, [#allocation11], %s5091_s14, %s5091_s14, %s5092_s15  }
  0x47   : > { %s4067_s18 = sadd.s32 1, %s3924_s24   ;;  %s32_s20 = sadd.s32 1, %s3920_s23 }
  0x48   : > { %s29_s19 = ssub.s32 %s3924_s24, %s4067_s18  ;;  %p39_p12 = scmp.ne.s32.totalorder %s3920_s23, %s3916_s22 }
  0x49   : > { %p30_p4 = scmp.eq.s32.totalorder %s29_s19, 0  ;;  %p40_p6 = scmp.eq.s32.totalorder %s3924_s24, 0 }
  0x4a   : > { %p5099_p9 = scmp.eq.s32.totalorder %s3997_s25, 1  ;;  %p3508_p0 = scmp.lt.s32.totalorder %s3924_s24, 2 }
  0x4b   : > { %s4076_s26 = scalar_select %p30_p4, %s3920_s23, %s32_s20  }
  0x4c   : > { %p41_p7 = por %p40_p6, %p39_p12  ;;  %p4080_p13 = por %p5099_p9, %p39_p12 }
  0x4d   : > { %s253_s30 = sand.u32 1, %s3920_s23   ;;  %s3109_s9 = sshll.u32 %s3924_s24, 11 }
  0x4e   : > { %s5100_s8 = scalar_select %p4080_p13, 1, 0 }
  0x4f   : > { %s2995_s7 = sshll.u32 %s253_s30, 7  ;;  %s4090_s12 = scalar_lea.hbm %s5082_s0, %s3109_s9 }
  0x50   : > { %s257_s13 = scalar_lea.vmem [#allocation2], %s2995_s7  ;;  %p4094_p11 = pnand %p3508_p0, %p41_p7 }
  0x51   : > { %s264_s16 = sshll.u32 %s257_s13, 4  ;;  %s4098_s19 = scalar_lea.sflag [#allocation3], %s253_s30  ;;  %s4092_s16 = int_to_ptr.vmem [resolvable:$true] %s264_s16 }
  0x52   : > { %s3820_s20 = scalar_lea.hbm %s4090_s12, 2048  ;;  %p3822_p10 = pneg %p4094_p11 }
  0x53   : > { %p3821_p5 = scmp.ne.s32.totalorder %s4090_s12, %s3820_s20  ;;  %s3825_s7 = scalar_lea.hbm %s5082_s0, 4096 }
  0x54   : > { %p3826_p3 = scmp.lt.s32.totalorder %s4090_s12, %s5082_s0  ;;  %p3827_p4 = scmp.lt.s32.totalorder %s3825_s7, %s3820_s20 }
  0x55   : > { %p3823_p1 = pnand %p3822_p10, %p3821_p5 }
  0x56   : > { %p3828_p12 = por %p3827_p4, %p3826_p3 }
  0x57   : > { %p3824_p2 = pneg %p3823_p1 }
  0x59   : > { %p3829_p6 = pnand %p3828_p12, %p3824_p2 }
  0x5b   : > { %3832 = shalt.err (!%p3829_p6)
}
  0x5c   : > { %s3833_s30 = scalar_lea.vmem %s4092_s16, 2048  ;;  %s3936_s14 = smov [#allocation2]  }
  0x5d   : > { %p3834_p7 = scmp.ne.s32.totalorder %s4092_s16, %s3833_s30  ;;  %s3838_s15 = sshll.u32 %s3936_s14, 4  ;;  %s3839_s15 = int_to_ptr.vmem [resolvable:$false] %s3838_s15 }
  0x5e   : > { %s3840_s9 = scalar_lea.vmem %s3839_s15, 4096  ;;  %p3841_p5 = scmp.lt.s32.totalorder %s4092_s16, %s3839_s15 }
  0x5f   : > { %p3836_p9 = pnand %p3834_p7, %p3822_p10  ;;  %p3842_p1 = scmp.lt.s32.totalorder %s3840_s9, %s3833_s30 }
  0x61   : > { %p3837_p0 = pneg %p3836_p9  ;;  %p3843_p13 = por %p3842_p1, %p3841_p5 }
  0x63   : > { %p3844_p8 = pnand %p3843_p13, %p3837_p0 }
  0x65   : > { %3847 = shalt.err (!%p3844_p8)
}
  0x66   : > { %s5102_s20 = smov 16   ;;  %s5103_s11 = smov 256  }
  0x67   : > { %3499 = dma.hbm_to_vmem [thread:$0]  (!%p4094_p11), %s4090_s12, 2048, %s4092_s16, %s4098_s19, %s5103_s11, %s5103_s11, %s5102_s20  }
  0x68   : > { %p5104_p10 = scmp.ne.s32.totalorder %s5097_s29, 0 }
  0x6a   : > { %276 = sbr.rel (%p5104_p10) target bundleno = 2836 (0xb14), region = 44 }
  0x6f   : > { %s4125_s14 = sand.u32 1, %s3916_s22   ;;  %p5105_p8 = scmp.ne.s32.totalorder %s5095_s27, 0 }
  0x70   : > { %s2999_s15 = sshll.u32 %s4125_s14, 7  ;;  %s279_s7 = scalar_lea.sflag [#allocation3], %s4125_s14 }
  0x71   : > { %s4131_s17 = scalar_lea.vmem [#allocation2], %s2999_s15 }
  0x72   : > { %3891 = dma.done.wait (%p5105_p8), %s279_s7, 2048  }
  0x73   : > { %3893 = vsyncadd (%p5105_p8), %s279_s7, 4294965248  ;;  %p5106_p13 = scmp.eq.s32.totalorder %s3997_s25, 0 }
  0x75   : > { %3895 = dma.done.wait (%p5106_p13), [#allocation7], 28672   ;;  %p5107_p11 = pmov %p5106_p13 }
  0x77   : > { %3897 = vsyncadd (%p5107_p11), [#allocation7], 4294938624  ;;  %p5108_p2 = pmov %p5107_p11 }
  0x79   : > { %3899 = dma.done.wait (%p5108_p2), [#allocation5], 16   ;;  %p5109_p3 = pmov %p5108_p2 }
  0x7a   : > { %p5110_p4 = pmov %p5108_p2 }
  0x7b   : > { %3901 = vsyncadd (%p5109_p3), [#allocation5], 4294967280 }
  0x7c   : > { %3903 = dma.done.wait (%p5110_p4), [#allocation11], 8192   ;;  %p5111_p12 = pmov %p5108_p2 }
  0x7e   : > { %3905 = vsyncadd (%p5111_p12), [#allocation11], 4294959104 }
  0x7f   : > { %303 = sfence }
  0x80   : > { %v435_v0 = vld [vmem:[#allocation6 + $0x2d8] sm:$0xff]  ;;  %v437_v1 = vld [vmem:[#allocation6 + $0x2e8] sm:$0xff]  ;;  %v434_v2 = vld [vmem:[#allocation6 + $0x2d0] sm:$0xff]  ;;  %vm891_vm0 = vcmask 523264   ;;  %s3937_s27 = smov 64   ;;  %s1125_s29 = sld [smem:[#allocation9]] }
  0x81   : > { %536 = vmatprep.subr.mxu0 %v435_v0  ;;  %649 = vmatprep.subr.mxu1 %v437_v1  ;;  %v436_v3 = vld [vmem:[#allocation6 + $0x2e0] sm:$0xff]  ;;  %v429_v4 = vld [vmem:[#allocation6 + $0x2a8] sm:$0xff]  ;;  %v431_v5 = vld [vmem:[#allocation6 + $0x2b8] sm:$0xff]  ;;  %s3045_s12 = sld [smem:[#allocation9 + $0x1]]  ;;  %s5014_s30 = scalar_lea.vmem [#allocation12], %s2999_s15 }
  0x82   : > { %537 = vmatpush1.msra.mxu0 %v434_v2  ;;  %650 = vmatpush1.msra.mxu1 %v436_v3  ;;  %v428_v6 = vld [vmem:[#allocation6 + $0x2a0] sm:$0xff]  ;;  %v430_v7 = vld [vmem:[#allocation6 + $0x2b0] sm:$0xff]  ;;  %v423_v8 = vld [vmem:[#allocation6 + $0x278] sm:$0xff]  ;;  %s3070_s16 = sld [smem:[#allocation9 + $0x2]]  ;;  %s3110_s9 = sshll.u32 %s3997_s25, 11 }
  0x83   : > { %538 = vmatprep.subr.mxu0 %v429_v4  ;;  %651 = vmatprep.subr.mxu1 %v431_v5  ;;  %v425_v9 = vld [vmem:[#allocation6 + $0x288] sm:$0xff]  ;;  %v422_v10 = vld [vmem:[#allocation6 + $0x270] sm:$0xff]  ;;  %v424_v11 = vld [vmem:[#allocation6 + $0x280] sm:$0xff]  ;;  %s3095_s19 = sld [smem:[#allocation9 + $0x3]]  ;;  %s2874_s20 = sshll.u32 %s5014_s30, 4  ;;  %s5037_s20 = int_to_ptr.vmem [resolvable:$true] %s2874_s20 }
  0x84   : > { %539 = vmatpush1.msra.mxu0 %v428_v6  ;;  %652 = vmatpush1.msra.mxu1 %v430_v7  ;;  %v417_v12 = vld [vmem:[#allocation6 + $0x248] sm:$0xff]  ;;  %v419_v13 = vld [vmem:[#allocation6 + $0x258] sm:$0xff]  ;;  %v416_v14 = vld [vmem:[#allocation6 + $0x240] sm:$0xff]  ;;  %s5035_s7 = scalar_lea.hbm %s5088_s6, %s3110_s9  ;;  %s3848_s25 = scalar_lea.vmem %s5037_s20, 2048 }
  0x85   : > { %540 = vmatprep.subr.mxu0 %v423_v8  ;;  %653 = vmatprep.subr.mxu1 %v425_v9  ;;  %v418_v15 = vld [vmem:[#allocation6 + $0x250] sm:$0xff]  ;;  %v411_v16 = vld [vmem:[#allocation6 + $0x218] sm:$0xff]  ;;  %v413_v17 = vld [vmem:[#allocation6 + $0x228] sm:$0xff]  ;;  %p3849_p6 = scmp.ne.s32.totalorder %s5037_s20, %s3848_s25  ;;  %p5118_p7 = scmp.ne.s32.totalorder %s5100_s8, 0 }
  0x86   : > { %541 = vmatpush1.msra.mxu0 %v422_v10  ;;  %654 = vmatpush1.msra.mxu1 %v424_v11  ;;  %v410_v18 = vld [vmem:[#allocation6 + $0x210] sm:$0xff]  ;;  %v412_v19 = vld [vmem:[#allocation6 + $0x220] sm:$0xff]  ;;  %v405_v20 = vld [vmem:[#allocation6 + $0x1e8] sm:$0xff] }
  0x87   : > { %542 = vmatprep.subr.mxu0 %v417_v12  ;;  %655 = vmatprep.subr.mxu1 %v419_v13  ;;  %v407_v21 = vld [vmem:[#allocation6 + $0x1f8] sm:$0xff]  ;;  %v404_v22 = vld [vmem:[#allocation6 + $0x1e0] sm:$0xff]  ;;  %v406_v23 = vld [vmem:[#allocation6 + $0x1f0] sm:$0xff]  ;;  %p3850_p9 = pnand %p3849_p6, %p5118_p7 }
  0x88   : > { %543 = vmatpush1.msra.mxu0 %v416_v14  ;;  %656 = vmatpush1.msra.mxu1 %v418_v15  ;;  %v399_v24 = vld [vmem:[#allocation6 + $0x1b8] sm:$0xff]  ;;  %v401_v25 = vld [vmem:[#allocation6 + $0x1c8] sm:$0xff]  ;;  %v398_v26 = vld [vmem:[#allocation6 + $0x1b0] sm:$0xff] }
  0x89   : > { %544 = vmatprep.subr.mxu0 %v411_v16  ;;  %657 = vmatprep.subr.mxu1 %v413_v17  ;;  %v400_v27 = vld [vmem:[#allocation6 + $0x1c0] sm:$0xff]  ;;  %v393_v28 = vld [vmem:[#allocation6 + $0x188] sm:$0xff]  ;;  %v395_v29 = vld [vmem:[#allocation6 + $0x198] sm:$0xff]  ;;  %p3851_p0 = pneg %p3850_p9 }
  0x8a   : > { %545 = vmatpush1.msra.mxu0 %v410_v18  ;;  %658 = vmatpush1.msra.mxu1 %v412_v19  ;;  %v392_v30 = vld [vmem:[#allocation6 + $0x180] sm:$0xff]  ;;  %v394_v31 = vld [vmem:[#allocation6 + $0x190] sm:$0xff]  ;;  %v387_v32 = vld [vmem:[#allocation6 + $0x158] sm:$0xff] }
  0x8b   : > { %546 = vmatprep.subr.mxu0 %v405_v20  ;;  %659 = vmatprep.subr.mxu1 %v407_v21  ;;  %v389_v33 = vld [vmem:[#allocation6 + $0x168] sm:$0xff]  ;;  %v386_v34 = vld [vmem:[#allocation6 + $0x150] sm:$0xff]  ;;  %v388_v35 = vld [vmem:[#allocation6 + $0x160] sm:$0xff] }
  0x8c   : > { %547 = vmatpush1.msra.mxu0 %v404_v22  ;;  %660 = vmatpush1.msra.mxu1 %v406_v23  ;;  %v381_v36 = vld [vmem:[#allocation6 + $0x128] sm:$0xff]  ;;  %v383_v37 = vld [vmem:[#allocation6 + $0x138] sm:$0xff]  ;;  %v380_v38 = vld [vmem:[#allocation6 + $0x120] sm:$0xff] }
  0x8d   : > { %548 = vmatprep.subr.mxu0 %v399_v24  ;;  %661 = vmatprep.subr.mxu1 %v401_v25  ;;  %v382_v39 = vld [vmem:[#allocation6 + $0x130] sm:$0xff]  ;;  %v375_v40 = vld [vmem:[#allocation6 + $0xf8] sm:$0xff]  ;;  %v377_v41 = vld [vmem:[#allocation6 + $0x108] sm:$0xff] }
  0x8e   : > { %549 = vmatpush1.msra.mxu0 %v398_v26  ;;  %662 = vmatpush1.msra.mxu1 %v400_v27  ;;  %v374_v42 = vld [vmem:[#allocation6 + $0xf0] sm:$0xff]  ;;  %v376_v43 = vld [vmem:[#allocation6 + $0x100] sm:$0xff]  ;;  %v369_v44 = vld [vmem:[#allocation6 + $0xc8] sm:$0xff] }
  0x8f   : > { %550 = vmatprep.subr.mxu0 %v393_v28  ;;  %663 = vmatprep.subr.mxu1 %v395_v29  ;;  %v371_v45 = vld [vmem:[#allocation6 + $0xd8] sm:$0xff]  ;;  %v368_v46 = vld [vmem:[#allocation6 + $0xc0] sm:$0xff]  ;;  %v370_v47 = vld [vmem:[#allocation6 + $0xd0] sm:$0xff] }
  0x90   : > { %551 = vmatpush1.msra.mxu0 %v392_v30  ;;  %664 = vmatpush1.msra.mxu1 %v394_v31  ;;  %v363_v48 = vld [vmem:[#allocation6 + $0x98] sm:$0xff]  ;;  %v365_v49 = vld [vmem:[#allocation6 + $0xa8] sm:$0xff]  ;;  %v362_v50 = vld [vmem:[#allocation6 + $0x90] sm:$0xff] }
  0x91   : > { %552 = vmatprep.subr.mxu0 %v387_v32  ;;  %665 = vmatprep.subr.mxu1 %v389_v33  ;;  %v364_v51 = vld [vmem:[#allocation6 + $0xa0] sm:$0xff]  ;;  %v357_v52 = vld [vmem:[#allocation6 + $0x68] sm:$0xff]  ;;  %v359_v53 = vld [vmem:[#allocation6 + $0x78] sm:$0xff] }
  0x92   : > { %553 = vmatpush1.msra.mxu0 %v386_v34  ;;  %666 = vmatpush1.msra.mxu1 %v388_v35  ;;  %v356_v54 = vld [vmem:[#allocation6 + $0x60] sm:$0xff]  ;;  %v358_v55 = vld [vmem:[#allocation6 + $0x70] sm:$0xff]  ;;  %v351_v56 = vld [vmem:[#allocation6 + $0x38] sm:$0xff] }
  0x93   : > { %554 = vmatprep.subr.mxu0 %v381_v36  ;;  %667 = vmatprep.subr.mxu1 %v383_v37  ;;  %v353_v57 = vld [vmem:[#allocation6 + $0x48] sm:$0xff]  ;;  %v350_v58 = vld [vmem:[#allocation6 + $0x30] sm:$0xff]  ;;  %v352_v59 = vld [vmem:[#allocation6 + $0x40] sm:$0xff] }
  0x94   : > { %555 = vmatpush1.msra.mxu0 %v380_v38  ;;  %668 = vmatpush1.msra.mxu1 %v382_v39  ;;  %v345_v60 = vld [vmem:[#allocation6 + $0x8] sm:$0xff]  ;;  %v347_v61 = vld [vmem:[#allocation6 + $0x18] sm:$0xff]  ;;  %v344_v62 = vld [vmem:[#allocation6] sm:$0xff] }
  0x95   : > { %556 = vmatprep.subr.mxu0 %v375_v40  ;;  %669 = vmatprep.subr.mxu1 %v377_v41  ;;  %v346_v63 = vld [vmem:[#allocation6 + $0x10] sm:$0xff]  ;;  %v531_v0 = vld [vmem:[#allocation6 + $0x5d8] sm:$0xff]  ;;  %v533_v1 = vld [vmem:[#allocation6 + $0x5e8] sm:$0xff] }
  0x96   : > { %557 = vmatpush1.msra.mxu0 %v374_v42  ;;  %670 = vmatpush1.msra.mxu1 %v376_v43  ;;  %v530_v2 = vld [vmem:[#allocation6 + $0x5d0] sm:$0xff]  ;;  %v532_v3 = vld [vmem:[#allocation6 + $0x5e0] sm:$0xff]  ;;  %v525_v4 = vld [vmem:[#allocation6 + $0x5a8] sm:$0xff] }
  0x97   : > { %558 = vmatprep.subr.mxu0 %v369_v44  ;;  %671 = vmatprep.subr.mxu1 %v371_v45  ;;  %v527_v5 = vld [vmem:[#allocation6 + $0x5b8] sm:$0xff]  ;;  %v524_v6 = vld [vmem:[#allocation6 + $0x5a0] sm:$0xff]  ;;  %v526_v7 = vld [vmem:[#allocation6 + $0x5b0] sm:$0xff] }
  0x98   : > { %559 = vmatpush1.msra.mxu0 %v368_v46  ;;  %672 = vmatpush1.msra.mxu1 %v370_v47  ;;  %v519_v8 = vld [vmem:[#allocation6 + $0x578] sm:$0xff]  ;;  %v521_v9 = vld [vmem:[#allocation6 + $0x588] sm:$0xff]  ;;  %v518_v10 = vld [vmem:[#allocation6 + $0x570] sm:$0xff] }
  0x99   : > { %560 = vmatprep.subr.mxu0 %v363_v48  ;;  %673 = vmatprep.subr.mxu1 %v365_v49  ;;  %v520_v11 = vld [vmem:[#allocation6 + $0x580] sm:$0xff]  ;;  %v513_v12 = vld [vmem:[#allocation6 + $0x548] sm:$0xff]  ;;  %v515_v13 = vld [vmem:[#allocation6 + $0x558] sm:$0xff] }
  0x9a   : > { %561 = vmatpush1.msra.mxu0 %v362_v50  ;;  %674 = vmatpush1.msra.mxu1 %v364_v51  ;;  %v512_v14 = vld [vmem:[#allocation6 + $0x540] sm:$0xff]  ;;  %v514_v15 = vld [vmem:[#allocation6 + $0x550] sm:$0xff]  ;;  %v507_v16 = vld [vmem:[#allocation6 + $0x518] sm:$0xff] }
  0x9b   : > { %562 = vmatprep.subr.mxu0 %v357_v52  ;;  %675 = vmatprep.subr.mxu1 %v359_v53  ;;  %v509_v17 = vld [vmem:[#allocation6 + $0x528] sm:$0xff]  ;;  %v506_v18 = vld [vmem:[#allocation6 + $0x510] sm:$0xff]  ;;  %v508_v19 = vld [vmem:[#allocation6 + $0x520] sm:$0xff] }
  0x9c   : > { %563 = vmatpush1.msra.mxu0 %v356_v54  ;;  %676 = vmatpush1.msra.mxu1 %v358_v55  ;;  %v501_v20 = vld [vmem:[#allocation6 + $0x4e8] sm:$0xff]  ;;  %v503_v21 = vld [vmem:[#allocation6 + $0x4f8] sm:$0xff]  ;;  %v500_v22 = vld [vmem:[#allocation6 + $0x4e0] sm:$0xff] }
  0x9d   : > { %564 = vmatprep.subr.mxu0 %v351_v56  ;;  %677 = vmatprep.subr.mxu1 %v353_v57  ;;  %v502_v23 = vld [vmem:[#allocation6 + $0x4f0] sm:$0xff]  ;;  %v495_v24 = vld [vmem:[#allocation6 + $0x4b8] sm:$0xff]  ;;  %v497_v25 = vld [vmem:[#allocation6 + $0x4c8] sm:$0xff] }
  0x9e   : > { %565 = vmatpush1.msra.mxu0 %v350_v58  ;;  %678 = vmatpush1.msra.mxu1 %v352_v59  ;;  %v494_v26 = vld [vmem:[#allocation6 + $0x4b0] sm:$0xff]  ;;  %v496_v27 = vld [vmem:[#allocation6 + $0x4c0] sm:$0xff]  ;;  %v489_v28 = vld [vmem:[#allocation6 + $0x488] sm:$0xff] }
  0x9f   : > { %566 = vmatprep.subr.mxu0 %v345_v60  ;;  %679 = vmatprep.subr.mxu1 %v347_v61  ;;  %v491_v29 = vld [vmem:[#allocation6 + $0x498] sm:$0xff]  ;;  %v488_v30 = vld [vmem:[#allocation6 + $0x480] sm:$0xff]  ;;  %v490_v31 = vld [vmem:[#allocation6 + $0x490] sm:$0xff] }
  0xa0   : > { %567 = vmatpush1.msra.mxu0 %v344_v62  ;;  %680 = vmatpush1.msra.mxu1 %v346_v63  ;;  %v483_v32 = vld [vmem:[#allocation6 + $0x458] sm:$0xff]  ;;  %v485_v33 = vld [vmem:[#allocation6 + $0x468] sm:$0xff]  ;;  %v482_v34 = vld [vmem:[#allocation6 + $0x450] sm:$0xff] }
  0xa1   : > { %568 = vmatprep.subr.mxu0 %v531_v0  ;;  %681 = vmatprep.subr.mxu1 %v533_v1  ;;  %v484_v35 = vld [vmem:[#allocation6 + $0x460] sm:$0xff]  ;;  %v477_v36 = vld [vmem:[#allocation6 + $0x428] sm:$0xff]  ;;  %v479_v37 = vld [vmem:[#allocation6 + $0x438] sm:$0xff] }
  0xa2   : > { %569 = vmatpush2.msra.mxu0 %v530_v2  ;;  %682 = vmatpush2.msra.mxu1 %v532_v3  ;;  %v476_v38 = vld [vmem:[#allocation6 + $0x420] sm:$0xff]  ;;  %v478_v39 = vld [vmem:[#allocation6 + $0x430] sm:$0xff]  ;;  %v471_v40 = vld [vmem:[#allocation6 + $0x3f8] sm:$0xff] }
  0xa3   : > { %570 = vmatprep.subr.mxu0 %v525_v4  ;;  %683 = vmatprep.subr.mxu1 %v527_v5  ;;  %v473_v41 = vld [vmem:[#allocation6 + $0x408] sm:$0xff]  ;;  %v470_v42 = vld [vmem:[#allocation6 + $0x3f0] sm:$0xff]  ;;  %v472_v43 = vld [vmem:[#allocation6 + $0x400] sm:$0xff] }
  0xa4   : > { %571 = vmatpush2.msra.mxu0 %v524_v6  ;;  %684 = vmatpush2.msra.mxu1 %v526_v7  ;;  %v465_v44 = vld [vmem:[#allocation6 + $0x3c8] sm:$0xff]  ;;  %v467_v45 = vld [vmem:[#allocation6 + $0x3d8] sm:$0xff]  ;;  %v464_v46 = vld [vmem:[#allocation6 + $0x3c0] sm:$0xff] }
  0xa5   : > { %572 = vmatprep.subr.mxu0 %v519_v8  ;;  %685 = vmatprep.subr.mxu1 %v521_v9  ;;  %v466_v47 = vld [vmem:[#allocation6 + $0x3d0] sm:$0xff]  ;;  %v459_v48 = vld [vmem:[#allocation6 + $0x398] sm:$0xff]  ;;  %v461_v49 = vld [vmem:[#allocation6 + $0x3a8] sm:$0xff] }
  0xa6   : > { %573 = vmatpush2.msra.mxu0 %v518_v10  ;;  %686 = vmatpush2.msra.mxu1 %v520_v11  ;;  %v458_v50 = vld [vmem:[#allocation6 + $0x390] sm:$0xff]  ;;  %v460_v51 = vld [vmem:[#allocation6 + $0x3a0] sm:$0xff]  ;;  %v453_v52 = vld [vmem:[#allocation6 + $0x368] sm:$0xff] }
  0xa7   : > { %574 = vmatprep.subr.mxu0 %v513_v12  ;;  %687 = vmatprep.subr.mxu1 %v515_v13  ;;  %v455_v53 = vld [vmem:[#allocation6 + $0x378] sm:$0xff]  ;;  %v452_v54 = vld [vmem:[#allocation6 + $0x360] sm:$0xff]  ;;  %v454_v55 = vld [vmem:[#allocation6 + $0x370] sm:$0xff] }
  0xa8   : > { %575 = vmatpush2.msra.mxu0 %v512_v14  ;;  %688 = vmatpush2.msra.mxu1 %v514_v15  ;;  %v447_v56 = vld [vmem:[#allocation6 + $0x338] sm:$0xff]  ;;  %v449_v57 = vld [vmem:[#allocation6 + $0x348] sm:$0xff]  ;;  %v446_v58 = vld [vmem:[#allocation6 + $0x330] sm:$0xff] }
  0xa9   : > { %576 = vmatprep.subr.mxu0 %v507_v16  ;;  %689 = vmatprep.subr.mxu1 %v509_v17  ;;  %v448_v59 = vld [vmem:[#allocation6 + $0x340] sm:$0xff]  ;;  %v441_v60 = vld [vmem:[#allocation6 + $0x308] sm:$0xff]  ;;  %v443_v61 = vld [vmem:[#allocation6 + $0x318] sm:$0xff] }
  0xaa   : > { %577 = vmatpush2.msra.mxu0 %v506_v18  ;;  %690 = vmatpush2.msra.mxu1 %v508_v19  ;;  %v440_v62 = vld [vmem:[#allocation6 + $0x300] sm:$0xff]  ;;  %v442_v63 = vld [vmem:[#allocation6 + $0x310] sm:$0xff]  ;;  %v4150_v0 = vld [vmem:[%s4131_s17 + $0x8] sm:$0xff] }
  0xab   : > { %578 = vmatprep.subr.mxu0 %v501_v20  ;;  %691 = vmatprep.subr.mxu1 %v503_v21  ;;  %v4153_v1 = vld [vmem:[%s4131_s17] sm:$0xff]  ;;  %v439_v2 = vld [vmem:[#allocation6 + $0x2f8] sm:$0xff]  ;;  %v438_v4 = vld [vmem:[#allocation6 + $0x2f0] sm:$0xff] }
  0xac   : > { %579 = vmatpush2.msra.mxu0 %v500_v22  ;;  %692 = vmatpush2.msra.mxu1 %v502_v23  ;;  %v4156_v3 = vld [vmem:[%s4131_s17 + $0x18] sm:$0xff]  ;;  %v433_v5 = vld [vmem:[#allocation6 + $0x2c8] sm:$0xff]  ;;  %v432_v6 = vld [vmem:[#allocation6 + $0x2c0] sm:$0xff] }
  0xad   : > { %580 = vmatprep.subr.mxu0 %v495_v24  ;;  %693 = vmatprep.subr.mxu1 %v497_v25  ;;  %v4164_v7 = vld [vmem:[%s4131_s17 + $0x10] sm:$0xff]  ;;  %v427_v8 = vld [vmem:[#allocation6 + $0x298] sm:$0xff]  ;;  %v4167_v9 = vld [vmem:[%s4131_s17 + $0x28] sm:$0xff] }
  0xae   : > { %581 = vmatpush2.msra.mxu0 %v494_v26  ;;  %694 = vmatpush2.msra.mxu1 %v496_v27  ;;  %v426_v10 = vld [vmem:[#allocation6 + $0x290] sm:$0xff]  ;;  %v421_v11 = vld [vmem:[#allocation6 + $0x268] sm:$0xff]  ;;  %v420_v12 = vld [vmem:[#allocation6 + $0x260] sm:$0xff] }
  0xaf   : > { %582 = vmatprep.subr.mxu0 %v489_v28  ;;  %695 = vmatprep.subr.mxu1 %v491_v29  ;;  %v4173_v13 = vld [vmem:[%s4131_s17 + $0x20] sm:$0xff]  ;;  %v415_v14 = vld [vmem:[#allocation6 + $0x238] sm:$0xff]  ;;  %v414_v16 = vld [vmem:[#allocation6 + $0x230] sm:$0xff] }
  0xb0   : > { %583 = vmatpush2.msra.mxu0 %v488_v30  ;;  %696 = vmatpush2.msra.mxu1 %v490_v31  ;;  %v4176_v15 = vld [vmem:[%s4131_s17 + $0x38] sm:$0xff]  ;;  %v409_v17 = vld [vmem:[#allocation6 + $0x208] sm:$0xff]  ;;  %v408_v18 = vld [vmem:[#allocation6 + $0x200] sm:$0xff] }
  0xb1   : > { %584 = vmatprep.subr.mxu0 %v483_v32  ;;  %697 = vmatprep.subr.mxu1 %v485_v33  ;;  %v4182_v19 = vld [vmem:[%s4131_s17 + $0x30] sm:$0xff]  ;;  %v403_v20 = vld [vmem:[#allocation6 + $0x1d8] sm:$0xff]  ;;  %v4185_v21 = vld [vmem:[%s4131_s17 + $0x48] sm:$0xff] }
  0xb2   : > { %585 = vmatpush2.msra.mxu0 %v482_v34  ;;  %698 = vmatpush2.msra.mxu1 %v484_v35  ;;  %v402_v22 = vld [vmem:[#allocation6 + $0x1d0] sm:$0xff]  ;;  %v397_v23 = vld [vmem:[#allocation6 + $0x1a8] sm:$0xff]  ;;  %v396_v24 = vld [vmem:[#allocation6 + $0x1a0] sm:$0xff] }
  0xb3   : > { %586 = vmatprep.subr.mxu0 %v477_v36  ;;  %699 = vmatprep.subr.mxu1 %v479_v37  ;;  %v4192_v25 = vld [vmem:[%s4131_s17 + $0x40] sm:$0xff]  ;;  %v391_v26 = vld [vmem:[#allocation6 + $0x178] sm:$0xff]  ;;  %v390_v28 = vld [vmem:[#allocation6 + $0x170] sm:$0xff] }
  0xb4   : > { %587 = vmatpush2.msra.mxu0 %v476_v38  ;;  %700 = vmatpush2.msra.mxu1 %v478_v39  ;;  %v4195_v27 = vld [vmem:[%s4131_s17 + $0x58] sm:$0xff]  ;;  %v385_v29 = vld [vmem:[#allocation6 + $0x148] sm:$0xff]  ;;  %v384_v30 = vld [vmem:[#allocation6 + $0x140] sm:$0xff] }
  0xb5   : > { %588 = vmatprep.subr.mxu0 %v471_v40  ;;  %701 = vmatprep.subr.mxu1 %v473_v41  ;;  %v4202_v31 = vld [vmem:[%s4131_s17 + $0x50] sm:$0xff]  ;;  %v379_v32 = vld [vmem:[#allocation6 + $0x118] sm:$0xff]  ;;  %v4205_v33 = vld [vmem:[%s4131_s17 + $0x68] sm:$0xff] }
  0xb6   : > { %589 = vmatpush2.msra.mxu0 %v470_v42  ;;  %702 = vmatpush2.msra.mxu1 %v472_v43  ;;  %v378_v34 = vld [vmem:[#allocation6 + $0x110] sm:$0xff]  ;;  %v373_v35 = vld [vmem:[#allocation6 + $0xe8] sm:$0xff]  ;;  %v372_v36 = vld [vmem:[#allocation6 + $0xe0] sm:$0xff] }
  0xb7   : > { %590 = vmatprep.subr.mxu0 %v465_v44  ;;  %703 = vmatprep.subr.mxu1 %v467_v45  ;;  %v4212_v37 = vld [vmem:[%s4131_s17 + $0x60] sm:$0xff]  ;;  %v367_v38 = vld [vmem:[#allocation6 + $0xb8] sm:$0xff]  ;;  %v366_v40 = vld [vmem:[#allocation6 + $0xb0] sm:$0xff] }
  0xb8   : > { %591 = vmatpush2.msra.mxu0 %v464_v46  ;;  %704 = vmatpush2.msra.mxu1 %v466_v47  ;;  %v4215_v39 = vld [vmem:[%s4131_s17 + $0x78] sm:$0xff]  ;;  %v361_v41 = vld [vmem:[#allocation6 + $0x88] sm:$0xff]  ;;  %v360_v42 = vld [vmem:[#allocation6 + $0x80] sm:$0xff] }
  0xb9   : > { %592 = vmatprep.subr.mxu0 %v459_v48  ;;  %705 = vmatprep.subr.mxu1 %v461_v49  ;;  %v4222_v43 = vld [vmem:[%s4131_s17 + $0x70] sm:$0xff]  ;;  %v355_v44 = vld [vmem:[#allocation6 + $0x58] sm:$0xff]  ;;  %v349_v46 = vld [vmem:[#allocation6 + $0x28] sm:$0xff]  ;;  %s2861_s17 = scalar_lea.sflag [#allocation4], %s4125_s14 }
  0xba   : > { %593 = vmatpush2.msra.mxu0 %v458_v50  ;;  %706 = vmatpush2.msra.mxu1 %v460_v51  ;;  %v354_v45 = vld [vmem:[#allocation6 + $0x50] sm:$0xff]  ;;  %v348_v47 = vld [vmem:[#allocation6 + $0x20] sm:$0xff]  ;;  %v535_v48 = vld [vmem:[#allocation6 + $0x5f8] sm:$0xff] }
  0xbb   : > { %594 = vmatprep.subr.mxu0 %v453_v52  ;;  %707 = vmatprep.subr.mxu1 %v455_v53  ;;  %v534_v49 = vld [vmem:[#allocation6 + $0x5f0] sm:$0xff]  ;;  %v529_v50 = vld [vmem:[#allocation6 + $0x5c8] sm:$0xff]  ;;  %v528_v51 = vld [vmem:[#allocation6 + $0x5c0] sm:$0xff] }
  0xbc   : > { %595 = vmatpush2.msra.mxu0 %v452_v54  ;;  %708 = vmatpush2.msra.mxu1 %v454_v55  ;;  %v523_v52 = vld [vmem:[#allocation6 + $0x598] sm:$0xff]  ;;  %v522_v53 = vld [vmem:[#allocation6 + $0x590] sm:$0xff]  ;;  %v517_v54 = vld [vmem:[#allocation6 + $0x568] sm:$0xff] }
  0xbd   : > { %596 = vmatprep.subr.mxu0 %v447_v56  ;;  %709 = vmatprep.subr.mxu1 %v449_v57  ;;  %v516_v55 = vld [vmem:[#allocation6 + $0x560] sm:$0xff]  ;;  %v511_v56 = vld [vmem:[#allocation6 + $0x538] sm:$0xff]  ;;  %v510_v57 = vld [vmem:[#allocation6 + $0x530] sm:$0xff] }
  0xbe   : > { %597 = vmatpush2.msra.mxu0 %v446_v58  ;;  %710 = vmatpush2.msra.mxu1 %v448_v59  ;;  %v505_v58 = vld [vmem:[#allocation6 + $0x508] sm:$0xff]  ;;  %v504_v59 = vld [vmem:[#allocation6 + $0x500] sm:$0xff] }
  0xbf   : > { %598 = vmatprep.subr.mxu0 %v441_v60  ;;  %711 = vmatprep.subr.mxu1 %v443_v61  ;;  %v499_v60 = vld [vmem:[#allocation6 + $0x4d8] sm:$0xff]  ;;  %v498_v61 = vld [vmem:[#allocation6 + $0x4d0] sm:$0xff] }
  0xc0   : > { %599 = vmatpush2.msra.mxu0 %v440_v62  ;;  %712 = vmatpush2.msra.mxu1 %v442_v63  ;;  %v493_v62 = vld [vmem:[#allocation6 + $0x4a8] sm:$0xff]  ;;  %v492_v63 = vld [vmem:[#allocation6 + $0x4a0] sm:$0xff] }
  0xc1   : > { %713 = vmatprep.mubr.f32.mxu1 %v4150_v0  ;;  %600 = vmatprep.mubr.f32.mxu0 %v4150_v0 }
  0xc2   : > { %714 = vmatmul.mubr.f32.vlgmr.msra.gmra.mxu1 %v4153_v1  ;;  %762 = vmatprep.subr.mxu0 %v439_v2  ;;  %v486_v2 = vld [vmem:[#allocation6 + $0x470] sm:$0xff] }
  0xc3   : > { %601 = vmatmul.mubr.f32.vlgmr.msra.gmra.mxu0 %v4153_v1  ;;  %719 = vmatprep.mubr.f32.mxu1 %v4156_v3 }
  0xc4   : > { %763 = vmatpush1.msra.mxu0 %v438_v4  ;;  %606 = vmatprep.mubr.f32.mxu0 %v4156_v3  ;;  %v481_v4 = vld [vmem:[#allocation6 + $0x448] sm:$0xff] }
  0xc5   : > { %764 = vmatprep.subr.mxu0 %v433_v5  ;;  %v480_v5 = vld [vmem:[#allocation6 + $0x440] sm:$0xff] }
  0xc6   : > { %765 = vmatpush1.msra.mxu0 %v432_v6  ;;  %720 = vmatmul.mubr.f32.gmra.mxu1 %v4164_v7  ;;  %v475_v6 = vld [vmem:[#allocation6 + $0x418] sm:$0xff] }
  0xc7   : > { %766 = vmatprep.subr.mxu0 %v427_v8  ;;  %725 = vmatprep.mubr.f32.mxu1 %v4167_v9  ;;  %v474_v8 = vld [vmem:[#allocation6 + $0x410] sm:$0xff] }
  0xc8   : > { %767 = vmatpush1.msra.mxu0 %v426_v10  ;;  %v469_v10 = vld [vmem:[#allocation6 + $0x3e8] sm:$0xff] }
  0xc9   : > { %768 = vmatprep.subr.mxu0 %v421_v11  ;;  %607 = vmatmul.mubr.f32.gmra.mxu0 %v4164_v7  ;;  %v468_v11 = vld [vmem:[#allocation6 + $0x3e0] sm:$0xff] }
  0xca   : > { %769 = vmatpush1.msra.mxu0 %v420_v12  ;;  %726 = vmatmul.mubr.f32.gmra.mxu1 %v4173_v13  ;;  %v463_v12 = vld [vmem:[#allocation6 + $0x3b8] sm:$0xff] }
  0xcb   : > { %770 = vmatprep.subr.mxu0 %v415_v14  ;;  %731 = vmatprep.mubr.f32.mxu1 %v4176_v15  ;;  %v462_v14 = vld [vmem:[#allocation6 + $0x3b0] sm:$0xff] }
  0xcc   : > { %771 = vmatpush1.msra.mxu0 %v414_v16  ;;  %612 = vmatprep.mubr.f32.mxu0 %v4167_v9  ;;  %v457_v16 = vld [vmem:[#allocation6 + $0x388] sm:$0xff] }
  0xcd   : > { %772 = vmatprep.subr.mxu0 %v409_v17  ;;  %613 = vmatmul.mubr.f32.gmra.mxu0 %v4173_v13  ;;  %v456_v17 = vld [vmem:[#allocation6 + $0x380] sm:$0xff] }
  0xce   : > { %773 = vmatpush1.msra.mxu0 %v408_v18  ;;  %732 = vmatmul.mubr.f32.gmra.mxu1 %v4182_v19  ;;  %v451_v18 = vld [vmem:[#allocation6 + $0x358] sm:$0xff] }
  0xcf   : > { %774 = vmatprep.subr.mxu0 %v403_v20  ;;  %737 = vmatprep.mubr.f32.mxu1 %v4185_v21  ;;  %v450_v20 = vld [vmem:[#allocation6 + $0x350] sm:$0xff] }
  0xd0   : > { %775 = vmatpush1.msra.mxu0 %v402_v22  ;;  %618 = vmatprep.mubr.f32.mxu0 %v4176_v15  ;;  %v445_v22 = vld [vmem:[#allocation6 + $0x328] sm:$0xff] }
  0xd1   : > { %776 = vmatprep.subr.mxu0 %v397_v23  ;;  %619 = vmatmul.mubr.f32.gmra.mxu0 %v4182_v19  ;;  %v444_v23 = vld [vmem:[#allocation6 + $0x320] sm:$0xff] }
  0xd2   : > { %777 = vmatpush1.msra.mxu0 %v396_v24  ;;  %738 = vmatmul.mubr.f32.gmra.mxu1 %v4192_v25 }
  0xd3   : > { %778 = vmatprep.subr.mxu0 %v391_v26  ;;  %743 = vmatprep.mubr.f32.mxu1 %v4195_v27 }
  0xd4   : > { %779 = vmatpush1.msra.mxu0 %v390_v28  ;;  %624 = vmatprep.mubr.f32.mxu0 %v4185_v21 }
  0xd5   : > { %780 = vmatprep.subr.mxu0 %v385_v29  ;;  %625 = vmatmul.mubr.f32.gmra.mxu0 %v4192_v25 }
  0xd6   : > { %781 = vmatpush1.msra.mxu0 %v384_v30  ;;  %744 = vmatmul.mubr.f32.gmra.mxu1 %v4202_v31 }
  0xd7   : > { %782 = vmatprep.subr.mxu0 %v379_v32  ;;  %749 = vmatprep.mubr.f32.mxu1 %v4205_v33 }
  0xd8   : > { %783 = vmatpush1.msra.mxu0 %v378_v34  ;;  %630 = vmatprep.mubr.f32.mxu0 %v4195_v27 }
  0xd9   : > { %784 = vmatprep.subr.mxu0 %v373_v35  ;;  %631 = vmatmul.mubr.f32.gmra.mxu0 %v4202_v31 }
  0xda   : > { %785 = vmatpush1.msra.mxu0 %v372_v36  ;;  %750 = vmatmul.mubr.f32.gmra.mxu1 %v4212_v37 }
  0xdb   : > { %786 = vmatprep.subr.mxu0 %v367_v38  ;;  %755 = vmatprep.mubr.f32.mxu1 %v4215_v39 }
  0xdc   : > { %787 = vmatpush1.msra.mxu0 %v366_v40  ;;  %636 = vmatprep.mubr.f32.mxu0 %v4205_v33 }
  0xdd   : > { %788 = vmatprep.subr.mxu0 %v361_v41  ;;  %637 = vmatmul.mubr.f32.gmra.mxu0 %v4212_v37 }
  0xde   : > { %789 = vmatpush1.msra.mxu0 %v360_v42  ;;  %756 = vmatmul.mubr.f32.gmra.mxu1 %v4222_v43 }
  0xdf   : > { %790 = vmatprep.subr.mxu0 %v355_v44  ;;  %642 = vmatprep.mubr.f32.mxu0 %v4215_v39 }
  0xe0   : > { %791 = vmatpush1.msra.mxu0 %v354_v45 }
  0xe1   : > { %792 = vmatprep.subr.mxu0 %v349_v46  ;;  %643 = vmatmul.mubr.f32.gmra.mxu0 %v4222_v43 }
  0xe2   : > { %793 = vmatpush1.msra.mxu0 %v348_v47  ;;  %826 = vmatprep.mubr.f32.mxu0 %v4150_v0  ;;  %v487_v0 = vld [vmem:[#allocation6 + $0x478] sm:$0xff] }
  0xe3   : > { %794 = vmatprep.subr.mxu0 %v535_v48 }
  0xe4   : > { %795 = vmatpush2.msra.mxu0 %v534_v49 }
  0xe5   : > { %796 = vmatprep.subr.mxu0 %v529_v50 }
  0xe6   : > { %797 = vmatpush2.msra.mxu0 %v528_v51 }
  0xe7   : > { %798 = vmatprep.subr.mxu0 %v523_v52 }
  0xe8   : > { %799 = vmatpush2.msra.mxu0 %v522_v53 }
  0xe9   : > { %800 = vmatprep.subr.mxu0 %v517_v54 }
  0xea   : > { %801 = vmatpush2.msra.mxu0 %v516_v55 }
  0xeb   : > { %802 = vmatprep.subr.mxu0 %v511_v56 }
  0xec   : > { %803 = vmatpush2.msra.mxu0 %v510_v57 }
  0xed   : > { %804 = vmatprep.subr.mxu0 %v505_v58 }
  0xee   : > { %805 = vmatpush2.msra.mxu0 %v504_v59 }
  0xef   : > { %806 = vmatprep.subr.mxu0 %v499_v60 }
  0xf0   : > { %807 = vmatpush2.msra.mxu0 %v498_v61 }
  0xf1   : > { %808 = vmatprep.subr.mxu0 %v493_v62 }
  0xf2   : > { %809 = vmatpush2.msra.mxu0 %v492_v63 }
  0xf3   : > { %810 = vmatprep.subr.mxu0 %v487_v0 }
  0xf4   : > { %811 = vmatpush2.msra.mxu0 %v486_v2 }
  0xf5   : > { %812 = vmatprep.subr.mxu0 %v481_v4 }
  0xf6   : > { %813 = vmatpush2.msra.mxu0 %v480_v5 }
  0xf7   : > { %814 = vmatprep.subr.mxu0 %v475_v6 }
  0xf8   : > { %815 = vmatpush2.msra.mxu0 %v474_v8 }
  0xf9   : > { %816 = vmatprep.subr.mxu0 %v469_v10 }
  0xfa   : > { %817 = vmatpush2.msra.mxu0 %v468_v11 }
  0xfb   : > { %818 = vmatprep.subr.mxu0 %v463_v12 }
  0xfc   : > { %819 = vmatpush2.msra.mxu0 %v462_v14 }
  0xfd   : > { %820 = vmatprep.subr.mxu0 %v457_v16 }
  0xfe   : > { %821 = vmatpush2.msra.mxu0 %v456_v17 }
  0xff   : > { %822 = vmatprep.subr.mxu0 %v451_v18 }
 0x100   : > { %823 = vmatpush2.msra.mxu0 %v450_v20 }
 0x101   : > { %824 = vmatprep.subr.mxu0 %v445_v22 }
 0x102   : > { %825 = vmatpush2.msra.mxu0 %v444_v23 }
 0x103   : > { %827 = vmatmul.mubr.f32.vlgmr.msra.gmra.mxu0 %v4153_v1 }
 0x104   : > { %832 = vmatprep.mubr.f32.mxu0 %v4156_v3 }
 0x107   : > { %833 = vmatmul.mubr.f32.gmra.mxu0 %v4164_v7 }
 0x108   : > { %838 = vmatprep.mubr.f32.mxu0 %v4167_v9 }
 0x10b   : > { %839 = vmatmul.mubr.f32.gmra.mxu0 %v4173_v13 }
 0x10c   : > { %844 = vmatprep.mubr.f32.mxu0 %v4176_v15 }
 0x10f   : > { %845 = vmatmul.mubr.f32.gmra.mxu0 %v4182_v19 }
 0x110   : > { %850 = vmatprep.mubr.f32.mxu0 %v4185_v21 }
 0x113   : > { %851 = vmatmul.mubr.f32.gmra.mxu0 %v4192_v25 }
 0x114   : > { %856 = vmatprep.mubr.f32.mxu0 %v4195_v27 }
 0x117   : > { %857 = vmatmul.mubr.f32.gmra.mxu0 %v4202_v31 }
 0x118   : > { %862 = vmatprep.mubr.f32.mxu0 %v4205_v33 }
 0x11b   : > { %863 = vmatmul.mubr.f32.gmra.mxu0 %v4212_v37 }
 0x11c   : > { %868 = vmatprep.mubr.f32.mxu0 %v4215_v39 }
 0x11f   : > { %869 = vmatmul.mubr.f32.gmra.mxu0 %v4222_v43 }
 0x182   : > { %v4245_v1 = vpop.f32.mrf.mxu1 }
 0x183   : > { %v602_v3 = vpop.f32.mrf.mxu0 }
 0x184   : > { %v4247_v7 = vpop.f32.mrf.mxu1  ;;  %v4249_v9 = vmul.f32 0.35355338, %v602_v3 }
 0x185   : > { %v4255_v15 = vpop.f32.mrf.mxu0 }
 0x186   : > { %v4251_v13 = vpop.f32.mrf.mxu1  ;;  %3255 = vmatprep.mubr.msk.f32.mxu1 %vm891_vm0, %v4249_v9 }
 0x188   : > { %v4257_v19 = vpop.f32.mrf.mxu1 }
 0x189   : > { %v608_v24 = vpop.f32.mrf.mxu0 }
 0x18a   : > { %v727_v21 = vpop.f32.mrf.mxu1  ;;  %v4305_v46 = vmul.f32 0.35355338, %v608_v24 }
 0x18b   : > { %1308 = vrot.lane.b32.xlu0 %v727_v21, %s3937_s27  ;;  %v4263_v27 = vpop.f32.mrf.mxu0 }
 0x18c   : > { %v4260_v25 = vpop.f32.mrf.mxu1 }
 0x18d   : > { %v614_v30 = vpop.f32.mrf.mxu0 }
 0x18e   : > { %v733_v26 = vpop.f32.mrf.mxu1  ;;  %v4307_v48 = vmul.f32 0.35355338, %v614_v30 }
 0x18f   : > { %1310 = vrot.lane.b32.xlu0 %v733_v26, %s3937_s27  ;;  %v4271_v33 = vpop.f32.mrf.mxu0 }
 0x190   : > { %v4265_v28 = vpop.f32.mrf.mxu1 }
 0x191   : > { %v620_v36 = vpop.f32.mrf.mxu0 }
 0x192   : > { %v739_v29 = vpop.f32.mrf.mxu1  ;;  %v4311_v49 = vmul.f32 0.35355338, %v620_v36 }
 0x193   : > { %1312 = vrot.lane.b32.xlu1 %v739_v29, %s3937_s27  ;;  %v4280_v39 = vpop.f32.mrf.mxu0 }
 0x194   : > { %v4268_v31 = vpop.f32.mrf.mxu1 }
 0x195   : > { %v626_v40 = vpop.f32.mrf.mxu0 }
 0x196   : > { %v745_v32 = vpop.f32.mrf.mxu1  ;;  %v4317_v51 = vmul.f32 0.35355338, %v626_v40 }
 0x197   : > { %1314 = vrot.lane.b32.xlu0 %v745_v32, %s3937_s27  ;;  %v4286_v41 = vpop.f32.mrf.mxu0 }
 0x198   : > { %v4273_v34 = vpop.f32.mrf.mxu1 }
 0x199   : > { %v632_v42 = vpop.f32.mrf.mxu0 }
 0x19a   : > { %v751_v35 = vpop.f32.mrf.mxu1  ;;  %v4321_v52 = vmul.f32 0.35355338, %v632_v42 }
 0x19b   : > { %1316 = vrot.lane.b32.xlu1 %v751_v35, %s3937_s27  ;;  %v4292_v43 = vpop.f32.mrf.mxu0 }
 0x19c   : > { %v4276_v37 = vpop.f32.mrf.mxu1 }
 0x19d   : > { %v638_v44 = vpop.f32.mrf.mxu0 }
 0x19e   : > { %v757_v38 = vpop.f32.mrf.mxu1  ;;  %v4327_v54 = vmul.f32 0.35355338, %v638_v44 }
 0x19f   : > { %1318 = vrot.lane.b32.xlu0 %v757_v38, %s3937_s27  ;;  %3239 = vmatprep.subr.msk.mxu1 %vm891_vm0, %v757_v38  ;;  %v4299_v45 = vpop.f32.mrf.mxu0 }
 0x1a0   : > { %3240 = vmatpush3.xpose.msk.msra.mxu1 %vm891_vm0, %v757_v38  ;;  %v4382_v10 = vpop.f32.mrf.mxu1 }
 0x1a1   : > { %3241 = vmatprep.subr.msk.mxu1 %vm891_vm0, %v751_v35  ;;  %v644_v47 = vpop.f32.mrf.mxu0 }
 0x1a2   : > { %v4333_v56 = vmul.f32 0.35355338, %v644_v47 }
 0x1a3   : > { %v4315_v50 = vpop.f32.mrf.mxu0 }
 0x1a4   : > { %3242 = vmatpush3.xpose.msk.msra.mxu1 %vm891_vm0, %v751_v35 }
 0x1a5   : > { %3243 = vmatprep.subr.msk.mxu1 %vm891_vm0, %v745_v32 }
 0x1a8   : > { %3244 = vmatpush3.xpose.msk.msra.mxu1 %vm891_vm0, %v745_v32 }
 0x1a9   : > { %3245 = vmatprep.subr.msk.mxu1 %vm891_vm0, %v739_v29 }
 0x1ac   : > { %3246 = vmatpush3.xpose.msk.msra.mxu1 %vm891_vm0, %v739_v29 }
 0x1ad   : > { %3247 = vmatprep.subr.msk.mxu1 %vm891_vm0, %v733_v26 }
 0x1b0   : > { %3248 = vmatpush3.xpose.msk.msra.mxu1 %vm891_vm0, %v733_v26 }
 0x1b1   : > { %3249 = vmatprep.subr.msk.mxu1 %vm891_vm0, %v727_v21 }
 0x1b4   : > { %3250 = vmatpush3.xpose.msk.msra.mxu1 %vm891_vm0, %v727_v21 }
 0x1b5   : > { %3251 = vmatprep.subr.msk.mxu1 %vm891_vm0, %v4251_v13 }
 0x1b8   : > { %3252 = vmatpush3.xpose.msk.msra.mxu1 %vm891_vm0, %v4251_v13 }
 0x1b9   : > { %3253 = vmatprep.subr.msk.mxu1 %vm891_vm0, %v4245_v1 }
 0x1bc   : > { %3254 = vmatpush3.xpose.msk.msra.mxu1 %vm891_vm0, %v4245_v1 }
 0x1bf   : > { %3256 = vmatmul.mubr.msk.f32.vlgmr.msra.gmra.mxu1 %vm891_vm0, %v4305_v46 }
 0x1c0   : > { %3258 = vmatprep.mubr.msk.f32.mxu1 %vm891_vm0, %v4307_v48 }
 0x1c3   : > { %v4323_v53 = vpop.f32.mrf.mxu0  ;;  %3259 = vmatmul.mubr.msk.f32.gmra.mxu1 %vm891_vm0, %v4311_v49 }
 0x1c4   : > { %3261 = vmatprep.mubr.msk.f32.mxu1 %vm891_vm0, %v4317_v51 }
 0x1c5   : > { %v4331_v55 = vpop.f32.mrf.mxu0 }
 0x1c7   : > { %v4335_v57 = vpop.f32.mrf.mxu0  ;;  %3262 = vmatmul.mubr.msk.f32.gmra.mxu1 %vm891_vm0, %v4321_v52 }
 0x1c8   : > { %3264 = vmatprep.mubr.msk.f32.mxu1 %vm891_vm0, %v4327_v54 }
 0x1c9   : > { %v4341_v58 = vpop.f32.mrf.mxu0 }
 0x1cb   : > { %v4343_v59 = vpop.f32.mrf.mxu0  ;;  %3265 = vmatmul.mubr.msk.f32.gmra.mxu1 %vm891_vm0, %v4333_v56 }
 0x1cd   : > { %v4347_v60 = vpop.f32.mrf.mxu0 }
 0x1cf   : > { %v4349_v61 = vpop.f32.mrf.mxu0 }
 0x1d1   : > { %v4351_v62 = vpop.f32.mrf.mxu0 }
 0x1d3   : > { %v4353_v63 = vpop.f32.mrf.mxu0 }
 0x1d5   : > { %v4355_v0 = vpop.f32.mrf.mxu0 }
 0x1d7   : > { %v4357_v2 = vpop.f32.mrf.mxu0 }
 0x1d9   : > { %v4359_v4 = vpop.f32.mrf.mxu0 }
 0x1db   : > { %v4361_v5 = vpop.f32.mrf.mxu0 }
 0x1dd   : > { %v4363_v6 = vpop.f32.mrf.mxu0 }
 0x1df   : > { %v4365_v8 = vpop.f32.mrf.mxu0 }
 0x1e0   : > { %3267 = vmatprep.subr.mxu1 %v4365_v8 }
 0x1e1   : > { %3268 = vmatpush3.msra.mxu1 %v4365_v8 }
 0x1e2   : > { %3269 = vmatprep.subr.mxu1 %v4361_v5 }
 0x1e3   : > { %3270 = vmatpush3.msra.mxu1 %v4361_v5 }
 0x1e4   : > { %3271 = vmatprep.subr.mxu1 %v4357_v2 }
 0x1e5   : > { %3272 = vmatpush3.msra.mxu1 %v4357_v2 }
 0x1e6   : > { %3273 = vmatprep.subr.mxu1 %v4353_v63 }
 0x1e7   : > { %3274 = vmatpush3.msra.mxu1 %v4353_v63 }
 0x1e8   : > { %3275 = vmatprep.subr.mxu1 %v4349_v61 }
 0x1e9   : > { %3276 = vmatpush3.msra.mxu1 %v4349_v61 }
 0x1ea   : > { %3277 = vmatprep.subr.mxu1 %v4343_v59 }
 0x1eb   : > { %3278 = vmatpush3.msra.mxu1 %v4343_v59 }
 0x1ec   : > { %3279 = vmatprep.subr.mxu1 %v4335_v57 }
 0x1ed   : > { %3280 = vmatpush3.msra.mxu1 %v4335_v57 }
 0x1ee   : > { %3281 = vmatprep.subr.mxu1 %v4323_v53 }
 0x1ef   : > { %3282 = vmatpush3.msra.mxu1 %v4323_v53 }
 0x1f0   : > { %3351 = vmatprep.subr.msk.mxu1 %vm891_vm0, %v4382_v10 }
 0x1fd   : > { %v1309_v11 = vpop.permute.xlu0 %1308 }
 0x201   : > { %v1311_v12 = vpop.permute.xlu0 %1310 }
 0x205   : > { %v1313_v16 = vpop.permute.xlu1 %1312 }
 0x209   : > { %v1315_v14 = vpop.permute.xlu0 %1314 }
 0x20d   : > { %v1317_v18 = vpop.permute.xlu1 %1316 }
 0x211   : > { %v1319_v17 = vpop.permute.xlu0 %1318 }
 0x212   : > { %3295 = vmatprep.subr.msk.mxu0 %vm891_vm0, %v1319_v17 }
 0x213   : > { %3296 = vmatpush3.xpose.msk.msra.mxu0 %vm891_vm0, %v1319_v17 }
 0x214   : > { %3297 = vmatprep.subr.msk.mxu0 %vm891_vm0, %v1317_v18 }
 0x217   : > { %3298 = vmatpush3.xpose.msk.msra.mxu0 %vm891_vm0, %v1317_v18 }
 0x218   : > { %3299 = vmatprep.subr.msk.mxu0 %vm891_vm0, %v1315_v14 }
 0x21b   : > { %3300 = vmatpush3.xpose.msk.msra.mxu0 %vm891_vm0, %v1315_v14 }
 0x21c   : > { %3301 = vmatprep.subr.msk.mxu0 %vm891_vm0, %v1313_v16 }
 0x21f   : > { %3302 = vmatpush3.xpose.msk.msra.mxu0 %vm891_vm0, %v1313_v16 }
 0x220   : > { %3303 = vmatprep.subr.msk.mxu0 %vm891_vm0, %v1311_v12 }
 0x223   : > { %3304 = vmatpush3.xpose.msk.msra.mxu0 %vm891_vm0, %v1311_v12 }
 0x224   : > { %3305 = vmatprep.subr.msk.mxu0 %vm891_vm0, %v1309_v11 }
 0x227   : > { %3306 = vmatpush3.xpose.msk.msra.mxu0 %vm891_vm0, %v1309_v11 }
 0x27f   : > { %v3257_v20 = vpop.f32.mrf.mxu1 }
 0x280   : > { %v1048_v22 = vsel %vm891_vm0, %v3257_v20, -inf }
 0x281   : > { %1049 = vmax.xlane.f32.xlu0 %v1048_v22  ;;  %v1006_v23 = vpop.f32.mrf.mxu1 }
 0x282   : > { %v1045_v21 = vsel %vm891_vm0, %v1006_v23, -inf }
 0x283   : > { %v3260_v3 = vpop.f32.mrf.mxu1 }
 0x284   : > { %v1054_v24 = vsel %vm891_vm0, %v3260_v3, -inf }
 0x285   : > { %1046 = vmax.xlane.f32.xlu0 %v1045_v21  ;;  %1055 = vmax.xlane.f32.xlu1 %v1054_v24  ;;  %v1016_v26 = vpop.f32.mrf.mxu1 }
 0x286   : > { %v1051_v29 = vsel %vm891_vm0, %v1016_v26, -inf }
 0x287   : > { %v3263_v30 = vpop.f32.mrf.mxu1 }
 0x288   : > { %v1060_v36 = vsel %vm891_vm0, %v3263_v30, -inf }
 0x289   : > { %1052 = vmax.xlane.f32.xlu1 %v1051_v29  ;;  %v1026_v32 = vpop.f32.mrf.mxu1 }
 0x28a   : > { %v1057_v35 = vsel %vm891_vm0, %v1026_v32, -inf }
 0x28b   : > { %1058 = vmax.xlane.f32.xlu0 %v1057_v35  ;;  %v4405_v38 = vpop.f32.mrf.mxu1 }
 0x28c   : > { %v1066_v44 = vsel %vm891_vm0, %v4405_v38, -inf }
 0x28d   : > { %1061 = vmax.xlane.f32.xlu1 %v1060_v36  ;;  %v4407_v40 = vpop.f32.mrf.mxu1 }
 0x28e   : > { %v1063_v42 = vsel %vm891_vm0, %v4407_v40, -inf }
 0x28f   : > { %1064 = vmax.xlane.f32.xlu0 %v1063_v42 }
 0x291   : > { %1067 = vmax.xlane.f32.xlu1 %v1066_v44 }
 0x2a2   : > { %1304 = vrot.lane.b32.xlu1 %v4245_v1, %s3937_s27 }
 0x2a5   : > { %1306 = vrot.lane.b32.xlu0 %v4251_v13, %s3937_s27 }
 0x30a   : > { %v1050_v47 = vpop.xlane.xlu0 %1049 }
 0x30b   : > { %v1070_v11 = vsub.f32 %v3257_v20, %v1050_v47 }
 0x30d   : > { %v1079_v12 = vmul.f32 1.442695, %v1070_v11 }
 0x30e   : > { %v1047_v14 = vpop.xlane.xlu0 %1046  ;;  %v1056_v16 = vpop.xlane.xlu1 %1055 }
 0x30f   : > { %3599 = vpow2.f32 %v1079_v12  ;;  %v1069_v17 = vsub.f32 %v1006_v23, %v1047_v14  ;;  %v1072_v44 = vsub.f32 %v3260_v3, %v1056_v16 }
 0x311   : > { %v1077_v18 = vmul.f32 1.442695, %v1069_v17  ;;  %v1083_v11 = vmul.f32 1.442695, %v1072_v44 }
 0x312   : > { %v1053_v22 = vpop.xlane.xlu1 %1052 }
 0x313   : > { %3601 = vpow2.f32 %v1077_v18  ;;  %v1071_v47 = vsub.f32 %v1016_v26, %v1053_v22 }
 0x314   : > { %v1059_v21 = vpop.xlane.xlu0 %1058  ;;  %3603 = vpow2.f32 %v1083_v11 }
 0x315   : > { %v1073_v12 = vsub.f32 %v1026_v32, %v1059_v21  ;;  %v1081_v14 = vmul.f32 1.442695, %v1071_v47 }
 0x316   : > { %v1062_v24 = vpop.xlane.xlu1 %1061 }
 0x317   : > { %v1085_v17 = vmul.f32 1.442695, %v1073_v12  ;;  %v1074_v18 = vsub.f32 %v3263_v30, %v1062_v24  ;;  %3605 = vpow2.f32 %v1081_v14 }
 0x318   : > { %v1065_v29 = vpop.xlane.xlu0 %1064 }
 0x319   : > { %3607 = vpow2.f32 %v1085_v17  ;;  %v1075_v22 = vsub.f32 %v4407_v40, %v1065_v29  ;;  %v1144_v17 = vld [vmem:[#allocation8 + $0x8] sm:$0xff] }
 0x31a   : > { %v1068_v35 = vpop.xlane.xlu1 %1067 }
 0x31b   : > { %v1076_v16 = vsub.f32 %v4405_v38, %v1068_v35  ;;  %v1089_v24 = vmul.f32 1.442695, %v1075_v22  ;;  %v4473_v35 = vstv %s1125_s29 }
 0x31c   : > { %v4417_v36 = vpop.eup %3599  ;;  %v1307_v1 = vpop.permute.xlu0 %1306 }
 0x31d   : > { %3307 = vmatprep.subr.msk.mxu0 %vm891_vm0, %v1307_v1  ;;  %v1096_v13 = vsel %vm891_vm0, %v4417_v36, 0.0  ;;  %v1091_v21 = vmul.f32 1.442695, %v1076_v16 }
 0x31e   : > { %1097 = vadd.xlane.f32.xlu1 %v1096_v13  ;;  %v1305_v20 = vpop.permute.xlu1 %1304  ;;  %3308 = vmatpush3.xpose.msk.msra.mxu0 %vm891_vm0, %v1307_v1  ;;  %v1087_v1 = vmul.f32 1.442695, %v1074_v18 }
 0x31f   : > { %3309 = vmatprep.subr.msk.mxu0 %vm891_vm0, %v1305_v20 }
 0x320   : > { %v4424_v23 = vpop.eup %3601  ;;  %3609 = vpow2.f32 %v1087_v1 }
 0x321   : > { %v1093_v42 = vsel %vm891_vm0, %v4424_v23, 0.0  ;;  %v4433_v13 = vpop.eup %3603  ;;  %3611 = vpow2.f32 %v1091_v21 }
 0x322   : > { %1094 = vadd.xlane.f32.xlu0 %v1093_v42  ;;  %3310 = vmatpush3.xpose.msk.msra.mxu0 %vm891_vm0, %v1305_v20  ;;  %3613 = vpow2.f32 %v1089_v24 }
 0x324   : > { %v4435_v20 = vpop.eup %3605 }
 0x325   : > { %v1099_v3 = vsel %vm891_vm0, %v4435_v20, 0.0 }
 0x32f   : > { %1290 = vrot.lane.b32.xlu1 %v4305_v46, %s3937_s27  ;;  %v1102_v46 = vsel %vm891_vm0, %v4433_v13, 0.0 }
 0x338   : > { %1288 = vrot.lane.b32.xlu0 %v4249_v9, %s3937_s27  ;;  %v4439_v9 = vpop.eup %3607 }
 0x339   : > { %v1105_v26 = vsel %vm891_vm0, %v4439_v9, 0.0  ;;  %v4445_v30 = vpop.eup %3609 }
 0x33a   : > { %v1108_v32 = vsel %vm891_vm0, %v4445_v30, 0.0 }
 0x353   : > { %1103 = vadd.xlane.f32.xlu1 %v1102_v46 }
 0x357   : > { %1100 = vadd.xlane.f32.xlu1 %v1099_v3  ;;  %1106 = vadd.xlane.f32.xlu0 %v1105_v26 }
 0x35b   : > { %1109 = vadd.xlane.f32.xlu1 %v1108_v32 }
 0x36c   : > { %1294 = vrot.lane.b32.xlu1 %v4311_v49, %s3937_s27  ;;  %v4461_v49 = vpop.eup %3611 }
 0x36d   : > { %1292 = vrot.lane.b32.xlu0 %v4307_v48, %s3937_s27  ;;  %v1114_v48 = vsel %vm891_vm0, %v4461_v49, 0.0 }
 0x370   : > { %1298 = vrot.lane.b32.xlu1 %v4321_v52, %s3937_s27  ;;  %v4465_v52 = vpop.eup %3613 }
 0x371   : > { %1296 = vrot.lane.b32.xlu0 %v4317_v51, %s3937_s27  ;;  %v1111_v51 = vsel %vm891_vm0, %v4465_v52, 0.0 }
 0x375   : > { %1300 = vrot.lane.b32.xlu0 %v4327_v54, %s3937_s27 }
 0x394   : > { %1115 = vadd.xlane.f32.xlu1 %v1114_v48 }
 0x398   : > { %1112 = vadd.xlane.f32.xlu1 %v1111_v51 }
 0x3a7   : > { %v1098_v54 = vpop.xlane.xlu1 %1097 }
 0x3a8   : > { %3615 = vrcp.f32 %v1098_v54 }
 0x3a9   : > { %1302 = vrot.lane.b32.xlu1 %v4333_v56, %s3937_s27  ;;  %v1143_v56 = vld [vmem:[#allocation8] sm:$0xff] }
 0x3ab   : > { %v1095_v38 = vpop.xlane.xlu0 %1094  ;;  %v1291_v29 = vpop.permute.xlu1 %1290 }
 0x3ac   : > { %3617 = vrcp.f32 %v1095_v38 }
 0x3af   : > { %v1289_v40 = vpop.permute.xlu0 %1288 }
 0x3b0   : > { %3311 = vmatprep.mubr.msk.f32.mxu0 %vm891_vm0, %v1289_v40  ;;  %v1145_v40 = vld [vmem:[#allocation8 + $0x10] sm:$0xff] }
 0x3b1   : > { %3312 = vmatmul.mubr.msk.f32.vlgmr.msra.gmra.mxu0 %vm891_vm0, %v1291_v29 }
 0x3b5   : > { %v3616_v42 = vpop.eup %3615 }
 0x3b6   : > { %v1128_v44 = vmul.f32 %v3616_v42, %v4473_v35 }
 0x3b8   : > { %v1136_v12 = vmul.f32 %v4417_v36, %v1128_v44 }
 0x3b9   : > { %v3618_v47 = vpop.eup %3617 }
 0x3ba   : > { %v1127_v11 = vmul.f32 %v3618_v47, %v4473_v35  ;;  %v1152_v1 = vadd.f32 %v1144_v17, %v1136_v12  ;;  %v1146_v47 = vld [vmem:[#allocation8 + $0x18] sm:$0xff] }
 0x3bc   : > { %v1135_v14 = vmul.f32 %v4424_v23, %v1127_v11 }
 0x3be   : > { %v1151_v18 = vadd.f32 %v1143_v56, %v1135_v14  ;;  %v1147_v56 = vld [vmem:[#allocation8 + $0x20] sm:$0xff] }
 0x3c0   : > { %3283 = vmatprep.mubr.msk.f32.mxu1 %vm891_vm0, %v1151_v18 }
 0x3c1   : > { %3284 = vmatmul.mubr.msk.f32.vlgmr.msra.gmra.mxu1 %vm891_vm0, %v1152_v1  ;;  %v1148_v1 = vld [vmem:[#allocation8 + $0x28] sm:$0xff] }
 0x3c2   : > { %3352 = vmatpush3.xpose.msk.msra.mxu1 %vm891_vm0, %v4382_v10 }
 0x3c3   : > { %3353 = vmatprep.subr.msk.mxu1 %vm891_vm0, %v4276_v37 }
 0x3c6   : > { %3354 = vmatpush3.xpose.msk.msra.mxu1 %vm891_vm0, %v4276_v37 }
 0x3c7   : > { %3355 = vmatprep.subr.msk.mxu1 %vm891_vm0, %v4273_v34 }
 0x3ca   : > { %3356 = vmatpush3.xpose.msk.msra.mxu1 %vm891_vm0, %v4273_v34 }
 0x3cb   : > { %3357 = vmatprep.subr.msk.mxu1 %vm891_vm0, %v4268_v31 }
 0x3ce   : > { %3358 = vmatpush3.xpose.msk.msra.mxu1 %vm891_vm0, %v4268_v31 }
 0x3cf   : > { %3359 = vmatprep.subr.msk.mxu1 %vm891_vm0, %v4265_v28 }
 0x3d2   : > { %3360 = vmatpush3.xpose.msk.msra.mxu1 %vm891_vm0, %v4265_v28 }
 0x3d3   : > { %3361 = vmatprep.subr.msk.mxu1 %vm891_vm0, %v4260_v25 }
 0x3d6   : > { %3362 = vmatpush3.xpose.msk.msra.mxu1 %vm891_vm0, %v4260_v25 }
 0x3d7   : > { %3363 = vmatprep.subr.msk.mxu1 %vm891_vm0, %v4257_v19 }
 0x3da   : > { %3364 = vmatpush3.xpose.msk.msra.mxu1 %vm891_vm0, %v4257_v19 }
 0x3db   : > { %3365 = vmatprep.subr.msk.mxu1 %vm891_vm0, %v4247_v7 }
 0x3dc   : > { %v1104_v36 = vpop.xlane.xlu1 %1103 }
 0x3dd   : > { %3619 = vrcp.f32 %v1104_v36 }
 0x3de   : > { %3366 = vmatpush3.xpose.msk.msra.mxu1 %vm891_vm0, %v4247_v7 }
 0x3e0   : > { %v1101_v23 = vpop.xlane.xlu1 %1100  ;;  %v1107_v46 = vpop.xlane.xlu0 %1106 }
 0x3e1   : > { %3621 = vrcp.f32 %v1101_v23 }
 0x3e2   : > { %3623 = vrcp.f32 %v1107_v46 }
 0x3e4   : > { %v1110_v3 = vpop.xlane.xlu1 %1109  ;;  %v1293_v26 = vpop.permute.xlu0 %1292 }
 0x3e5   : > { %3625 = vrcp.f32 %v1110_v3  ;;  %3314 = vmatprep.mubr.msk.f32.mxu0 %vm891_vm0, %v1293_v26 }
 0x3e8   : > { %v1295_v32 = vpop.permute.xlu1 %1294  ;;  %v1297_v16 = vpop.permute.xlu0 %1296 }
 0x3e9   : > { %3315 = vmatmul.mubr.msk.f32.gmra.mxu0 %vm891_vm0, %v1295_v32 }
 0x3ea   : > { %v3620_v22 = vpop.eup %3619  ;;  %3317 = vmatprep.mubr.msk.f32.mxu0 %vm891_vm0, %v1297_v16  ;;  %v1149_v16 = vld [vmem:[#allocation8 + $0x30] sm:$0xff] }
 0x3eb   : > { %v1130_v48 = vmul.f32 %v3620_v22, %v4473_v35 }
 0x3ec   : > { %v1299_v21 = vpop.permute.xlu1 %1298  ;;  %v1301_v24 = vpop.permute.xlu0 %1300 }
 0x3ed   : > { %3318 = vmatmul.mubr.msk.f32.gmra.mxu0 %vm891_vm0, %v1299_v21  ;;  %v1138_v29 = vmul.f32 %v4433_v13, %v1130_v48 }
 0x3ee   : > { %v3622_v51 = vpop.eup %3621  ;;  %3320 = vmatprep.mubr.msk.f32.mxu0 %vm891_vm0, %v1301_v24  ;;  %v1150_v24 = vld [vmem:[#allocation8 + $0x38] sm:$0xff] }
 0x3ef   : > { %v3624_v54 = vpop.eup %3623  ;;  %v1129_v38 = vmul.f32 %v3622_v51, %v4473_v35  ;;  %v1154_v18 = vadd.f32 %v1146_v47, %v1138_v29 }
 0x3f0   : > { %v1131_v42 = vmul.f32 %v3624_v54, %v4473_v35  ;;  %v4534_v54 = vmul.f32 0.35355338, %v4255_v15  ;;  %v4551_v15 = vmul.f32 0.35355338, %v4280_v39  ;;  %v4571_v39 = vmul.f32 0.35355338, %v4315_v50 }
 0x3f1   : > { %v1137_v44 = vmul.f32 %v4435_v20, %v1129_v38 }
 0x3f2   : > { %v3626_v11 = vpop.eup %3625  ;;  %v1139_v12 = vmul.f32 %v4439_v9, %v1131_v42 }
 0x3f3   : > { %v1153_v14 = vadd.f32 %v1145_v40, %v1137_v44  ;;  %v1132_v17 = vmul.f32 %v3626_v11, %v4473_v35 }
 0x3f4   : > { %v1155_v36 = vadd.f32 %v1147_v56, %v1139_v12 }
 0x3f5   : > { %3286 = vmatprep.mubr.msk.f32.mxu1 %vm891_vm0, %v1153_v14  ;;  %v1140_v23 = vmul.f32 %v4445_v30, %v1132_v17 }
 0x3f6   : > { %3287 = vmatmul.mubr.msk.f32.gmra.mxu1 %vm891_vm0, %v1154_v18 }
 0x3f7   : > { %3289 = vmatprep.mubr.msk.f32.mxu1 %vm891_vm0, %v1155_v36  ;;  %v1156_v13 = vadd.f32 %v1148_v1, %v1140_v23 }
 0x3fa   : > { %3290 = vmatmul.mubr.msk.f32.gmra.mxu1 %vm891_vm0, %v1156_v13 }
 0x41d   : > { %v1116_v20 = vpop.xlane.xlu1 %1115 }
 0x41e   : > { %3627 = vrcp.f32 %v1116_v20 }
 0x421   : > { %v1113_v9 = vpop.xlane.xlu1 %1112 }
 0x422   : > { %3629 = vrcp.f32 %v1113_v9 }
 0x425   : > { %v1303_v46 = vpop.permute.xlu1 %1302 }
 0x426   : > { %3321 = vmatmul.mubr.msk.f32.gmra.mxu0 %vm891_vm0, %v1303_v46 }
 0x42b   : > { %v3628_v3 = vpop.eup %3627 }
 0x42c   : > { %v1134_v26 = vmul.f32 %v3628_v3, %v4473_v35 }
 0x42e   : > { %v1142_v22 = vmul.f32 %v4461_v49, %v1134_v26  ;;  %v4544_v49 = vmul.f32 0.35355338, %v4271_v33  ;;  %v4564_v33 = vmul.f32 0.35355338, %v4299_v45 }
 0x42f   : > { %v3630_v32 = vpop.eup %3629 }
 0x430   : > { %v1133_v30 = vmul.f32 %v3630_v32, %v4473_v35  ;;  %v1158_v51 = vadd.f32 %v1150_v24, %v1142_v22  ;;  %v4541_v35 = vmul.f32 0.35355338, %v4263_v27  ;;  %v4561_v27 = vmul.f32 0.35355338, %v4292_v43 }
 0x432   : > { %v1141_v21 = vmul.f32 %v4465_v52, %v1133_v30  ;;  %v4554_v52 = vmul.f32 0.35355338, %v4286_v41  ;;  %v4575_v41 = vpop.f32.mrf.mxu0 }
 0x434   : > { %v1157_v48 = vadd.f32 %v1149_v16, %v1141_v21 }
 0x436   : > { %3292 = vmatprep.mubr.msk.f32.mxu1 %vm891_vm0, %v1157_v48 }
 0x437   : > { %3293 = vmatmul.mubr.msk.f32.gmra.mxu1 %vm891_vm0, %v1158_v51 }
 0x438   : > { %3367 = vmatprep.mubr.msk.f32.mxu1 %vm891_vm0, %v4534_v54 }
 0x43b   : > { %3368 = vmatmul.mubr.msk.f32.vlgmr.msra.gmra.mxu1 %vm891_vm0, %v4541_v35 }
 0x43c   : > { %3370 = vmatprep.mubr.msk.f32.mxu1 %vm891_vm0, %v4544_v49 }
 0x43f   : > { %3371 = vmatmul.mubr.msk.f32.gmra.mxu1 %vm891_vm0, %v4551_v15 }
 0x440   : > { %3373 = vmatprep.mubr.msk.f32.mxu1 %vm891_vm0, %v4554_v52 }
 0x443   : > { %3374 = vmatmul.mubr.msk.f32.gmra.mxu1 %vm891_vm0, %v4561_v27 }
 0x444   : > { %3376 = vmatprep.mubr.msk.f32.mxu1 %vm891_vm0, %v4564_v33 }
 0x447   : > { %3377 = vmatmul.mubr.msk.f32.gmra.mxu1 %vm891_vm0, %v4571_v39 }
 0x471   : > { %v3313_v38 = vpop.f32.mrf.mxu0 }
 0x472   : > { %v1460_v43 = vsel %vm891_vm0, %v3313_v38, -inf }
 0x473   : > { %1461 = vmax.xlane.f32.xlu1 %v1460_v43  ;;  %v1418_v45 = vpop.f32.mrf.mxu0 }
 0x474   : > { %v1457_v40 = vsel %vm891_vm0, %v1418_v45, -inf }
 0x475   : > { %1458 = vmax.xlane.f32.xlu0 %v1457_v40 }
 0x481   : > { %v4583_v14 = vpop.f32.mrf.mxu1 }
 0x483   : > { %v4587_v18 = vpop.f32.mrf.mxu1 }
 0x4a9   : > { %v3316_v29 = vpop.f32.mrf.mxu0 }
 0x4aa   : > { %v1466_v11 = vsel %vm891_vm0, %v3316_v29, -inf }
 0x4ab   : > { %v1428_v42 = vpop.f32.mrf.mxu0 }
 0x4ac   : > { %v1463_v44 = vsel %vm891_vm0, %v1428_v42, -inf }
 0x4ad   : > { %1464 = vmax.xlane.f32.xlu0 %v1463_v44  ;;  %v3319_v50 = vpop.f32.mrf.mxu0 }
 0x4ae   : > { %v1472_v47 = vsel %vm891_vm0, %v3319_v50, -inf }
 0x4af   : > { %1473 = vmax.xlane.f32.xlu1 %v1472_v47  ;;  %v1438_v12 = vpop.f32.mrf.mxu0 }
 0x4b0   : > { %v1469_v56 = vsel %vm891_vm0, %v1438_v12, -inf }
 0x4b1   : > { %1467 = vmax.xlane.f32.xlu0 %v1466_v11 }
 0x4b5   : > { %1470 = vmax.xlane.f32.xlu0 %v1469_v56 }
 0x4b6   : > { %v4593_v23 = vpop.f32.mrf.mxu1 }
 0x4b8   : > { %v4597_v20 = vpop.f32.mrf.mxu1 }
 0x4ba   : > { %v4599_v9 = vpop.f32.mrf.mxu1 }
 0x4bb   : > { %5112 = vst [vmem:[#allocation18_spill] sm:$0xff] %v4599_v9 }
 0x4bc   : > { %v4601_v46 = vpop.f32.mrf.mxu1 }
 0x4e6   : > { %v4585_v17 = vpop.f32.mrf.mxu0 }
 0x4e7   : > { %v1478_v1 = vsel %vm891_vm0, %v4585_v17, -inf }
 0x4e8   : > { %1479 = vmax.xlane.f32.xlu1 %v1478_v1  ;;  %v4591_v36 = vpop.f32.mrf.mxu0 }
 0x4e9   : > { %v1475_v13 = vsel %vm891_vm0, %v4591_v36, -inf }
 0x4ea   : > { %1476 = vmax.xlane.f32.xlu0 %v1475_v13 }
 0x4f7   : > { %v4603_v3 = vpop.f32.mrf.mxu1 }
 0x4f8   : > { %5113 = vst [vmem:[#allocation19_spill] sm:$0xff] %v4603_v3 }
 0x4f9   : > { %v4605_v26 = vpop.f32.mrf.mxu1 }
 0x4fa   : > { %5114 = vst [vmem:[#allocation20_spill] sm:$0xff] %v4605_v26 }
 0x4fb   : > { %v4607_v32 = vpop.f32.mrf.mxu1 }
 0x4fc   : > { %v1462_v30 = vpop.xlane.xlu1 %1461  ;;  %v1889_v16 = vsel %vm891_vm0, %v4607_v32, -inf }
 0x4fd   : > { %v1482_v22 = vsub.f32 %v3313_v38, %v1462_v30  ;;  %v4611_v21 = vpop.f32.mrf.mxu1  ;;  %1890 = vmax.xlane.f32.xlu1 %v1889_v16 }
 0x4fe   : > { %v1459_v24 = vpop.xlane.xlu0 %1458  ;;  %v1886_v48 = vsel %vm891_vm0, %v4611_v21, -inf }
 0x4ff   : > { %v1491_v51 = vmul.f32 1.442695, %v1482_v22  ;;  %v1481_v43 = vsub.f32 %v1418_v45, %v1459_v24  ;;  %1887 = vmax.xlane.f32.xlu0 %v1886_v48 }
 0x501   : > { %3631 = vpow2.f32 %v1491_v51  ;;  %v1489_v40 = vmul.f32 1.442695, %v1481_v43 }
 0x503   : > { %3633 = vpow2.f32 %v1489_v40 }
 0x50e   : > { %v4615_v44 = vpop.eup %3631 }
 0x50f   : > { %v1508_v47 = vsel %vm891_vm0, %v4615_v44, 0.0 }
 0x510   : > { %v4619_v11 = vpop.eup %3633  ;;  %1509 = vadd.xlane.f32.xlu1 %v1508_v47  ;;  %v4623_v47 = vpop.f32.mrf.mxu1 }
 0x511   : > { %v1505_v38 = vsel %vm891_vm0, %v4619_v11, 0.0 }
 0x512   : > { %1506 = vadd.xlane.f32.xlu0 %v1505_v38  ;;  %v4629_v38 = vpop.f32.mrf.mxu1 }
 0x536   : > { %v1465_v56 = vpop.xlane.xlu0 %1464 }
 0x537   : > { %v1483_v1 = vsub.f32 %v1428_v42, %v1465_v56 }
 0x538   : > { %v1474_v13 = vpop.xlane.xlu1 %1473 }
 0x539   : > { %v1493_v45 = vmul.f32 1.442695, %v1483_v1  ;;  %v1486_v30 = vsub.f32 %v3319_v50, %v1474_v13 }
 0x53a   : > { %v1468_v16 = vpop.xlane.xlu0 %1467 }
 0x53b   : > { %3635 = vpow2.f32 %v1493_v45  ;;  %v1484_v22 = vsub.f32 %v3316_v29, %v1468_v16  ;;  %v1499_v24 = vmul.f32 1.442695, %v1486_v30  ;;  %v1895_v16 = vsel %vm891_vm0, %v4623_v47, -inf }
 0x53d   : > { %v1495_v48 = vmul.f32 1.442695, %v1484_v22  ;;  %v1892_v22 = vsel %vm891_vm0, %v4629_v38, -inf }
 0x53e   : > { %v1471_v51 = vpop.xlane.xlu0 %1470 }
 0x53f   : > { %3637 = vpow2.f32 %v1495_v48  ;;  %v1485_v43 = vsub.f32 %v1438_v12, %v1471_v51  ;;  %v4637_v12 = vpop.f32.mrf.mxu1 }
 0x540   : > { %3639 = vpow2.f32 %v1499_v24  ;;  %v1901_v48 = vsel %vm891_vm0, %v4637_v12, -inf }
 0x541   : > { %v1497_v40 = vmul.f32 1.442695, %v1485_v43  ;;  %v4645_v30 = vpop.f32.mrf.mxu1 }
 0x542   : > { %v1898_v51 = vsel %vm891_vm0, %v4645_v30, -inf }
 0x543   : > { %3641 = vpow2.f32 %v1497_v40  ;;  %v4651_v24 = vpop.f32.mrf.mxu1 }
 0x544   : > { %v1907_v40 = vsel %vm891_vm0, %v4651_v24, -inf }
 0x545   : > { %v4657_v43 = vpop.f32.mrf.mxu1 }
 0x548   : > { %v4625_v3 = vpop.eup %3635 }
 0x549   : > { %v1511_v42 = vsel %vm891_vm0, %v4625_v3, 0.0 }
 0x54a   : > { %1512 = vadd.xlane.f32.xlu0 %v1511_v42  ;;  %v1904_v42 = vsel %vm891_vm0, %v4657_v43, -inf }
 0x54c   : > { %v4631_v50 = vpop.eup %3637 }
 0x54d   : > { %v1514_v29 = vsel %vm891_vm0, %v4631_v50, 0.0  ;;  %v4635_v56 = vpop.eup %3639 }
 0x54e   : > { %1515 = vadd.xlane.f32.xlu1 %v1514_v29  ;;  %v1520_v13 = vsel %vm891_vm0, %v4635_v56, 0.0 }
 0x550   : > { %v4639_v1 = vpop.eup %3641 }
 0x551   : > { %v1517_v45 = vsel %vm891_vm0, %v4639_v1, 0.0 }
 0x552   : > { %1521 = vadd.xlane.f32.xlu1 %v1520_v13  ;;  %1518 = vadd.xlane.f32.xlu0 %v1517_v45 }
 0x556   : > { %1896 = vmax.xlane.f32.xlu1 %v1895_v16  ;;  %1893 = vmax.xlane.f32.xlu0 %v1892_v22 }
 0x55a   : > { %1902 = vmax.xlane.f32.xlu1 %v1901_v48  ;;  %1899 = vmax.xlane.f32.xlu0 %v1898_v51 }
 0x55e   : > { %1908 = vmax.xlane.f32.xlu1 %v1907_v40  ;;  %1905 = vmax.xlane.f32.xlu0 %v1904_v42 }
 0x571   : > { %v1480_v29 = vpop.xlane.xlu1 %1479 }
 0x572   : > { %v1488_v13 = vsub.f32 %v4585_v17, %v1480_v29 }
 0x573   : > { %v1477_v45 = vpop.xlane.xlu0 %1476 }
 0x574   : > { %v1503_v16 = vmul.f32 1.442695, %v1488_v13  ;;  %v1487_v22 = vsub.f32 %v4591_v36, %v1477_v45 }
 0x576   : > { %3643 = vpow2.f32 %v1503_v16  ;;  %v1501_v26 = vmul.f32 1.442695, %v1487_v22 }
 0x578   : > { %3645 = vpow2.f32 %v1501_v26 }
 0x583   : > { %v4665_v48 = vpop.eup %3643 }
 0x584   : > { %v1526_v51 = vsel %vm891_vm0, %v4665_v48, 0.0 }
 0x585   : > { %v4669_v9 = vpop.eup %3645  ;;  %1527 = vadd.xlane.f32.xlu1 %v1526_v51 }
 0x586   : > { %v1523_v40 = vsel %vm891_vm0, %v4669_v9, 0.0 }
 0x587   : > { %1524 = vadd.xlane.f32.xlu0 %v1523_v40 }
 0x588   : > { %v1888_v17 = vpop.xlane.xlu0 %1887 }
 0x596   : > { %1592 = vrot.lane.b32.xlu1 %v4361_v5, %s3937_s27  ;;  %v4689_v5 = vstv %s3045_s12 }
 0x59a   : > { %1588 = vrot.lane.b32.xlu1 %v4353_v63, %s3937_s27 }
 0x59b   : > { %v1507_v36 = vpop.xlane.xlu0 %1506 }
 0x59c   : > { %3647 = vrcp.f32 %v1507_v36 }
 0x59d   : > { %1594 = vrot.lane.b32.xlu0 %v4365_v8, %s3937_s27  ;;  %v1910_v8 = vsub.f32 %v4611_v21, %v1888_v17 }
 0x59e   : > { %1584 = vrot.lane.b32.xlu1 %v4343_v59, %s3937_s27 }
 0x59f   : > { %v1918_v26 = vmul.f32 1.442695, %v1910_v8 }
 0x5a1   : > { %1590 = vrot.lane.b32.xlu0 %v4357_v2, %s3937_s27  ;;  %v1556_v2 = vld [vmem:[#allocation8 + $0x40] sm:$0xff] }
 0x5a2   : > { %1580 = vrot.lane.b32.xlu1 %v4323_v53, %s3937_s27 }
 0x5a5   : > { %1586 = vrot.lane.b32.xlu0 %v4349_v61, %s3937_s27 }
 0x5a6   : > { %2158 = vrot.lane.b32.xlu1 %v4276_v37, %s3937_s27 }
 0x5a9   : > { %v3648_v63 = vpop.eup %3647  ;;  %1582 = vrot.lane.b32.xlu0 %v4335_v57, %s3937_s27  ;;  %v1891_v57 = vpop.xlane.xlu1 %1890 }
 0x5aa   : > { %2156 = vrot.lane.b32.xlu1 %v4273_v34, %s3937_s27  ;;  %v1539_v59 = vmul.f32 %v3648_v63, %v4689_v5  ;;  %v1911_v34 = vsub.f32 %v4607_v32, %v1891_v57 }
 0x5ac   : > { %v1547_v53 = vmul.f32 %v4619_v11, %v1539_v59  ;;  %v1920_v61 = vmul.f32 1.442695, %v1911_v34 }
 0x5ad   : > { %2160 = vrot.lane.b32.xlu0 %v4382_v10, %s3937_s27  ;;  %v1510_v42 = vpop.xlane.xlu1 %1509 }
 0x5ae   : > { %2154 = vrot.lane.b32.xlu1 %v4268_v31, %s3937_s27  ;;  %v1564_v37 = vadd.f32 %v1556_v2, %v1547_v53  ;;  %3649 = vpow2.f32 %v1920_v61 }
 0x5af   : > { %3651 = vpow2.f32 %v1918_v26 }
 0x5b0   : > { %3339 = vmatprep.mubr.msk.f32.mxu0 %vm891_vm0, %v1564_v37 }
 0x5b1   : > { %2152 = vrot.lane.b32.xlu0 %v4265_v28, %s3937_s27 }
 0x5bb   : > { %v4706_v11 = vpop.eup %3649 }
 0x5bc   : > { %v1937_v31 = vsel %vm891_vm0, %v4706_v11, 0.0  ;;  %v4710_v10 = vpop.eup %3651 }
 0x5bd   : > { %v1934_v28 = vsel %vm891_vm0, %v4710_v10, 0.0 }
 0x5d2   : > { %1938 = vadd.xlane.f32.xlu1 %v1937_v31 }
 0x5d3   : > { %v1513_v32 = vpop.xlane.xlu0 %1512 }
 0x5d6   : > { %1935 = vadd.xlane.f32.xlu1 %v1934_v28 }
 0x5d7   : > { %v1516_v29 = vpop.xlane.xlu1 %1515 }
 0x5db   : > { %v1522_v13 = vpop.xlane.xlu1 %1521  ;;  %v1519_v21 = vpop.xlane.xlu0 %1518 }
 0x5df   : > { %v1897_v45 = vpop.xlane.xlu1 %1896  ;;  %v1894_v16 = vpop.xlane.xlu0 %1893 }
 0x5e0   : > { %v1912_v22 = vsub.f32 %v4629_v38, %v1894_v16  ;;  %v1913_v34 = vsub.f32 %v4623_v47, %v1897_v45 }
 0x5e2   : > { %v1922_v51 = vmul.f32 1.442695, %v1912_v22  ;;  %v1924_v8 = vmul.f32 1.442695, %v1913_v34  ;;  %v1557_v34 = vld [vmem:[#allocation8 + $0x48] sm:$0xff] }
 0x5e3   : > { %v1903_v40 = vpop.xlane.xlu1 %1902  ;;  %v1900_v17 = vpop.xlane.xlu0 %1899 }
 0x5e4   : > { %v1915_v36 = vsub.f32 %v4637_v12, %v1903_v40  ;;  %v1914_v63 = vsub.f32 %v4645_v30, %v1900_v17  ;;  %3653 = vpow2.f32 %v1922_v51 }
 0x5e6   : > { %v1928_v59 = vmul.f32 1.442695, %v1915_v36  ;;  %v1926_v2 = vmul.f32 1.442695, %v1914_v63 }
 0x5e7   : > { %2150 = vrot.lane.b32.xlu1 %v4260_v25, %s3937_s27  ;;  %v1906_v53 = vpop.xlane.xlu0 %1905  ;;  %v1909_v12 = vpop.xlane.xlu1 %1908 }
 0x5e8   : > { %3655 = vpow2.f32 %v1928_v59  ;;  %v1916_v37 = vsub.f32 %v4657_v43, %v1906_v53  ;;  %v1917_v25 = vsub.f32 %v4651_v24, %v1909_v12 }
 0x5e9   : > { %3657 = vpow2.f32 %v1926_v2 }
 0x5ea   : > { %v1930_v57 = vmul.f32 1.442695, %v1916_v37  ;;  %v1932_v31 = vmul.f32 1.442695, %v1917_v25  ;;  %v1558_v25 = vld [vmem:[#allocation8 + $0x50] sm:$0xff] }
 0x5ec   : > { %3659 = vpow2.f32 %v1930_v57 }
 0x5ed   : > { %3661 = vpow2.f32 %v1924_v8 }
 0x5ee   : > { %3663 = vpow2.f32 %v1932_v31 }
 0x5ef   : > { %3665 = vrcp.f32 %v1510_v42 }
 0x5f0   : > { %3667 = vrcp.f32 %v1513_v32 }
 0x5f1   : > { %v4720_v38 = vpop.eup %3653  ;;  %3669 = vrcp.f32 %v1516_v29 }
 0x5f2   : > { %v1940_v30 = vsel %vm891_vm0, %v4720_v38, 0.0  ;;  %3671 = vrcp.f32 %v1519_v21 }
 0x5f3   : > { %1941 = vadd.xlane.f32.xlu0 %v1940_v30  ;;  %3673 = vrcp.f32 %v1522_v13 }
 0x5f5   : > { %v4725_v61 = vpop.eup %3655 }
 0x5f6   : > { %v1949_v43 = vsel %vm891_vm0, %v4725_v61, 0.0  ;;  %v4730_v26 = vpop.eup %3657 }
 0x5f7   : > { %1950 = vadd.xlane.f32.xlu0 %v1949_v43  ;;  %v1946_v47 = vsel %vm891_vm0, %v4730_v26, 0.0 }
 0x5f9   : > { %v4734_v28 = vpop.eup %3659 }
 0x5fa   : > { %v1952_v45 = vsel %vm891_vm0, %v4734_v28, 0.0  ;;  %v4738_v24 = vpop.eup %3661 }
 0x5fb   : > { %1947 = vadd.xlane.f32.xlu0 %v1946_v47  ;;  %v1943_v16 = vsel %vm891_vm0, %v4738_v24, 0.0  ;;  %v4742_v22 = vpop.eup %3663 }
 0x5fc   : > { %v1955_v40 = vsel %vm891_vm0, %v4742_v22, 0.0  ;;  %v3666_v42 = vpop.eup %3665 }
 0x5fd   : > { %v3668_v2 = vpop.eup %3667  ;;  %v1540_v29 = vmul.f32 %v3666_v42, %v4689_v5 }
 0x5fe   : > { %v3670_v53 = vpop.eup %3669 }
 0x5ff   : > { %1953 = vadd.xlane.f32.xlu0 %v1952_v45  ;;  %v3672_v37 = vpop.eup %3671  ;;  %v1548_v57 = vmul.f32 %v4615_v44, %v1540_v29  ;;  %v1542_v30 = vmul.f32 %v3670_v53, %v4689_v5  ;;  %v4804_v29 = vstv %s3070_s16 }
 0x600   : > { %v3674_v8 = vpop.eup %3673  ;;  %v1543_v43 = vmul.f32 %v3672_v37, %v4689_v5 }
 0x601   : > { %v1550_v44 = vmul.f32 %v4631_v50, %v1542_v30  ;;  %v1544_v47 = vmul.f32 %v3674_v8, %v4689_v5 }
 0x60b   : > { %1944 = vadd.xlane.f32.xlu1 %v1943_v16  ;;  %v1559_v16 = vld [vmem:[#allocation8 + $0x58] sm:$0xff] }
 0x60c   : > { %v1567_v50 = vadd.f32 %v1559_v16, %v1550_v44  ;;  %v1987_v44 = vld [vmem:[#allocation8 + $0x90] sm:$0xff] }
 0x60e   : > { %v1528_v51 = vpop.xlane.xlu1 %1527 }
 0x60f   : > { %1956 = vadd.xlane.f32.xlu1 %v1955_v40  ;;  %v1552_v40 = vmul.f32 %v4635_v56, %v1544_v47 }
 0x610   : > { %v1525_v17 = vpop.xlane.xlu0 %1524 }
 0x611   : > { %3675 = vrcp.f32 %v1525_v17 }
 0x612   : > { %v1593_v36 = vpop.permute.xlu1 %1592  ;;  %3677 = vrcp.f32 %v1528_v51 }
 0x614   : > { %v1595_v63 = vpop.permute.xlu0 %1594 }
 0x615   : > { %3323 = vmatprep.subr.mxu0 %v1595_v63  ;;  %2148 = vrot.lane.b32.xlu0 %v4257_v19, %s3937_s27  ;;  %v1541_v19 = vmul.f32 %v3668_v2, %v4689_v5 }
 0x616   : > { %v1589_v59 = vpop.permute.xlu1 %1588  ;;  %3324 = vmatpush3.msra.mxu0 %v1595_v63  ;;  %v1562_v63 = vld [vmem:[#allocation8 + $0x70] sm:$0xff] }
 0x617   : > { %3325 = vmatprep.subr.mxu0 %v1593_v36  ;;  %v1549_v12 = vmul.f32 %v4625_v3, %v1541_v19 }
 0x618   : > { %3326 = vmatpush3.msra.mxu0 %v1593_v36  ;;  %v1591_v32 = vpop.permute.xlu0 %1590  ;;  %v1561_v36 = vld [vmem:[#allocation8 + $0x68] sm:$0xff] }
 0x619   : > { %3327 = vmatprep.subr.mxu0 %v1591_v32  ;;  %2130 = vrot.lane.b32.xlu0 %v4534_v54, %s3937_s27  ;;  %v1566_v3 = vadd.f32 %v1558_v25, %v1549_v12 }
 0x61a   : > { %3328 = vmatpush3.msra.mxu0 %v1591_v32  ;;  %v1585_v13 = vpop.permute.xlu1 %1584 }
 0x61b   : > { %3329 = vmatprep.subr.mxu0 %v1589_v59 }
 0x61c   : > { %3330 = vmatpush3.msra.mxu0 %v1589_v59  ;;  %v1587_v21 = vpop.permute.xlu0 %1586 }
 0x61d   : > { %3331 = vmatprep.subr.mxu0 %v1587_v21  ;;  %2134 = vrot.lane.b32.xlu0 %v4544_v49, %s3937_s27 }
 0x61e   : > { %3332 = vmatpush3.msra.mxu0 %v1587_v21  ;;  %v3676_v49 = vpop.eup %3675  ;;  %v1581_v31 = vpop.permute.xlu1 %1580 }
 0x61f   : > { %3333 = vmatprep.subr.mxu0 %v1585_v13  ;;  %v3678_v45 = vpop.eup %3677  ;;  %v1545_v51 = vmul.f32 %v3676_v49, %v4689_v5 }
 0x620   : > { %2146 = vrot.lane.b32.xlu1 %v4247_v7, %s3937_s27  ;;  %3334 = vmatpush3.msra.mxu0 %v1585_v13  ;;  %v1583_v54 = vpop.permute.xlu0 %1582  ;;  %v1565_v7 = vadd.f32 %v1557_v34, %v1548_v57  ;;  %v1985_v57 = vld [vmem:[#allocation8 + $0x80] sm:$0xff]  ;;  %v1986_v34 = vld [vmem:[#allocation8 + $0x88] sm:$0xff] }
 0x621   : > { %3335 = vmatprep.subr.mxu0 %v1583_v54  ;;  %2138 = vrot.lane.b32.xlu0 %v4554_v52, %s3937_s27  ;;  %v1551_v52 = vmul.f32 %v4639_v1, %v1543_v43  ;;  %v1546_v1 = vmul.f32 %v3678_v45, %v4689_v5  ;;  %v1563_v5 = vld [vmem:[#allocation8 + $0x78] sm:$0xff] }
 0x622   : > { %3336 = vmatpush3.msra.mxu0 %v1583_v54  ;;  %v2159_v59 = vpop.permute.xlu1 %2158 }
 0x623   : > { %3337 = vmatprep.subr.mxu0 %v1581_v31  ;;  %v1554_v56 = vmul.f32 %v4665_v48, %v1546_v1 }
 0x624   : > { %2132 = vrot.lane.b32.xlu1 %v4541_v35, %s3937_s27  ;;  %3338 = vmatpush3.msra.mxu0 %v1581_v31  ;;  %v1560_v35 = vld [vmem:[#allocation8 + $0x60] sm:$0xff]  ;;  %v2161_v48 = vpop.permute.xlu0 %2160 }
 0x625   : > { %3340 = vmatmul.mubr.msk.f32.vlgmr.msra.gmra.mxu0 %vm891_vm0, %v1565_v7  ;;  %3379 = vmatprep.subr.mxu0 %v4575_v41  ;;  %v1568_v17 = vadd.f32 %v1560_v35, %v1551_v52 }
 0x626   : > { %2142 = vrot.lane.b32.xlu0 %v4564_v33, %s3937_s27  ;;  %3342 = vmatprep.mubr.msk.f32.mxu0 %vm891_vm0, %v1566_v3  ;;  %v1553_v33 = vmul.f32 %v4669_v9, %v1545_v51  ;;  %v2157_v42 = vpop.permute.xlu1 %2156 }
 0x627   : > { %3380 = vmatpush3.msra.mxu0 %v4575_v41 }
 0x628   : > { %3381 = vmatprep.subr.mxu0 %v4363_v6  ;;  %2136 = vrot.lane.b32.xlu1 %v4551_v15, %s3937_s27  ;;  %v1569_v15 = vadd.f32 %v1561_v36, %v1552_v40  ;;  %v1570_v9 = vadd.f32 %v1562_v63, %v1553_v33  ;;  %v2153_v8 = vpop.permute.xlu0 %2152  ;;  %v1988_v33 = vld [vmem:[#allocation8 + $0x98] sm:$0xff] }
 0x629   : > { %3382 = vmatpush3.msra.mxu0 %v4363_v6 }
 0x62a   : > { %3343 = vmatmul.mubr.msk.f32.gmra.mxu0 %vm891_vm0, %v1567_v50  ;;  %3383 = vmatprep.subr.mxu0 %v4359_v4  ;;  %v2155_v32 = vpop.permute.xlu1 %2154 }
 0x62b   : > { %3345 = vmatprep.mubr.msk.f32.mxu0 %vm891_vm0, %v1568_v17  ;;  %3384 = vmatpush3.msra.mxu0 %v4359_v4 }
 0x62c   : > { %3385 = vmatprep.subr.mxu0 %v4355_v0  ;;  %2140 = vrot.lane.b32.xlu1 %v4561_v27, %s3937_s27  ;;  %v1571_v27 = vadd.f32 %v1563_v5, %v1554_v56 }
 0x62d   : > { %3386 = vmatpush3.msra.mxu0 %v4355_v0 }
 0x62e   : > { %3346 = vmatmul.mubr.msk.f32.gmra.mxu0 %vm891_vm0, %v1569_v15  ;;  %3387 = vmatprep.subr.mxu0 %v4351_v62 }
 0x62f   : > { %3348 = vmatprep.mubr.msk.f32.mxu0 %vm891_vm0, %v1570_v9  ;;  %3388 = vmatpush3.msra.mxu0 %v4351_v62  ;;  %v1989_v9 = vld [vmem:[#allocation8 + $0xa0] sm:$0xff] }
 0x630   : > { %3389 = vmatprep.subr.mxu0 %v4347_v60  ;;  %2144 = vrot.lane.b32.xlu1 %v4571_v39, %s3937_s27 }
 0x631   : > { %3390 = vmatpush3.msra.mxu0 %v4347_v60 }
 0x632   : > { %3349 = vmatmul.mubr.msk.f32.gmra.mxu0 %vm891_vm0, %v1571_v27  ;;  %3391 = vmatprep.subr.mxu0 %v4341_v58 }
 0x633   : > { %3392 = vmatpush3.msra.mxu0 %v4341_v58 }
 0x634   : > { %3393 = vmatprep.subr.mxu0 %v4331_v55 }
 0x635   : > { %3394 = vmatpush3.msra.mxu0 %v4331_v55 }
 0x636   : > { %3407 = vmatprep.subr.msk.mxu0 %vm891_vm0, %v2161_v48 }
 0x65b   : > { %v1939_v39 = vpop.xlane.xlu1 %1938 }
 0x65c   : > { %3679 = vrcp.f32 %v1939_v39 }
 0x65f   : > { %v1936_v2 = vpop.xlane.xlu1 %1935 }
 0x660   : > { %3681 = vrcp.f32 %v1936_v2  ;;  %v1991_v2 = vld [vmem:[#allocation8 + $0xb0] sm:$0xff] }
 0x663   : > { %v2151_v43 = vpop.permute.xlu1 %2150 }
 0x669   : > { %v3680_v13 = vpop.eup %3679 }
 0x66a   : > { %v1969_v21 = vmul.f32 %v3680_v13, %v4804_v29 }
 0x66c   : > { %v1977_v37 = vmul.f32 %v4706_v11, %v1969_v21 }
 0x66d   : > { %v3682_v19 = vpop.eup %3681 }
 0x66e   : > { %v1968_v53 = vmul.f32 %v3682_v19, %v4804_v29  ;;  %v1994_v30 = vadd.f32 %v1986_v34, %v1977_v37  ;;  %v1992_v19 = vld [vmem:[#allocation8 + $0xb8] sm:$0xff] }
 0x670   : > { %v1976_v54 = vmul.f32 %v4710_v10, %v1968_v53 }
 0x672   : > { %v1993_v12 = vadd.f32 %v1985_v57, %v1976_v54 }
 0x674   : > { %3395 = vmatprep.mubr.msk.f32.mxu0 %vm891_vm0, %v1993_v12 }
 0x675   : > { %3396 = vmatmul.mubr.msk.f32.vlgmr.msra.gmra.mxu0 %vm891_vm0, %v1994_v30 }
 0x676   : > { %3408 = vmatpush3.xpose.msk.msra.mxu0 %vm891_vm0, %v2161_v48 }
 0x677   : > { %3409 = vmatprep.subr.msk.mxu0 %vm891_vm0, %v2159_v59 }
 0x67a   : > { %3410 = vmatpush3.xpose.msk.msra.mxu0 %vm891_vm0, %v2159_v59 }
 0x67b   : > { %3411 = vmatprep.subr.msk.mxu0 %vm891_vm0, %v2157_v42 }
 0x67c   : > { %v1942_v11 = vpop.xlane.xlu0 %1941 }
 0x67d   : > { %3683 = vrcp.f32 %v1942_v11 }
 0x67e   : > { %3412 = vmatpush3.xpose.msk.msra.mxu0 %vm891_vm0, %v2157_v42 }
 0x67f   : > { %3413 = vmatprep.subr.msk.mxu0 %vm891_vm0, %v2155_v32 }
 0x680   : > { %v1951_v10 = vpop.xlane.xlu0 %1950 }
 0x682   : > { %3414 = vmatpush3.xpose.msk.msra.mxu0 %vm891_vm0, %v2155_v32  ;;  %v1990_v32 = vld [vmem:[#allocation8 + $0xa8] sm:$0xff] }
 0x683   : > { %3415 = vmatprep.subr.msk.mxu0 %vm891_vm0, %v2153_v8 }
 0x684   : > { %v1948_v25 = vpop.xlane.xlu0 %1947 }
 0x685   : > { %3685 = vrcp.f32 %v1948_v25 }
 0x686   : > { %3416 = vmatpush3.xpose.msk.msra.mxu0 %vm891_vm0, %v2153_v8  ;;  %3687 = vrcp.f32 %v1951_v10 }
 0x687   : > { %3417 = vmatprep.subr.msk.mxu0 %vm891_vm0, %v2151_v43 }
 0x688   : > { %v1954_v49 = vpop.xlane.xlu0 %1953 }
 0x689   : > { %3689 = vrcp.f32 %v1954_v49 }
 0x68a   : > { %3418 = vmatpush3.xpose.msk.msra.mxu0 %vm891_vm0, %v2151_v43  ;;  %v3684_v31 = vpop.eup %3683 }
 0x68b   : > { %v1970_v7 = vmul.f32 %v3684_v31, %v4804_v29 }
 0x68c   : > { %v2149_v3 = vpop.permute.xlu0 %2148 }
 0x68d   : > { %3419 = vmatprep.subr.msk.mxu0 %vm891_vm0, %v2149_v3  ;;  %v1978_v47 = vmul.f32 %v4720_v38, %v1970_v7 }
 0x68e   : > { %3420 = vmatpush3.xpose.msk.msra.mxu0 %vm891_vm0, %v2149_v3 }
 0x68f   : > { %v1995_v45 = vadd.f32 %v1987_v44, %v1978_v47 }
 0x691   : > { %3398 = vmatprep.mubr.msk.f32.mxu0 %vm891_vm0, %v1995_v45 }
 0x692   : > { %v3686_v35 = vpop.eup %3685 }
 0x693   : > { %v3688_v50 = vpop.eup %3687  ;;  %v1972_v38 = vmul.f32 %v3686_v35, %v4804_v29 }
 0x694   : > { %v1945_v16 = vpop.xlane.xlu1 %1944  ;;  %v1973_v36 = vmul.f32 %v3688_v50, %v4804_v29 }
 0x695   : > { %3691 = vrcp.f32 %v1945_v16  ;;  %v1980_v63 = vmul.f32 %v4730_v26, %v1972_v38  ;;  %v2131_v26 = vpop.permute.xlu0 %2130 }
 0x696   : > { %v3690_v40 = vpop.eup %3689  ;;  %v1981_v48 = vmul.f32 %v4725_v61, %v1973_v36 }
 0x697   : > { %v1974_v15 = vmul.f32 %v3690_v40, %v4804_v29  ;;  %v1997_v42 = vadd.f32 %v1989_v9, %v1980_v63 }
 0x698   : > { %v1957_v52 = vpop.xlane.xlu1 %1956  ;;  %v1998_v13 = vadd.f32 %v1990_v32, %v1981_v48 }
 0x699   : > { %3693 = vrcp.f32 %v1957_v52  ;;  %v1982_v39 = vmul.f32 %v4734_v28, %v1974_v15  ;;  %v2135_v53 = vpop.permute.xlu0 %2134 }
 0x69b   : > { %v1999_v21 = vadd.f32 %v1991_v2, %v1982_v39 }
 0x69c   : > { %v2147_v51 = vpop.permute.xlu1 %2146 }
 0x69d   : > { %3421 = vmatprep.subr.msk.mxu0 %vm891_vm0, %v2147_v51  ;;  %v2139_v37 = vpop.permute.xlu0 %2138 }
 0x69e   : > { %3422 = vmatpush3.xpose.msk.msra.mxu0 %vm891_vm0, %v2147_v51 }
 0x6a0   : > { %v2133_v61 = vpop.permute.xlu1 %2132 }
 0x6a1   : > { %v2143_v57 = vpop.permute.xlu0 %2142 }
 0x6a2   : > { %v3692_v1 = vpop.eup %3691 }
 0x6a3   : > { %v1971_v17 = vmul.f32 %v3692_v1, %v4804_v29 }
 0x6a4   : > { %v2137_v28 = vpop.permute.xlu1 %2136 }
 0x6a5   : > { %v1979_v56 = vmul.f32 %v4738_v24, %v1971_v17 }
 0x6a6   : > { %v3694_v5 = vpop.eup %3693 }
 0x6a7   : > { %v1996_v27 = vadd.f32 %v1988_v33, %v1979_v56  ;;  %v1975_v59 = vmul.f32 %v3694_v5, %v4804_v29 }
 0x6a9   : > { %3399 = vmatmul.mubr.msk.f32.gmra.mxu0 %vm891_vm0, %v1996_v27  ;;  %v1983_v24 = vmul.f32 %v4742_v22, %v1975_v59  ;;  %v2141_v22 = vpop.permute.xlu1 %2140 }
 0x6aa   : > { %3401 = vmatprep.mubr.msk.f32.mxu0 %vm891_vm0, %v1997_v42 }
 0x6ab   : > { %v2000_v29 = vadd.f32 %v1992_v19, %v1983_v24 }
 0x6ad   : > { %3402 = vmatmul.mubr.msk.f32.gmra.mxu0 %vm891_vm0, %v1998_v13  ;;  %v2145_v54 = vpop.permute.xlu1 %2144 }
 0x6ae   : > { %3404 = vmatprep.mubr.msk.f32.mxu0 %vm891_vm0, %v1999_v21 }
 0x6b1   : > { %3405 = vmatmul.mubr.msk.f32.gmra.mxu0 %vm891_vm0, %v2000_v29 }
 0x6b2   : > { %3423 = vmatprep.mubr.msk.f32.mxu0 %vm891_vm0, %v2131_v26 }
 0x6b5   : > { %3424 = vmatmul.mubr.msk.f32.vlgmr.msra.gmra.mxu0 %vm891_vm0, %v2133_v61 }
 0x6b6   : > { %3426 = vmatprep.mubr.msk.f32.mxu0 %vm891_vm0, %v2135_v53 }
 0x6b9   : > { %3427 = vmatmul.mubr.msk.f32.gmra.mxu0 %vm891_vm0, %v2137_v28 }
 0x6ba   : > { %3429 = vmatprep.mubr.msk.f32.mxu0 %vm891_vm0, %v2139_v37 }
 0x6bd   : > { %3430 = vmatmul.mubr.msk.f32.gmra.mxu0 %vm891_vm0, %v2141_v22 }
 0x6be   : > { %3432 = vmatprep.mubr.msk.f32.mxu0 %vm891_vm0, %v2143_v57 }
 0x6c1   : > { %3433 = vmatmul.mubr.msk.f32.gmra.mxu0 %vm891_vm0, %v2145_v54 }
 0x6e5   : > { %v4853_v34 = vpop.f32.mrf.mxu0 }
 0x6e7   : > { %v4855_v12 = vpop.f32.mrf.mxu0 }
 0x6ea   : > { %v4857_v30 = vpop.f32.mrf.mxu0 }
 0x6ec   : > { %v4859_v8 = vpop.f32.mrf.mxu0 }
 0x6ee   : > { %v4861_v11 = vpop.f32.mrf.mxu0 }
 0x6f0   : > { %v4863_v10 = vpop.f32.mrf.mxu0 }
 0x6f2   : > { %v4865_v25 = vpop.f32.mrf.mxu0 }
 0x6f4   : > { %v4867_v43 = vpop.f32.mrf.mxu0 }
 0x735   : > { %v4869_v49 = vpop.f32.mrf.mxu0 }
 0x737   : > { %v4871_v31 = vpop.f32.mrf.mxu0 }
 0x769   : > { %v4873_v7 = vpop.f32.mrf.mxu0 }
 0x76b   : > { %v4875_v3 = vpop.f32.mrf.mxu0 }
 0x76d   : > { %v4877_v44 = vpop.f32.mrf.mxu0 }
 0x76f   : > { %v4879_v47 = vpop.f32.mrf.mxu0 }
 0x771   : > { %v4881_v45 = vpop.f32.mrf.mxu0 }
 0x773   : > { %v4883_v16 = vpop.f32.mrf.mxu0 }
 0x775   : > { %v3425_v52 = vpop.f32.mrf.mxu0 }
 0x776   : > { %v2302_v51 = vsel %vm891_vm0, %v3425_v52, -inf }
 0x777   : > { %2303 = vmax.xlane.f32.xlu1 %v2302_v51  ;;  %v2260_v35 = vpop.f32.mrf.mxu0 }
 0x778   : > { %v2299_v50 = vsel %vm891_vm0, %v2260_v35, -inf }
 0x779   : > { %2300 = vmax.xlane.f32.xlu0 %v2299_v50  ;;  %v3428_v38 = vpop.f32.mrf.mxu0 }
 0x77a   : > { %v2308_v1 = vsel %vm891_vm0, %v3428_v38, -inf }
 0x77b   : > { %v2270_v40 = vpop.f32.mrf.mxu0 }
 0x77c   : > { %v2305_v33 = vsel %vm891_vm0, %v2270_v40, -inf }
 0x77d   : > { %2309 = vmax.xlane.f32.xlu0 %v2308_v1  ;;  %v3431_v17 = vpop.f32.mrf.mxu0 }
 0x77e   : > { %v2314_v36 = vsel %vm891_vm0, %v3431_v17, -inf }
 0x77f   : > { %2315 = vmax.xlane.f32.xlu1 %v2314_v36  ;;  %v2280_v63 = vpop.f32.mrf.mxu0 }
 0x780   : > { %v2311_v15 = vsel %vm891_vm0, %v2280_v63, -inf }
 0x781   : > { %2306 = vmax.xlane.f32.xlu0 %v2305_v33  ;;  %v4899_v56 = vpop.f32.mrf.mxu0 }
 0x783   : > { %v4901_v9 = vpop.f32.mrf.mxu0 }
 0x784   : > { %v2317_v5 = vsel %vm891_vm0, %v4901_v9, -inf }
 0x785   : > { %2312 = vmax.xlane.f32.xlu0 %v2311_v15 }
 0x790   : > { %2434 = vrot.lane.b32.xlu1 %v4363_v6, %s3937_s27  ;;  %v2320_v6 = vsel %vm891_vm0, %v4899_v56, -inf }
 0x794   : > { %2432 = vrot.lane.b32.xlu1 %v4359_v4, %s3937_s27 }
 0x798   : > { %2430 = vrot.lane.b32.xlu1 %v4355_v0, %s3937_s27 }
 0x79b   : > { %2436 = vrot.lane.b32.xlu0 %v4575_v41, %s3937_s27 }
 0x7ba   : > { %2318 = vmax.xlane.f32.xlu0 %v2317_v5 }
 0x7bc   : > { %2321 = vmax.xlane.f32.xlu1 %v2320_v6 }
 0x7cd   : > { %2426 = vrot.lane.b32.xlu1 %v4347_v60, %s3937_s27 }
 0x7d0   : > { %2428 = vrot.lane.b32.xlu0 %v4351_v62, %s3937_s27 }
 0x800   : > { %v2304_v0 = vpop.xlane.xlu1 %2303 }
 0x801   : > { %v2324_v4 = vsub.f32 %v3425_v52, %v2304_v0 }
 0x802   : > { %v2301_v41 = vpop.xlane.xlu0 %2300 }
 0x803   : > { %v2333_v27 = vmul.f32 1.442695, %v2324_v4  ;;  %v2323_v48 = vsub.f32 %v2260_v35, %v2301_v41 }
 0x805   : > { %3695 = vpow2.f32 %v2333_v27  ;;  %v2331_v59 = vmul.f32 1.442695, %v2323_v48 }
 0x806   : > { %v2310_v42 = vpop.xlane.xlu0 %2309 }
 0x807   : > { %3697 = vpow2.f32 %v2331_v59  ;;  %v2326_v32 = vsub.f32 %v3428_v38, %v2310_v42 }
 0x808   : > { %v2316_v39 = vpop.xlane.xlu1 %2315 }
 0x809   : > { %v2337_v2 = vmul.f32 1.442695, %v2326_v32  ;;  %v2328_v26 = vsub.f32 %v3431_v17, %v2316_v39  ;;  %v2380_v32 = vstv %s3095_s19 }
 0x80a   : > { %v2307_v13 = vpop.xlane.xlu0 %2306 }
 0x80b   : > { %3699 = vpow2.f32 %v2337_v2  ;;  %v2341_v24 = vmul.f32 1.442695, %v2328_v26  ;;  %v2325_v60 = vsub.f32 %v2270_v40, %v2307_v13  ;;  %v2398_v2 = vld [vmem:[#allocation8 + $0xc0] sm:$0xff] }
 0x80c   : > { %v2435_v21 = vpop.permute.xlu1 %2434 }
 0x80d   : > { %3701 = vpow2.f32 %v2341_v24  ;;  %v2335_v62 = vmul.f32 1.442695, %v2325_v60 }
 0x80e   : > { %v2313_v19 = vpop.xlane.xlu0 %2312 }
 0x80f   : > { %3703 = vpow2.f32 %v2335_v62  ;;  %v2327_v61 = vsub.f32 %v2280_v63, %v2313_v19 }
 0x810   : > { %v2433_v28 = vpop.permute.xlu1 %2432 }
 0x811   : > { %v2339_v29 = vmul.f32 1.442695, %v2327_v61 }
 0x812   : > { %v4911_v53 = vpop.eup %3695  ;;  %v2437_v37 = vpop.permute.xlu0 %2436 }
 0x813   : > { %3705 = vpow2.f32 %v2339_v29  ;;  %3435 = vmatprep.subr.mxu1 %v2437_v37  ;;  %v2350_v22 = vsel %vm891_vm0, %v4911_v53, 0.0 }
 0x814   : > { %v3698_v57 = vpop.eup %3697  ;;  %2351 = vadd.xlane.f32.xlu1 %v2350_v22  ;;  %3436 = vmatpush3.msra.mxu1 %v2437_v37  ;;  %v2431_v51 = vpop.permute.xlu1 %2430 }
 0x815   : > { %3437 = vmatprep.subr.mxu1 %v2435_v21  ;;  %v2347_v54 = vsel %vm891_vm0, %v3698_v57, 0.0 }
 0x816   : > { %2348 = vadd.xlane.f32.xlu0 %v2347_v54  ;;  %3438 = vmatpush3.msra.mxu1 %v2435_v21 }
 0x817   : > { %3439 = vmatprep.subr.mxu1 %v2433_v28 }
 0x818   : > { %v4916_v52 = vpop.eup %3699  ;;  %3440 = vmatpush3.msra.mxu1 %v2433_v28 }
 0x819   : > { %3441 = vmatprep.subr.mxu1 %v2431_v51  ;;  %v2356_v35 = vsel %vm891_vm0, %v4916_v52, 0.0 }
 0x81a   : > { %v4920_v50 = vpop.eup %3701  ;;  %2357 = vadd.xlane.f32.xlu1 %v2356_v35  ;;  %3442 = vmatpush3.msra.mxu1 %v2431_v51 }
 0x81b   : > { %v2362_v40 = vsel %vm891_vm0, %v4920_v50, 0.0 }
 0x81c   : > { %v4922_v38 = vpop.eup %3703 }
 0x81d   : > { %v2353_v1 = vsel %vm891_vm0, %v4922_v38, 0.0 }
 0x81e   : > { %2363 = vadd.xlane.f32.xlu1 %v2362_v40  ;;  %2354 = vadd.xlane.f32.xlu0 %v2353_v1  ;;  %v2399_v1 = vld [vmem:[#allocation8 + $0xc8] sm:$0xff] }
 0x820   : > { %v4928_v17 = vpop.eup %3705 }
 0x821   : > { %v2359_v36 = vsel %vm891_vm0, %v4928_v17, 0.0 }
 0x822   : > { %2360 = vadd.xlane.f32.xlu0 %v2359_v36 }
 0x843   : > { %v2319_v33 = vpop.xlane.xlu0 %2318 }
 0x844   : > { %v2329_v63 = vsub.f32 %v4901_v9, %v2319_v33 }
 0x845   : > { %v2322_v15 = vpop.xlane.xlu1 %2321 }
 0x846   : > { %v2343_v5 = vmul.f32 1.442695, %v2329_v63  ;;  %v2330_v6 = vsub.f32 %v4899_v56, %v2322_v15  ;;  %v2400_v63 = vld [vmem:[#allocation8 + $0xd0] sm:$0xff] }
 0x847   : > { %v2429_v0 = vpop.permute.xlu0 %2428 }
 0x848   : > { %3707 = vpow2.f32 %v2343_v5  ;;  %v2345_v4 = vmul.f32 1.442695, %v2330_v6  ;;  %3443 = vmatprep.subr.mxu1 %v2429_v0 }
 0x849   : > { %v2427_v41 = vpop.permute.xlu1 %2426  ;;  %3444 = vmatpush3.msra.mxu1 %v2429_v0 }
 0x84a   : > { %3709 = vpow2.f32 %v2345_v4  ;;  %3445 = vmatprep.subr.mxu1 %v2427_v41 }
 0x84b   : > { %3446 = vmatpush3.msra.mxu1 %v2427_v41 }
 0x855   : > { %v4934_v27 = vpop.eup %3707 }
 0x856   : > { %v2365_v48 = vsel %vm891_vm0, %v4934_v27, 0.0 }
 0x857   : > { %v4938_v59 = vpop.eup %3709  ;;  %2366 = vadd.xlane.f32.xlu0 %v2365_v48  ;;  %v2402_v48 = vld [vmem:[#allocation8 + $0xe0] sm:$0xff] }
 0x858   : > { %v2368_v56 = vsel %vm891_vm0, %v4938_v59, 0.0 }
 0x859   : > { %2369 = vadd.xlane.f32.xlu1 %v2368_v56 }
 0x86a   : > { %2422 = vrot.lane.b32.xlu1 %v4331_v55, %s3937_s27 }
 0x86d   : > { %2424 = vrot.lane.b32.xlu0 %v4341_v58, %s3937_s27 }
 0x89d   : > { %v2352_v24 = vpop.xlane.xlu1 %2351 }
 0x89f   : > { %v2349_v9 = vpop.xlane.xlu0 %2348 }
 0x8a0   : > { %3711 = vrcp.f32 %v2349_v9 }
 0x8a1   : > { %3713 = vrcp.f32 %v2352_v24 }
 0x8a3   : > { %v2358_v21 = vpop.xlane.xlu1 %2357 }
 0x8a7   : > { %v2355_v60 = vpop.xlane.xlu0 %2354  ;;  %v2364_v62 = vpop.xlane.xlu1 %2363 }
 0x8a8   : > { %3715 = vrcp.f32 %v2355_v60  ;;  %v2405_v60 = vld [vmem:[#allocation8 + $0xf8] sm:$0xff] }
 0x8a9   : > { %3717 = vrcp.f32 %v2358_v21 }
 0x8ab   : > { %v2361_v55 = vpop.xlane.xlu0 %2360 }
 0x8ac   : > { %3719 = vrcp.f32 %v2361_v55 }
 0x8ad   : > { %v3712_v42 = vpop.eup %3711  ;;  %3721 = vrcp.f32 %v2364_v62  ;;  %v2686_v62 = vld [vmem:[#allocation10 + $0xf8] sm:$0xff] }
 0x8ae   : > { %v2381_v39 = vmul.f32 %v3712_v42, %v2380_v32  ;;  %v3714_v58 = vpop.eup %3713  ;;  %v2403_v42 = vld [vmem:[#allocation8 + $0xe8] sm:$0xff] }
 0x8af   : > { %v2382_v61 = vmul.f32 %v3714_v58, %v2380_v32  ;;  %v2685_v58 = vld [vmem:[#allocation10 + $0xf0] sm:$0xff] }
 0x8b0   : > { %v2389_v26 = vmul.f32 %v3698_v57, %v2381_v39 }
 0x8b1   : > { %v2390_v54 = vmul.f32 %v4911_v53, %v2382_v61  ;;  %v2401_v53 = vld [vmem:[#allocation8 + $0xd8] sm:$0xff]  ;;  %v2683_v61 = vld [vmem:[#allocation10 + $0xe0] sm:$0xff] }
 0x8b2   : > { %v2406_v13 = vadd.f32 %v2398_v2, %v2389_v26 }
 0x8b3   : > { %v2407_v5 = vadd.f32 %v2399_v1, %v2390_v54  ;;  %v2674_v54 = vld [vmem:[#allocation10 + $0x98] sm:$0xff] }
 0x8b4   : > { %3451 = vmatprep.mubr.msk.f32.mxu1 %vm891_vm0, %v2406_v13  ;;  %v2404_v13 = vld [vmem:[#allocation8 + $0xf0] sm:$0xff]  ;;  %v2670_v1 = vld [vmem:[#allocation10 + $0x78] sm:$0xff] }
 0x8b5   : > { %v3716_v19 = vpop.eup %3715 }
 0x8b6   : > { %v3718_v29 = vpop.eup %3717  ;;  %v2383_v37 = vmul.f32 %v3716_v19, %v2380_v32  ;;  %v2684_v19 = vld [vmem:[#allocation10 + $0xe8] sm:$0xff] }
 0x8b7   : > { %v2384_v51 = vmul.f32 %v3718_v29, %v2380_v32  ;;  %v2682_v29 = vld [vmem:[#allocation10 + $0xd8] sm:$0xff] }
 0x8b8   : > { %v2391_v36 = vmul.f32 %v4922_v38, %v2383_v37  ;;  %v2677_v37 = vld [vmem:[#allocation10 + $0xb0] sm:$0xff] }
 0x8b9   : > { %v3720_v22 = vpop.eup %3719  ;;  %v2392_v6 = vmul.f32 %v4916_v52, %v2384_v51  ;;  %v2673_v51 = vld [vmem:[#allocation10 + $0x90] sm:$0xff] }
 0x8ba   : > { %v3722_v35 = vpop.eup %3721  ;;  %v2385_v33 = vmul.f32 %v3720_v22, %v2380_v32  ;;  %v2408_v4 = vadd.f32 %v2400_v63, %v2391_v36  ;;  %v2676_v22 = vld [vmem:[#allocation10 + $0xa8] sm:$0xff]  ;;  %v2669_v36 = vld [vmem:[#allocation10 + $0x70] sm:$0xff]  ;;  %v2667_v63 = vld [vmem:[#allocation10 + $0x60] sm:$0xff] }
 0x8bb   : > { %v2386_v0 = vmul.f32 %v3722_v35, %v2380_v32  ;;  %v2409_v38 = vadd.f32 %v2401_v53, %v2392_v6  ;;  %v2672_v35 = vld [vmem:[#allocation10 + $0x88] sm:$0xff]  ;;  %v2661_v53 = vld [vmem:[#allocation10 + $0x30] sm:$0xff] }
 0x8bc   : > { %v2393_v41 = vmul.f32 %v4928_v17, %v2385_v33  ;;  %v2668_v33 = vld [vmem:[#allocation10 + $0x68] sm:$0xff] }
 0x8bd   : > { %v2394_v56 = vmul.f32 %v4920_v50, %v2386_v0  ;;  %v2664_v6 = vld [vmem:[#allocation10 + $0x48] sm:$0xff]  ;;  %v2663_v0 = vld [vmem:[#allocation10 + $0x40] sm:$0xff] }
 0x8be   : > { %v2410_v9 = vadd.f32 %v2402_v48, %v2393_v41  ;;  %v2660_v41 = vld [vmem:[#allocation10 + $0x28] sm:$0xff]  ;;  %v2659_v48 = vld [vmem:[#allocation10 + $0x20] sm:$0xff] }
 0x8bf   : > { %v2411_v52 = vadd.f32 %v2403_v42, %v2394_v56  ;;  %v2657_v56 = vld [vmem:[#allocation10 + $0x10] sm:$0xff]  ;;  %v2655_v42 = vld [vmem:[#allocation10] sm:$0xff] }
 0x8e0   : > { %v2367_v28 = vpop.xlane.xlu0 %2366 }
 0x8e1   : > { %3723 = vrcp.f32 %v2367_v28  ;;  %v2681_v28 = vld [vmem:[#allocation10 + $0xd0] sm:$0xff] }
 0x8e2   : > { %v2370_v57 = vpop.xlane.xlu1 %2369 }
 0x8e3   : > { %3725 = vrcp.f32 %v2370_v57  ;;  %v2675_v57 = vld [vmem:[#allocation10 + $0xa0] sm:$0xff] }
 0x8e4   : > { %v2425_v40 = vpop.permute.xlu0 %2424 }
 0x8e5   : > { %3447 = vmatprep.subr.mxu1 %v2425_v40 }
 0x8e6   : > { %v2423_v15 = vpop.permute.xlu1 %2422  ;;  %3448 = vmatpush3.msra.mxu1 %v2425_v40  ;;  %v2671_v40 = vld [vmem:[#allocation10 + $0x80] sm:$0xff] }
 0x8e7   : > { %3449 = vmatprep.subr.mxu1 %v2423_v15 }
 0x8e8   : > { %3450 = vmatpush3.msra.mxu1 %v2423_v15  ;;  %v2666_v15 = vld [vmem:[#allocation10 + $0x58] sm:$0xff] }
 0x8e9   : > { %3452 = vmatmul.mubr.msk.f32.vlgmr.msra.gmra.mxu1 %vm891_vm0, %v2407_v5  ;;  %2731 = vmatprep.subr.mxu1 %v2686_v62  ;;  %v2665_v5 = vld [vmem:[#allocation10 + $0x50] sm:$0xff]  ;;  %v2707_v62 = vld [vmem:[#allocation10 + $0x1a0] sm:$0xff] }
 0x8ea   : > { %3454 = vmatprep.mubr.msk.f32.mxu1 %vm891_vm0, %v2408_v4  ;;  %2732 = vmatpush1.msra.mxu1 %v2685_v58  ;;  %v2662_v4 = vld [vmem:[#allocation10 + $0x38] sm:$0xff] }
 0x8eb   : > { %2733 = vmatprep.subr.mxu1 %v2684_v19  ;;  %v2706_v58 = vld [vmem:[#allocation10 + $0x198] sm:$0xff]  ;;  %v2705_v19 = vld [vmem:[#allocation10 + $0x190] sm:$0xff] }
 0x8ec   : > { %2734 = vmatpush1.msra.mxu1 %v2683_v61  ;;  %v2704_v61 = vld [vmem:[#allocation10 + $0x188] sm:$0xff] }
 0x8ed   : > { %3455 = vmatmul.mubr.msk.f32.gmra.mxu1 %vm891_vm0, %v2409_v38  ;;  %2735 = vmatprep.subr.mxu1 %v2682_v29  ;;  %v2658_v38 = vld [vmem:[#allocation10 + $0x18] sm:$0xff]  ;;  %v2703_v29 = vld [vmem:[#allocation10 + $0x180] sm:$0xff] }
 0x8ee   : > { %v3724_v39 = vpop.eup %3723  ;;  %3457 = vmatprep.mubr.msk.f32.mxu1 %vm891_vm0, %v2410_v9  ;;  %2736 = vmatpush1.msra.mxu1 %v2681_v28  ;;  %v2656_v9 = vld [vmem:[#allocation10 + $0x8] sm:$0xff]  ;;  %v2702_v28 = vld [vmem:[#allocation10 + $0x178] sm:$0xff] }
 0x8ef   : > { %v2387_v2 = vmul.f32 %v3724_v39, %v2380_v32  ;;  %v2718_v39 = vld [vmem:[#allocation10 + $0x1f8] sm:$0xff] }
 0x8f0   : > { %v3726_v26 = vpop.eup %3725 }
 0x8f1   : > { %3458 = vmatmul.mubr.msk.f32.gmra.mxu1 %vm891_vm0, %v2411_v52  ;;  %v2395_v17 = vmul.f32 %v4934_v27, %v2387_v2  ;;  %v2388_v24 = vmul.f32 %v3726_v26, %v2380_v32  ;;  %v2680_v27 = vld [vmem:[#allocation10 + $0xc8] sm:$0xff]  ;;  %v2679_v32 = vld [vmem:[#allocation10 + $0xc0] sm:$0xff]  ;;  %v2717_v52 = vld [vmem:[#allocation10 + $0x1f0] sm:$0xff] }
 0x8f2   : > { %2737 = vmatprep.subr.mxu1 %v2680_v27  ;;  %v2716_v2 = vld [vmem:[#allocation10 + $0x1e8] sm:$0xff]  ;;  %v2715_v26 = vld [vmem:[#allocation10 + $0x1e0] sm:$0xff]  ;;  %v2701_v27 = vld [vmem:[#allocation10 + $0x170] sm:$0xff] }
 0x8f3   : > { %v2412_v21 = vadd.f32 %v2404_v13, %v2395_v17  ;;  %v2396_v50 = vmul.f32 %v4938_v59, %v2388_v24  ;;  %v2678_v59 = vld [vmem:[#allocation10 + $0xb8] sm:$0xff]  ;;  %2738 = vmatpush1.msra.mxu1 %v2679_v32  ;;  %v2713_v17 = vld [vmem:[#allocation10 + $0x1d0] sm:$0xff]  ;;  %v2712_v24 = vld [vmem:[#allocation10 + $0x1c8] sm:$0xff] }
 0x8f4   : > { %2739 = vmatprep.subr.mxu1 %v2678_v59  ;;  %v2714_v13 = vld [vmem:[#allocation10 + $0x1d8] sm:$0xff]  ;;  %v2700_v32 = vld [vmem:[#allocation10 + $0x168] sm:$0xff]  ;;  %v2699_v59 = vld [vmem:[#allocation10 + $0x160] sm:$0xff] }
 0x8f5   : > { %3460 = vmatprep.mubr.msk.f32.mxu1 %vm891_vm0, %v2412_v21  ;;  %v2413_v55 = vadd.f32 %v2405_v60, %v2396_v50  ;;  %2740 = vmatpush1.msra.mxu1 %v2677_v37  ;;  %v2711_v60 = vld [vmem:[#allocation10 + $0x1c0] sm:$0xff]  ;;  %v2710_v21 = vld [vmem:[#allocation10 + $0x1b8] sm:$0xff]  ;;  %v2709_v50 = vld [vmem:[#allocation10 + $0x1b0] sm:$0xff] }
 0x8f6   : > { %2741 = vmatprep.subr.mxu1 %v2676_v22  ;;  %v2698_v37 = vld [vmem:[#allocation10 + $0x158] sm:$0xff]  ;;  %v2697_v22 = vld [vmem:[#allocation10 + $0x150] sm:$0xff] }
 0x8f7   : > { %3461 = vmatmul.mubr.msk.f32.gmra.mxu1 %vm891_vm0, %v2413_v55  ;;  %v2708_v55 = vld [vmem:[#allocation10 + $0x1a8] sm:$0xff] }
 0x8f8   : > { %2742 = vmatpush1.msra.mxu1 %v2675_v57  ;;  %v2696_v57 = vld [vmem:[#allocation10 + $0x148] sm:$0xff] }
 0x8f9   : > { %2743 = vmatprep.subr.mxu1 %v2674_v54  ;;  %v2695_v54 = vld [vmem:[#allocation10 + $0x140] sm:$0xff] }
 0x8fa   : > { %2744 = vmatpush1.msra.mxu1 %v2673_v51  ;;  %v2694_v51 = vld [vmem:[#allocation10 + $0x138] sm:$0xff] }
 0x8fb   : > { %2745 = vmatprep.subr.mxu1 %v2672_v35  ;;  %v2693_v35 = vld [vmem:[#allocation10 + $0x130] sm:$0xff] }
 0x8fc   : > { %2746 = vmatpush1.msra.mxu1 %v2671_v40  ;;  %v2692_v40 = vld [vmem:[#allocation10 + $0x128] sm:$0xff] }
 0x8fd   : > { %2747 = vmatprep.subr.mxu1 %v2670_v1  ;;  %v2691_v1 = vld [vmem:[#allocation10 + $0x120] sm:$0xff] }
 0x8fe   : > { %2748 = vmatpush1.msra.mxu1 %v2669_v36  ;;  %v2690_v36 = vld [vmem:[#allocation10 + $0x118] sm:$0xff] }
 0x8ff   : > { %2749 = vmatprep.subr.mxu1 %v2668_v33  ;;  %v2689_v33 = vld [vmem:[#allocation10 + $0x110] sm:$0xff] }
 0x900   : > { %2750 = vmatpush1.msra.mxu1 %v2667_v63  ;;  %v2688_v63 = vld [vmem:[#allocation10 + $0x108] sm:$0xff] }
 0x901   : > { %2751 = vmatprep.subr.mxu1 %v2666_v15  ;;  %v2687_v15 = vld [vmem:[#allocation10 + $0x100] sm:$0xff] }
 0x902   : > { %2752 = vmatpush1.msra.mxu1 %v2665_v5 }
 0x903   : > { %2753 = vmatprep.subr.mxu1 %v2664_v6 }
 0x904   : > { %2754 = vmatpush1.msra.mxu1 %v2663_v0 }
 0x905   : > { %2755 = vmatprep.subr.mxu1 %v2662_v4 }
 0x906   : > { %2756 = vmatpush1.msra.mxu1 %v2661_v53 }
 0x907   : > { %2757 = vmatprep.subr.mxu1 %v2660_v41 }
 0x908   : > { %2758 = vmatpush1.msra.mxu1 %v2659_v48 }
 0x909   : > { %2759 = vmatprep.subr.mxu1 %v2658_v38 }
 0x90a   : > { %2760 = vmatpush1.msra.mxu1 %v2657_v56 }
 0x90b   : > { %2761 = vmatprep.subr.mxu1 %v2656_v9 }
 0x90c   : > { %2762 = vmatpush1.msra.mxu1 %v2655_v42 }
 0x90d   : > { %2763 = vmatprep.subr.mxu1 %v2718_v39 }
 0x90e   : > { %2764 = vmatpush2.msra.mxu1 %v2717_v52 }
 0x90f   : > { %2765 = vmatprep.subr.mxu1 %v2716_v2 }
 0x910   : > { %2766 = vmatpush2.msra.mxu1 %v2715_v26 }
 0x911   : > { %2767 = vmatprep.subr.mxu1 %v2714_v13 }
 0x912   : > { %2768 = vmatpush2.msra.mxu1 %v2713_v17 }
 0x913   : > { %2769 = vmatprep.subr.mxu1 %v2712_v24 }
 0x914   : > { %2770 = vmatpush2.msra.mxu1 %v2711_v60 }
 0x915   : > { %2771 = vmatprep.subr.mxu1 %v2710_v21 }
 0x916   : > { %2772 = vmatpush2.msra.mxu1 %v2709_v50 }
 0x917   : > { %2773 = vmatprep.subr.mxu1 %v2708_v55 }
 0x918   : > { %2774 = vmatpush2.msra.mxu1 %v2707_v62 }
 0x919   : > { %2775 = vmatprep.subr.mxu1 %v2706_v58 }
 0x91a   : > { %2776 = vmatpush2.msra.mxu1 %v2705_v19 }
 0x91b   : > { %2777 = vmatprep.subr.mxu1 %v2704_v61 }
 0x91c   : > { %2778 = vmatpush2.msra.mxu1 %v2703_v29 }
 0x91d   : > { %2779 = vmatprep.subr.mxu1 %v2702_v28 }
 0x91e   : > { %2780 = vmatpush2.msra.mxu1 %v2701_v27 }
 0x91f   : > { %2781 = vmatprep.subr.mxu1 %v2700_v32 }
 0x920   : > { %2782 = vmatpush2.msra.mxu1 %v2699_v59 }
 0x921   : > { %2783 = vmatprep.subr.mxu1 %v2698_v37 }
 0x922   : > { %2784 = vmatpush2.msra.mxu1 %v2697_v22 }
 0x923   : > { %2785 = vmatprep.subr.mxu1 %v2696_v57 }
 0x924   : > { %2786 = vmatpush2.msra.mxu1 %v2695_v54 }
 0x925   : > { %2787 = vmatprep.subr.mxu1 %v2694_v51 }
 0x926   : > { %2788 = vmatpush2.msra.mxu1 %v2693_v35 }
 0x927   : > { %2789 = vmatprep.subr.mxu1 %v2692_v40  ;;  %v5116_v40 = vld [vmem:[#allocation20_spill] sm:$0xff] }
 0x928   : > { %2790 = vmatpush2.msra.mxu1 %v2691_v1  ;;  %v5117_v1 = vld [vmem:[#allocation19_spill] sm:$0xff] }
 0x929   : > { %2791 = vmatprep.subr.mxu1 %v2690_v36 }
 0x92a   : > { %2792 = vmatpush2.msra.mxu1 %v2689_v33  ;;  %v2721_v33 = vlaneseq }
 0x92b   : > { %2793 = vmatprep.subr.mxu1 %v2688_v63 }
 0x92c   : > { %2794 = vmatpush2.msra.mxu1 %v2687_v15  ;;  %v2722_v63 = vshrl.u32 %v2721_v33, 7 }
 0x92e   : > { %v2723_v15 = vsub.s32 0, %v2722_v63 }
 0x9a9   : > { %v3453_v5 = vpop.f32.mrf.mxu1 }
 0x9aa   : > { %v3564_v6 = vpack.i.bf16 %v4853_v34, %v3453_v5  ;;  %v2727_v5 = vsub.s32 1, %v2722_v63 }
 0x9ab   : > { %v2536_v0 = vpop.f32.mrf.mxu1 }
 0x9ac   : > { %v3559_v4 = vpack.i.bf16 %v4855_v12, %v2536_v0  ;;  %3565 = vrot.lane.b32.xlu1 %v3564_v6, %s3937_s27 }
 0x9ad   : > { %v3456_v53 = vpop.f32.mrf.mxu1 }
 0x9ae   : > { %v3574_v41 = vpack.i.bf16 %v4857_v30, %v3456_v53  ;;  %3560 = vrot.lane.b32.xlu0 %v3559_v4, %s3937_s27 }
 0x9af   : > { %v2546_v48 = vpop.f32.mrf.mxu1 }
 0x9b0   : > { %v3569_v38 = vpack.i.bf16 %v4859_v8, %v2546_v48  ;;  %3575 = vrot.lane.b32.xlu1 %v3574_v41, %s3937_s27 }
 0x9b1   : > { %v3459_v56 = vpop.f32.mrf.mxu1 }
 0x9b2   : > { %v3584_v9 = vpack.i.bf16 %v4861_v11, %v3459_v56  ;;  %3570 = vrot.lane.b32.xlu0 %v3569_v38, %s3937_s27 }
 0x9b3   : > { %v2556_v34 = vpop.f32.mrf.mxu1 }
 0x9b4   : > { %v3579_v12 = vpack.i.bf16 %v4863_v10, %v2556_v34  ;;  %3585 = vrot.lane.b32.xlu1 %v3584_v9, %s3937_s27 }
 0x9b6   : > { %3580 = vrot.lane.b32.xlu0 %v3579_v12, %s3937_s27 }
 0x9b7   : > { %v3462_v30 = vpop.f32.mrf.mxu1 }
 0x9b8   : > { %v3594_v42 = vpack.i.bf16 %v4865_v25, %v3462_v30 }
 0x9b9   : > { %v2566_v39 = vpop.f32.mrf.mxu1 }
 0x9ba   : > { %v3589_v8 = vpack.i.bf16 %v4867_v43, %v2566_v39  ;;  %3595 = vrot.lane.b32.xlu1 %v3594_v42, %s3937_s27 }
 0x9bc   : > { %3590 = vrot.lane.b32.xlu0 %v3589_v8, %s3937_s27  ;;  %s3938_s27 = smov [#allocation12]  }
 0x9bd   : > { %s3852_s29 = sshll.u32 %s3938_s27, 4  ;;  %s3853_s29 = int_to_ptr.vmem [resolvable:$false] %s3852_s29 }
 0x9be   : > { %s3854_s12 = scalar_lea.vmem %s3853_s29, 4096  ;;  %p3855_p5 = scmp.lt.s32.totalorder %s5037_s20, %s3853_s29 }
 0x9bf   : > { %p3856_p1 = scmp.lt.s32.totalorder %s3854_s12, %s3848_s25 }
 0x9c1   : > { %p3857_p10 = por %p3856_p1, %p3855_p5 }
 0x9c3   : > { %p3858_p8 = pnand %p3857_p10, %p3851_p0 }
 0xa1e   : > { %v3566_v11 = vpop.permute.xlu1 %3565 }
 0xa1f   : > { %v3567_v2 = vunpack.i.l.bf16 %v3566_v11  ;;  %v3568_v24 = vunpack.i.h.bf16 %v3566_v11 }
 0xa20   : > { %v3561_v52 = vpop.permute.xlu0 %3560 }
 0xa21   : > { %v3563_v26 = vunpack.i.h.bf16 %v3561_v52  ;;  %v3562_v13 = vunpack.i.l.bf16 %v3561_v52  ;;  %v2648_v43 = vsel %vm891_vm0, %v4869_v49, %v3567_v2  ;;  %v2640_v55 = vsel %vm891_vm0, %v4583_v14, %v3568_v24 }
 0xa22   : > { %v3576_v21 = vpop.permute.xlu1 %3575 }
 0xa23   : > { %v2647_v10 = vsel %vm891_vm0, %v4871_v31, %v3562_v13  ;;  %v2639_v17 = vsel %vm891_vm0, %v4587_v18, %v3563_v26  ;;  %v3577_v62 = vunpack.i.l.bf16 %v3576_v21  ;;  %v3578_v58 = vunpack.i.h.bf16 %v3576_v21 }
 0xa24   : > { %2795 = vmatprep.mubr.f32.mxu1 %v2647_v10  ;;  %v3571_v25 = vpop.permute.xlu0 %3570 }
 0xa25   : > { %v3572_v60 = vunpack.i.l.bf16 %v3571_v25  ;;  %2796 = vmatmul.mubr.f32.vlgmr.msra.gmra.mxu1 %v2639_v17  ;;  %v3573_v50 = vunpack.i.h.bf16 %v3571_v25  ;;  %v2650_v49 = vsel %vm891_vm0, %v4873_v7, %v3577_v62  ;;  %v2642_v14 = vsel %vm891_vm0, %v4593_v23, %v3578_v58  ;;  %v5115_v23 = vld [vmem:[#allocation18_spill] sm:$0xff] }
 0xa26   : > { %2801 = vmatprep.mubr.f32.mxu1 %v2648_v43  ;;  %v3586_v29 = vpop.permute.xlu1 %3585 }
 0xa27   : > { %v2649_v31 = vsel %vm891_vm0, %v4875_v3, %v3572_v60  ;;  %v2641_v19 = vsel %vm891_vm0, %v4597_v20, %v3573_v50  ;;  %v3587_v27 = vunpack.i.l.bf16 %v3586_v29  ;;  %v3588_v59 = vunpack.i.h.bf16 %v3586_v29 }
 0xa28   : > { %v3581_v18 = vpop.permute.xlu0 %3580 }
 0xa29   : > { %2802 = vmatmul.mubr.f32.gmra.mxu1 %v2640_v55  ;;  %v3582_v61 = vunpack.i.l.bf16 %v3581_v18  ;;  %v3583_v28 = vunpack.i.h.bf16 %v3581_v18  ;;  %v2652_v7 = vsel %vm891_vm0, %v4877_v44, %v3587_v27  ;;  %v2644_v54 = vsel %vm891_vm0, %v5115_v23, %v3588_v59 }
 0xa2a   : > { %2807 = vmatprep.mubr.f32.mxu1 %v2649_v31 }
 0xa2b   : > { %v2651_v3 = vsel %vm891_vm0, %v4879_v47, %v3582_v61  ;;  %v2643_v20 = vsel %vm891_vm0, %v4601_v46, %v3583_v28 }
 0xa2c   : > { %v3596_v22 = vpop.permute.xlu1 %3595 }
 0xa2d   : > { %2808 = vmatmul.mubr.f32.gmra.mxu1 %v2641_v19  ;;  %v3597_v51 = vunpack.i.l.bf16 %v3596_v22  ;;  %v3598_v35 = vunpack.i.h.bf16 %v3596_v22 }
 0xa2e   : > { %2813 = vmatprep.mubr.f32.mxu1 %v2650_v49  ;;  %v3591_v32 = vpop.permute.xlu0 %3590 }
 0xa2f   : > { %v3592_v37 = vunpack.i.l.bf16 %v3591_v32  ;;  %v3593_v57 = vunpack.i.h.bf16 %v3591_v32  ;;  %v2654_v44 = vsel %vm891_vm0, %v4881_v45, %v3597_v51  ;;  %v2646_v36 = vsel %vm891_vm0, %v5117_v1, %v3598_v35 }
 0xa31   : > { %2814 = vmatmul.mubr.f32.gmra.mxu1 %v2642_v14  ;;  %v2653_v47 = vsel %vm891_vm0, %v4883_v16, %v3592_v37  ;;  %v2645_v46 = vsel %vm891_vm0, %v5116_v40, %v3593_v57  ;;  %v2719_v16 = vld [vmem:[%s5087_s5] sm:$0x3] }
 0xa32   : > { %2819 = vmatprep.mubr.f32.mxu1 %v2651_v3  ;;  %v2724_v6 = vrot.slane %v2719_v16, %v2723_v15  ;;  %v2728_v0 = vrot.slane %v2719_v16, %v2727_v5 }
 0xa35   : > { %2820 = vmatmul.mubr.f32.gmra.mxu1 %v2643_v20 }
 0xa36   : > { %2825 = vmatprep.mubr.f32.mxu1 %v2652_v7 }
 0xa39   : > { %2826 = vmatmul.mubr.f32.gmra.mxu1 %v2644_v54 }
 0xa3a   : > { %2831 = vmatprep.mubr.f32.mxu1 %v2653_v47 }
 0xa3d   : > { %2832 = vmatmul.mubr.f32.gmra.mxu1 %v2645_v46 }
 0xa3e   : > { %2837 = vmatprep.mubr.f32.mxu1 %v2654_v44 }
 0xa41   : > { %2838 = vmatmul.mubr.f32.gmra.mxu1 %v2646_v36 }
 0xae5   : > { %v2797_v4 = vpop.f32.mrf.mxu1 }
 0xae6   : > { %v2798_v53 = vadd.f32 %v2797_v4, %v2724_v6 }
 0xae7   : > { %v2799_v41 = vpop.f32.mrf.mxu1 }
 0xae8   : > { %2844 = vst [vmem:[%s5014_s30] sm:$0xff] %v2798_v53  ;;  %v2800_v45 = vadd.f32 %v2799_v41, %v2728_v0 }
 0xae9   : > { %v2803_v48 = vpop.f32.mrf.mxu1 }
 0xaea   : > { %2845 = vst [vmem:[%s5014_s30 + $0x8] sm:$0xff] %v2800_v45  ;;  %v2804_v38 = vadd.f32 %v2803_v48, %v2724_v6 }
 0xaeb   : > { %v2805_v56 = vpop.f32.mrf.mxu1 }
 0xaec   : > { %2846 = vst [vmem:[%s5014_s30 + $0x10] sm:$0xff] %v2804_v38  ;;  %v2806_v9 = vadd.f32 %v2805_v56, %v2728_v0 }
 0xaed   : > { %v2809_v34 = vpop.f32.mrf.mxu1 }
 0xaee   : > { %2847 = vst [vmem:[%s5014_s30 + $0x18] sm:$0xff] %v2806_v9  ;;  %v2810_v12 = vadd.f32 %v2809_v34, %v2724_v6 }
 0xaef   : > { %v2811_v30 = vpop.f32.mrf.mxu1 }
 0xaf0   : > { %2848 = vst [vmem:[%s5014_s30 + $0x20] sm:$0xff] %v2810_v12  ;;  %v2812_v42 = vadd.f32 %v2811_v30, %v2728_v0 }
 0xaf1   : > { %v2815_v39 = vpop.f32.mrf.mxu1 }
 0xaf2   : > { %2849 = vst [vmem:[%s5014_s30 + $0x28] sm:$0xff] %v2812_v42  ;;  %v2816_v8 = vadd.f32 %v2815_v39, %v2724_v6 }
 0xaf3   : > { %v2817_v11 = vpop.f32.mrf.mxu1 }
 0xaf4   : > { %2850 = vst [vmem:[%s5014_s30 + $0x30] sm:$0xff] %v2816_v8  ;;  %v2818_v52 = vadd.f32 %v2817_v11, %v2728_v0 }
 0xaf5   : > { %v2821_v2 = vpop.f32.mrf.mxu1 }
 0xaf6   : > { %2851 = vst [vmem:[%s5014_s30 + $0x38] sm:$0xff] %v2818_v52  ;;  %v2822_v26 = vadd.f32 %v2821_v2, %v2724_v6 }
 0xaf7   : > { %v2823_v13 = vpop.f32.mrf.mxu1 }
 0xaf8   : > { %2852 = vst [vmem:[%s5014_s30 + $0x40] sm:$0xff] %v2822_v26  ;;  %v2824_v10 = vadd.f32 %v2823_v13, %v2728_v0 }
 0xaf9   : > { %v2827_v17 = vpop.f32.mrf.mxu1 }
 0xafa   : > { %2853 = vst [vmem:[%s5014_s30 + $0x48] sm:$0xff] %v2824_v10  ;;  %v2828_v24 = vadd.f32 %v2827_v17, %v2724_v6 }
 0xafb   : > { %v2829_v25 = vpop.f32.mrf.mxu1 }
 0xafc   : > { %2854 = vst [vmem:[%s5014_s30 + $0x50] sm:$0xff] %v2828_v24  ;;  %v2830_v60 = vadd.f32 %v2829_v25, %v2728_v0 }
 0xafd   : > { %v2833_v43 = vpop.f32.mrf.mxu1 }
 0xafe   : > { %2855 = vst [vmem:[%s5014_s30 + $0x58] sm:$0xff] %v2830_v60  ;;  %v2834_v21 = vadd.f32 %v2833_v43, %v2724_v6 }
 0xaff   : > { %v2835_v50 = vpop.f32.mrf.mxu1 }
 0xb00   : > { %2856 = vst [vmem:[%s5014_s30 + $0x60] sm:$0xff] %v2834_v21  ;;  %v2836_v55 = vadd.f32 %v2835_v50, %v2728_v0 }
 0xb01   : > { %v2839_v62 = vpop.f32.mrf.mxu1 }
 0xb02   : > { %2857 = vst [vmem:[%s5014_s30 + $0x68] sm:$0xff] %v2836_v55  ;;  %v2840_v31 = vadd.f32 %v2839_v62, %v2724_v6 }
 0xb03   : > { %v2841_v18 = vpop.f32.mrf.mxu1 }
 0xb04   : > { %2858 = vst [vmem:[%s5014_s30 + $0x70] sm:$0xff] %v2840_v31  ;;  %v2842_v58 = vadd.f32 %v2841_v18, %v2728_v0 }
 0xb06   : > { %2859 = vst [vmem:[%s5014_s30 + $0x78] sm:$0xff] %v2842_v58 }
 0xb07   : > { %3861 = shalt.err (!%p3858_p8)
}
 0xb08   : > { %s3862_s16 = scalar_lea.hbm %s5035_s7, 2048  ;;  %s3866_s13 = scalar_lea.hbm %s5088_s6, 4096 }
 0xb09   : > { %p3863_p13 = scmp.ne.s32.totalorder %s5035_s7, %s3862_s16  ;;  %p3867_p3 = scmp.lt.s32.totalorder %s5035_s7, %s5088_s6 }
 0xb0a   : > { %p3868_p4 = scmp.lt.s32.totalorder %s3866_s13, %s3862_s16 }
 0xb0b   : > { %p3864_p11 = pnand %p3863_p13, %p5118_p7 }
 0xb0c   : > { %p3869_p12 = por %p3868_p4, %p3867_p3 }
 0xb0d   : > { %p3865_p2 = pneg %p3864_p11 }
 0xb0f   : > { %p3870_p6 = pnand %p3869_p12, %p3865_p2 }
 0xb11   : > { %3873 = shalt.err (!%p3870_p6)
}
 0xb12   : > { %s3939_s11 = smov 256   ;;  %s3940_s15 = smov 16  }
 0xb13   : > { %3481 = dma.vmem_to_hbm [thread:$0]  (%p5118_p7), %s5037_s20, 2048, %s5035_s7, %s2861_s17, %s3939_s11, %s3939_s11, %s3940_s15  }
 0xb14 PF: > { %s2889_s25 = sand.u32 1, %s3912_s21   ;;  %p5119_p9 = scmp.ne.s32.totalorder %s5096_s28, 0 }
 0xb15   : > { %p5120_p0 = scmp.ge.s32.totalorder %s3924_s24, 2  ;;  %s2890_s27 = scalar_lea.sflag [#allocation4], %s2889_s25 }
 0xb17   : > { %p3501_p5 = pnand %p5120_p0, %p5119_p9 }
 0xb19   : > { %p3502_p1 = pneg %p3501_p5 }
 0xb1b   : > { %3907 = dma.done.wait (%p3502_p1), %s2890_s27, 2048  }
 0xb1c   : > { %3909 = vsyncadd (%p3502_p1), %s2890_s27, 4294965248  ;;  %p22_p10 = scmp.ge.s32.totalorder %s4067_s18, 4   ;;  %s5121_s21 = smov %s3916_s22 }
 0xb1d   : > { %s5122_s22 = smov %s3920_s23  ;;  %s5123_s23 = smov %s4076_s26 }
 0xb1e   : > { %s5124_s24 = smov %s4067_s18  ;;  %24 = sbr.rel (!%p22_p10) target bundleno = 8 (0x8), region = 109 }
 0xb23   :  { %2895 = vsyncpa [#allocation3], 1 }
 0xb24   :  { %2897 = vsyncpa [#allocation3 + $0x1], 1 }
 0xb25   :  { %2898 = vsyncpa [#allocation7], 1 }
 0xb26   :  { %2899 = vsyncpa [#allocation11], 1 }
 0xb27   :  { %2900 = vsyncpa [#allocation4], 1 }
 0xb28   :  { %2902 = vsyncpa [#allocation4 + $0x1], 1 }
 0xb29   :  { %2903 = vsyncpa [#allocation5], 1 }
 0xb2a   :  { %2905 = vsyncpa [#allocation5 + $0x1], 1 }

</bundles_post_ra>
